<compile_context>
chip_gen: v7x
topology: tpu7x:2x2x1
jax: 0.10.0
libtpu: 0.0.40
codegen_flags: <defaults>
</compile_context>

<pallas_src>
import itertools
import numpy as np

import jax
import jax.numpy as jnp
from jax import lax
from jax.experimental import pallas as pl
from jax.experimental.pallas import tpu as pltpu

# ----------------------------- configuration (small shapes) -----------------
DIM = 32          # dim
KD = 8            # key_dim
NH = 4            # num_heads
ATTN_RATIO = 2
RES = 7           # resolution (stride=None path)
N = RES * RES     # 49 tokens
D = ATTN_RATIO * KD          # 16
DH = D * NH                  # 64
NHKD = NH * KD               # 32
DIM_AUG = DIM + 1            # x augmented with a ones column (folds biases)
SCALE = KD ** (-0.5)
B = 2
BN_EPS = 1e-5


# ----------------------------- Pallas kernel --------------------------------
def _shift_tokens(v, delta):
    """s[n] = v[n + delta] along the token axis, zero outside [0, N)."""
    if delta == 0:
        return v
    pad = jnp.zeros((abs(delta), v.shape[1]), v.dtype)
    if delta > 0:
        return jnp.concatenate([v[delta:, :], pad], axis=0)
    return jnp.concatenate([pad, v[:delta, :]], axis=0)


def attention4d_kernel(x_ref, a_ref, bias1_ref, wv_ref, wdw_ref, wp_ref,
                       th2_ref, o_ref, p_scr):
    x = x_ref[0]                                    # (N, DIM+1) bf16

    # column-validity masks for the 3x3 depthwise conv (no extra input needed)
    col = lax.broadcasted_iota(jnp.int32, (N, 1), 0) % RES
    mask_l = (col != 0).astype(jnp.float32)         # neighbour (r, c-1) exists
    mask_r = (col != RES - 1).astype(jnp.float32)   # neighbour (r, c+1) exists

    # ---- pass 1: logits via precomputed bilinear forms -> softmax ----------
    # a1_h = (x_aug @ A_h) @ x_aug^T + bias1_h ; q/k projections, scale,
    # attention bias and talking-head-1 are all folded into A_h / bias1_h.
    for h in range(NH):
        t = jnp.dot(x, a_ref[h], preferred_element_type=jnp.float32)  # (N, 33)
        a1 = lax.dot_general(t.astype(jnp.bfloat16), x,
                             (((1,), (1,)), ((), ())),
                             preferred_element_type=jnp.float32)       # (N, N)
        a1 = a1 + bias1_ref[h]
        m = jnp.max(a1, axis=-1, keepdims=True)
        e = jnp.exp(a1 - m)
        r = pl.reciprocal(jnp.sum(e, axis=-1, keepdims=True), approx=True)
        p_scr[h] = e * r            # stage in VMEM: bounds vreg live ranges

    # ---- pass 2: per-head v, fused depthwise 3x3, TH2, attn@v, projection --
    y = wp_ref[0][D:D + 1, :]                       # projection bias (packed)
    for h in range(NH):
        # v_h = x_aug @ Wv_aug_h  (head-major, bias via the ones column)
        v_h = jnp.dot(x, wv_ref[h], preferred_element_type=jnp.float32)

        # depthwise 3x3 conv (BN folded) on the 7x7 grid: horizontal taps are
        # masked +-1 shifts, vertical taps shift the weighted row sums by +-7.
        wdw = wdw_ref[h]                            # (10, D): 9 taps + bias
        h_l = _shift_tokens(v_h, -1) * mask_l       # neighbour (r, c-1)
        h_r = _shift_tokens(v_h, +1) * mask_r       # neighbour (r, c+1)
        vloc = wdw[9:10, :] + jnp.zeros_like(v_h)   # start from the conv bias
        for j, dr in enumerate((-1, 0, 1)):
            row = (h_l * wdw[3 * j + 0:3 * j + 1, :]
                   + v_h * wdw[3 * j + 1:3 * j + 2, :]
                   + h_r * wdw[3 * j + 2:3 * j + 3, :])
            vloc = vloc + _shift_tokens(row, RES * dr)

        # talking head 2: scalar mix of the softmax maps (scalars in SMEM)
        a2 = p_scr[0] * th2_ref[h, 0]
        for g in range(1, NH):
            a2 = a2 + p_scr[g] * th2_ref[h, g]
        a2 = a2 + th2_ref[h, NH]

        out_h = jnp.dot(a2.astype(jnp.bfloat16), v_h.astype(jnp.bfloat16),
                        preferred_element_type=jnp.float32)   # (N, D)
        z = jnp.maximum(out_h + vloc, 0.0).astype(jnp.bfloat16)
        wp_h = wp_ref[h][:D, :].astype(jnp.bfloat16)          # (D, DIM)
        y = y + jnp.dot(z, wp_h, preferred_element_type=jnp.float32)

    o_ref[0] = y


def attention4d_pallas(x_aug, kp):
    per_b = lambda b: (b, 0, 0)
    fixed = lambda b: (0, 0, 0)
    return pl.pallas_call(
        attention4d_kernel,
        out_shape=jax.ShapeDtypeStruct((B, N, DIM), jnp.float32),
        grid=(B,),
        in_specs=[
            pl.BlockSpec((1, N, DIM_AUG), per_b),          # x_aug (bf16)
            pl.BlockSpec((NH, DIM_AUG, DIM_AUG), fixed),   # bilinear forms (bf16)
            pl.BlockSpec((NH, N, N), fixed),               # folded bias maps (f32)
            pl.BlockSpec((NH, DIM_AUG, D), fixed),         # v weights (bf16)
            pl.BlockSpec((NH, 10, D), fixed),              # dw-conv taps + bias (f32)
            pl.BlockSpec((NH, D + 1, DIM), fixed),         # proj weights + bias (f32)
            pl.BlockSpec(memory_space=pltpu.MemorySpace.SMEM),  # TH2 scalars
        ],
        out_specs=pl.BlockSpec((1, N, DIM), per_b),
        scratch_shapes=[pltpu.VMEM((NH, N, N), jnp.float32)],  # softmax maps
        compiler_params=pltpu.CompilerParams(
            dimension_semantics=("parallel",)),   # v7x: one batch per TC
    )(x_aug, kp["a_all"], kp["bias1"], kp["wv_aug"], kp["wdw"], kp["wp"],
      kp["th2"])


# ----------------------------- parameter setup (glue) ------------------------
def make_bn(key, c):
    k1, k2, k3, k4 = jax.random.split(key, 4)
    return dict(
        gamma=jax.random.uniform(k1, (c,), jnp.float32, 0.8, 1.2),
        beta=0.05 * jax.random.normal(k2, (c,), jnp.float32),
        mean=0.05 * jax.random.normal(k3, (c,), jnp.float32),
        var=jax.random.uniform(k4, (c,), jnp.float32, 0.5, 1.5),
    )


def fold_bn_1x1(w, b, bn):
    # w: (Cin, Cout), per-output-channel BN fold (eval-mode semantics)
    s = bn["gamma"] / jnp.sqrt(bn["var"] + BN_EPS)
    return w * s[None, :], (b - bn["mean"]) * s + bn["beta"]


def fold_bn_dw(w, b, bn):
    # w: (C, 1, 3, 3) depthwise
    s = bn["gamma"] / jnp.sqrt(bn["var"] + BN_EPS)
    return w * s[:, None, None, None], (b - bn["mean"]) * s + bn["beta"]


def build_attention_bias_index():
    points = list(itertools.product(range(RES), range(RES)))
    attention_offsets = {}
    idxs = []
    for p1 in points:
        for p2 in points:
            offset = (abs(p1[0] - p2[0]), abs(p1[1] - p2[1]))
            if offset not in attention_offsets:
                attention_offsets[offset] = len(attention_offsets)
            idxs.append(attention_offsets[offset])
    return np.array(idxs, dtype=np.int32).reshape(N, N), len(attention_offsets)


def init_params(key):
    idxs, n_off = build_attention_bias_index()
    ks = jax.random.split(key, 16)

    wq_raw = 0.1 * jax.random.normal(ks[0], (DIM, NHKD), jnp.float32)
    bq_raw = 0.05 * jax.random.normal(ks[1], (NHKD,), jnp.float32)
    wq, bq = fold_bn_1x1(wq_raw, bq_raw, make_bn(ks[2], NHKD))

    wk_raw = 0.1 * jax.random.normal(ks[3], (DIM, NHKD), jnp.float32)
    bk_raw = 0.05 * jax.random.normal(ks[4], (NHKD,), jnp.float32)
    wk, bk = fold_bn_1x1(wk_raw, bk_raw, make_bn(ks[5], NHKD))

    wv_raw = 0.1 * jax.random.normal(ks[6], (DIM, DH), jnp.float32)
    bv_raw = 0.05 * jax.random.normal(ks[7], (DH,), jnp.float32)
    wv, bv = fold_bn_1x1(wv_raw, bv_raw, make_bn(ks[8], DH))

    wdw_raw = 0.1 * jax.random.normal(ks[9], (DH, 1, 3, 3), jnp.float32)
    bdw_raw = 0.05 * jax.random.normal(ks[10], (DH,), jnp.float32)
    w_dw, b_dw = fold_bn_dw(wdw_raw, bdw_raw, make_bn(ks[11], DH))

    wp_raw = 0.1 * jax.random.normal(ks[12], (DH, DIM), jnp.float32)
    bp_raw = 0.05 * jax.random.normal(ks[13], (DIM,), jnp.float32)
    wp, bp = fold_bn_1x1(wp_raw, bp_raw, make_bn(ks[14], DIM))

    ab = 0.1 * jax.random.normal(ks[15], (NH, n_off), jnp.float32)
    bias_full = ab[:, jnp.asarray(idxs)]           # (NH, N, N)

    kth = jax.random.split(jax.random.PRNGKey(1), 4)
    th1_w = 0.3 * jax.random.normal(kth[0], (NH, NH), jnp.float32) + jnp.eye(NH)
    th1_b = 0.02 * jax.random.normal(kth[1], (NH,), jnp.float32)
    th2_w = 0.3 * jax.random.normal(kth[2], (NH, NH), jnp.float32) + jnp.eye(NH)
    th2_b = 0.02 * jax.random.normal(kth[3], (NH,), jnp.float32)

    return dict(
        wq=wq, bq=bq.reshape(1, NHKD), wk=wk, bk=bk.reshape(1, NHKD),
        wv=wv, bv=bv, w_dw=w_dw, b_dw=b_dw,
        wp=wp, bp=bp.reshape(1, DIM),
        bias_full=bias_full,
        th1_w=th1_w, th1_b=th1_b, th2_w=th2_w, th2_b=th2_b,
    )


def prepare_kernel_params(p):
    """Fold module params (BN already folded) into packed kernel operands:
    per-head bilinear forms (q/k/scale/TH1), combined bias maps, head-major
    augmented v weights, depthwise tap slab and projection slab."""
    hi = lax.Precision.HIGHEST

    wq_aug = jnp.concatenate([p["wq"], p["bq"].reshape(1, NHKD)], axis=0)
    wk_aug = jnp.concatenate([p["wk"], p["bk"].reshape(1, NHKD)], axis=0)
    wv_aug = jnp.concatenate([p["wv"], p["bv"].reshape(1, DH)], axis=0)

    wq_h = wq_aug.reshape(DIM_AUG, NH, KD).transpose(1, 0, 2)   # (NH, 33, KD)
    wk_h = wk_aug.reshape(DIM_AUG, NH, KD).transpose(1, 0, 2)
    wv_h = wv_aug.reshape(DIM_AUG, NH, D).transpose(1, 0, 2)    # (NH, 33, D)

    # A_h = SCALE * sum_g th1w[h,g] * Wq_aug_g @ Wk_aug_g^T   (33, 33)
    qk = jnp.einsum("gik,gjk->gij", wq_h, wk_h, precision=hi)
    a_all = SCALE * jnp.einsum("hg,gij->hij", p["th1_w"], qk, precision=hi)
    bias1 = (jnp.einsum("hg,gnm->hnm", p["th1_w"], p["bias_full"], precision=hi)
             + p["th1_b"][:, None, None])                       # (NH, N, N)

    # depthwise 3x3 taps, head-major, with the folded BN bias as tap row 9
    wdw = p["w_dw"].reshape(NH, D, 9).transpose(0, 2, 1)        # (NH, 9, D)
    wdw_slab = jnp.concatenate([wdw, p["b_dw"].reshape(NH, 1, D)], axis=1)

    # projection weights head-major; projection bias packed as row D of head 0
    wp_h = p["wp"].reshape(NH, D, DIM)
    bp_rows = jnp.concatenate(
        [p["bp"].reshape(1, 1, DIM), jnp.zeros((NH - 1, 1, DIM), jnp.float32)],
        axis=0)
    wp_slab = jnp.concatenate([wp_h, bp_rows], axis=1)          # (NH, D+1, DIM)

    th2 = jnp.concatenate([p["th2_w"], p["th2_b"].reshape(NH, 1)], axis=1)

    return dict(
        a_all=a_all.astype(jnp.bfloat16),
        bias1=bias1.astype(jnp.float32),
        wv_aug=wv_h.astype(jnp.bfloat16),
        wdw=wdw_slab.astype(jnp.float32),
        wp=wp_slab.astype(jnp.float32),
        th2=th2.astype(jnp.float32),
    )


# ----------------------------- full forward (wrapper) ------------------------
def attention4d_forward(x_nchw, kparams):
    Bx, C, H, W = x_nchw.shape
    x_tok = x_nchw.reshape(Bx, C, H * W).transpose(0, 2, 1)     # (B, N, C)
    ones = jnp.ones((Bx, H * W, 1), x_tok.dtype)
    x_aug = jnp.concatenate([x_tok, ones], axis=-1).astype(jnp.bfloat16)
    out_tok = attention4d_pallas(x_aug, kparams)                # (B, N, DIM) f32
    return out_tok.transpose(0, 2, 1).reshape(Bx, DIM, H, W)    # NCHW


# ----------------------------- pure-JAX reference ----------------------------
def attention4d_reference(x_nchw, params):
    Bx, C, H, W = x_nchw.shape
    x_tok = x_nchw.reshape(Bx, C, H * W).transpose(0, 2, 1)
    hi = lax.Precision.HIGHEST

    q = x_tok @ params["wq"] + params["bq"]
    k = x_tok @ params["wk"] + params["bk"]
    v = x_tok @ params["wv"] + params["bv"][None, None, :]

    v_img = v.transpose(0, 2, 1).reshape(Bx, DH, H, W)
    vloc = lax.conv_general_dilated(
        v_img, params["w_dw"], (1, 1), ((1, 1), (1, 1)),
        feature_group_count=DH, dimension_numbers=("NCHW", "OIHW", "NCHW"))
    vloc = vloc + params["b_dw"][None, :, None, None]
    vloc_tok = vloc.reshape(Bx, DH, H * W).transpose(0, 2, 1)

    qh = q.reshape(Bx, N, NH, KD)
    kh = k.reshape(Bx, N, NH, KD)
    vh = v.reshape(Bx, N, NH, D)

    s = jnp.einsum("bnhd,bmhd->bhnm", qh, kh, precision=hi) * SCALE
    s = s + params["bias_full"][None]
    a1 = jnp.einsum("hg,bgnm->bhnm", params["th1_w"], s, precision=hi)
    a1 = a1 + params["th1_b"][None, :, None, None]
    p = jax.nn.softmax(a1, axis=-1)
    a2 = jnp.einsum("hg,bgnm->bhnm", params["th2_w"], p, precision=hi)
    a2 = a2 + params["th2_b"][None, :, None, None]
    o = jnp.einsum("bhnm,bmhd->bnhd", a2, vh, precision=hi).reshape(Bx, N, DH)
    pre = o + vloc_tok
    y = jnp.maximum(pre, 0.0) @ params["wp"] + params["bp"]
    return y.transpose(0, 2, 1).reshape(Bx, DIM, H, W)


# ----------------------------- main ------------------------------------------
if __name__ == "__main__":
    key = jax.random.PRNGKey(0)
    kx, kp_key = jax.random.split(key)
    x = jax.random.normal(kx, (B, DIM, RES, RES), jnp.float32)
    params = init_params(kp_key)
    kparams = prepare_kernel_params(params)

    fwd = jax.jit(attention4d_forward)
    out = jax.block_until_ready(fwd(x, kparams))

    ref = jax.block_until_ready(attention4d_reference(x, params))
    err = float(jnp.max(jnp.abs(out - ref)))
    assert out.shape == (B, DIM, RES, RES), out.shape
    # bf16 MXU operands (per perf review) give ~0.5% relative rounding vs the
    # all-f32 reference; tolerance sized accordingly.
    assert err < 5e-2, f"max abs error too large: {err}"
    print("KERNEL_OK")
</pallas_src>

<mosaic_0001>
module attributes {stable_mosaic.version = 11 : i64} {
  func.func @attention4d_kernel(%arg0: i32, %arg1: memref<1x49x33xbf16, #tpu.memory_space<vmem>>, %arg2: memref<4x33x33xbf16, #tpu.memory_space<vmem>>, %arg3: memref<4x49x49xf32, #tpu.memory_space<vmem>>, %arg4: memref<4x33x16xbf16, #tpu.memory_space<vmem>>, %arg5: memref<4x10x16xf32, #tpu.memory_space<vmem>>, %arg6: memref<4x17x32xf32, #tpu.memory_space<vmem>>, %arg7: memref<4x5xf32, #tpu.memory_space<smem>>, %arg8: memref<1x49x32xf32, #tpu.memory_space<vmem>>, %arg9: memref<4x49x49xf32, #tpu.memory_space<vmem>>) attributes {dimension_semantics = [#tpu.dimension_semantics<parallel>], iteration_bounds = array<i64: 2>, scalar_prefetch = 0 : i64, scratch_operands = 1 : i64, tpu.core_type = #tpu.core_type<tc>, window_params = [{transform_indices = @transform_0, window_bounds = array<i64: 1, 49, 33>}, {pipeline_mode = #tpu.pipeline_mode<synchronous>, transform_indices = @transform_1, window_bounds = array<i64: 4, 33, 33>}, {pipeline_mode = #tpu.pipeline_mode<synchronous>, transform_indices = @transform_2, window_bounds = array<i64: 4, 49, 49>}, {pipeline_mode = #tpu.pipeline_mode<synchronous>, transform_indices = @transform_3, window_bounds = array<i64: 4, 33, 16>}, {pipeline_mode = #tpu.pipeline_mode<synchronous>, transform_indices = @transform_4, window_bounds = array<i64: 4, 10, 16>}, {pipeline_mode = #tpu.pipeline_mode<synchronous>, transform_indices = @transform_5, window_bounds = array<i64: 4, 17, 32>}, {transform_indices = @transform_6, window_bounds = array<i64: 4, 5>}, {transform_indices = @transform_7, window_bounds = array<i64: 1, 49, 32>}]} {
    %c0 = arith.constant 0 : index
    %c0_0 = arith.constant 0 : index
    %c0_1 = arith.constant 0 : index
    %0 = vector.load %arg1[%c0, %c0_0, %c0_1] : memref<1x49x33xbf16, #tpu.memory_space<vmem>>, vector<1x49x33xbf16>
    %1 = vector.shape_cast %0 : vector<1x49x33xbf16> to vector<49x33xbf16>
    %2 = tpu.iota {dimensions = array<i32: 0>} : vector<49x1xi32>
    %c7_i32 = arith.constant 7 : i32
    %c0_i32 = arith.constant 0 : i32
    %3 = arith.cmpi eq, %c7_i32, %c0_i32 : i32
    %c1_i32 = arith.constant 1 : i32
    %4 = arith.select %3, %c1_i32, %c7_i32 : i32
    %5 = vector.broadcast %4 : i32 to vector<49x1xi32>
    %6 = arith.remsi %2, %5 : vector<49x1xi32>
    %c0_i32_2 = arith.constant 0 : i32
    %7 = vector.broadcast %c0_i32_2 : i32 to vector<49x1xi32>
    %8 = arith.cmpi ne, %6, %7 : vector<49x1xi32>
    %c0_i32_3 = arith.constant 0 : i32
    %9 = vector.broadcast %c0_i32_3 : i32 to vector<49x1xi32>
    %10 = arith.cmpi slt, %6, %9 : vector<49x1xi32>
    %c0_i32_4 = arith.constant 0 : i32
    %11 = arith.cmpi slt, %4, %c0_i32_4 : i32
    %12 = vector.broadcast %11 : i1 to vector<49x1xi1>
    %13 = vector.broadcast %12 : vector<49x1xi1> to vector<49x1xi1>
    %14 = arith.xori %10, %13 : vector<49x1xi1>
    %15 = arith.andi %14, %8 : vector<49x1xi1>
    %16 = vector.broadcast %4 : i32 to vector<49x1xi32>
    %17 = arith.addi %6, %16 : vector<49x1xi32>
    %18 = arith.select %15, %17, %6 : vector<49x1xi1>, vector<49x1xi32>
    %c0_i32_5 = arith.constant 0 : i32
    %19 = vector.broadcast %c0_i32_5 : i32 to vector<49x1xi32>
    %20 = arith.cmpi ne, %18, %19 : vector<49x1xi32>
    %21 = arith.extui %20 : vector<49x1xi1> to vector<49x1xi32>
    %22 = arith.sitofp %21 : vector<49x1xi32> to vector<49x1xf32>
    %c6_i32 = arith.constant 6 : i32
    %23 = vector.broadcast %c6_i32 : i32 to vector<49x1xi32>
    %24 = arith.cmpi ne, %18, %23 : vector<49x1xi32>
    %25 = arith.extui %24 : vector<49x1xi1> to vector<49x1xi32>
    %26 = arith.sitofp %25 : vector<49x1xi32> to vector<49x1xf32>
    %c0_6 = arith.constant 0 : index
    %c0_7 = arith.constant 0 : index
    %c0_8 = arith.constant 0 : index
    %27 = vector.load %arg2[%c0_6, %c0_7, %c0_8] : memref<4x33x33xbf16, #tpu.memory_space<vmem>>, vector<1x33x33xbf16>
    %28 = vector.shape_cast %27 : vector<1x33x33xbf16> to vector<33x33xbf16>
    %cst = arith.constant dense<0.000000e+00> : vector<49x33xf32>
    %29 = tpu.matmul %1, %28, %cst {dimension_numbers = #tpu.dot_dimension_numbers<[1], [0], [0], [1], [0, 0, 1, 1], [], []>} : vector<49x33xbf16>, vector<33x33xbf16>, vector<49x33xf32> -> vector<49x33xf32>
    %30 = arith.truncf %29 : vector<49x33xf32> to vector<49x33xbf16>
    %cst_9 = arith.constant dense<0.000000e+00> : vector<49x49xf32>
    %31 = tpu.matmul %30, %1, %cst_9 {dimension_numbers = #tpu.dot_dimension_numbers<[1], [1], [0], [0], [0, 0, 1, 0], [], []>} : vector<49x33xbf16>, vector<49x33xbf16>, vector<49x49xf32> -> vector<49x49xf32>
    %c0_10 = arith.constant 0 : index
    %c0_11 = arith.constant 0 : index
    %c0_12 = arith.constant 0 : index
    %32 = vector.load %arg3[%c0_10, %c0_11, %c0_12] : memref<4x49x49xf32, #tpu.memory_space<vmem>>, vector<1x49x49xf32>
    %33 = vector.shape_cast %32 : vector<1x49x49xf32> to vector<49x49xf32>
    %34 = arith.addf %31, %33 : vector<49x49xf32>
    %cst_13 = arith.constant dense<0xFF800000> : vector<49xf32>
    %35 = vector.multi_reduction <maximumf>, %34, %cst_13 [1] : vector<49x49xf32> to vector<49xf32>
    %36 = vector.shape_cast %35 : vector<49xf32> to vector<49x1xf32>
    %37 = vector.broadcast %36 : vector<49x1xf32> to vector<49x49xf32>
    %38 = arith.subf %34, %37 : vector<49x49xf32>
    %39 = math.exp %38 : vector<49x49xf32>
    %cst_14 = arith.constant dense<0.000000e+00> : vector<49xf32>
    %40 = vector.multi_reduction <add>, %39, %cst_14 [1] : vector<49x49xf32> to vector<49xf32>
    %41 = vector.shape_cast %40 : vector<49xf32> to vector<49x1xf32>
    %42 = tpu.reciprocal %41 {approx = true} : vector<49x1xf32> -> vector<49x1xf32>
    %43 = vector.broadcast %42 : vector<49x1xf32> to vector<49x49xf32>
    %44 = arith.mulf %39, %43 : vector<49x49xf32>
    %c0_15 = arith.constant 0 : index
    %c0_16 = arith.constant 0 : index
    %c0_17 = arith.constant 0 : index
    %45 = vector.load %arg9[%c0_15, %c0_16, %c0_17] : memref<4x49x49xf32, #tpu.memory_space<vmem>>, vector<1x49x49xf32>
    %46 = vector.shape_cast %45 : vector<1x49x49xf32> to vector<49x49xf32>
    %47 = vector.shape_cast %44 : vector<49x49xf32> to vector<1x49x49xf32>
    tpu.vector_store %arg9[%c0_15, %c0_16, %c0_17], %47 {strides = array<i32>} : memref<4x49x49xf32, #tpu.memory_space<vmem>>, vector<1x49x49xf32>,
    %c1 = arith.constant 1 : index
    %c0_18 = arith.constant 0 : index
    %c0_19 = arith.constant 0 : index
    %48 = vector.load %arg2[%c1, %c0_18, %c0_19] : memref<4x33x33xbf16, #tpu.memory_space<vmem>>, vector<1x33x33xbf16>
    %49 = vector.shape_cast %48 : vector<1x33x33xbf16> to vector<33x33xbf16>
    %cst_20 = arith.constant dense<0.000000e+00> : vector<49x33xf32>
    %50 = tpu.matmul %1, %49, %cst_20 {dimension_numbers = #tpu.dot_dimension_numbers<[1], [0], [0], [1], [0, 0, 1, 1], [], []>} : vector<49x33xbf16>, vector<33x33xbf16>, vector<49x33xf32> -> vector<49x33xf32>
    %51 = arith.truncf %50 : vector<49x33xf32> to vector<49x33xbf16>
    %cst_21 = arith.constant dense<0.000000e+00> : vector<49x49xf32>
    %52 = tpu.matmul %51, %1, %cst_21 {dimension_numbers = #tpu.dot_dimension_numbers<[1], [1], [0], [0], [0, 0, 1, 0], [], []>} : vector<49x33xbf16>, vector<49x33xbf16>, vector<49x49xf32> -> vector<49x49xf32>
    %c1_22 = arith.constant 1 : index
    %c0_23 = arith.constant 0 : index
    %c0_24 = arith.constant 0 : index
    %53 = vector.load %arg3[%c1_22, %c0_23, %c0_24] : memref<4x49x49xf32, #tpu.memory_space<vmem>>, vector<1x49x49xf32>
    %54 = vector.shape_cast %53 : vector<1x49x49xf32> to vector<49x49xf32>
    %55 = arith.addf %52, %54 : vector<49x49xf32>
    %cst_25 = arith.constant dense<0xFF800000> : vector<49xf32>
    %56 = vector.multi_reduction <maximumf>, %55, %cst_25 [1] : vector<49x49xf32> to vector<49xf32>
    %57 = vector.shape_cast %56 : vector<49xf32> to vector<49x1xf32>
    %58 = vector.broadcast %57 : vector<49x1xf32> to vector<49x49xf32>
    %59 = arith.subf %55, %58 : vector<49x49xf32>
    %60 = math.exp %59 : vector<49x49xf32>
    %cst_26 = arith.constant dense<0.000000e+00> : vector<49xf32>
    %61 = vector.multi_reduction <add>, %60, %cst_26 [1] : vector<49x49xf32> to vector<49xf32>
    %62 = vector.shape_cast %61 : vector<49xf32> to vector<49x1xf32>
    %63 = tpu.reciprocal %62 {approx = true} : vector<49x1xf32> -> vector<49x1xf32>
    %64 = vector.broadcast %63 : vector<49x1xf32> to vector<49x49xf32>
    %65 = arith.mulf %60, %64 : vector<49x49xf32>
    %c1_27 = arith.constant 1 : index
    %c0_28 = arith.constant 0 : index
    %c0_29 = arith.constant 0 : index
    %66 = vector.load %arg9[%c1_27, %c0_28, %c0_29] : memref<4x49x49xf32, #tpu.memory_space<vmem>>, vector<1x49x49xf32>
    %67 = vector.shape_cast %66 : vector<1x49x49xf32> to vector<49x49xf32>
    %68 = vector.shape_cast %65 : vector<49x49xf32> to vector<1x49x49xf32>
    tpu.vector_store %arg9[%c1_27, %c0_28, %c0_29], %68 {strides = array<i32>} : memref<4x49x49xf32, #tpu.memory_space<vmem>>, vector<1x49x49xf32>,
    %c2 = arith.constant 2 : index
    %c0_30 = arith.constant 0 : index
    %c0_31 = arith.constant 0 : index
    %69 = vector.load %arg2[%c2, %c0_30, %c0_31] : memref<4x33x33xbf16, #tpu.memory_space<vmem>>, vector<1x33x33xbf16>
    %70 = vector.shape_cast %69 : vector<1x33x33xbf16> to vector<33x33xbf16>
    %cst_32 = arith.constant dense<0.000000e+00> : vector<49x33xf32>
    %71 = tpu.matmul %1, %70, %cst_32 {dimension_numbers = #tpu.dot_dimension_numbers<[1], [0], [0], [1], [0, 0, 1, 1], [], []>} : vector<49x33xbf16>, vector<33x33xbf16>, vector<49x33xf32> -> vector<49x33xf32>
    %72 = arith.truncf %71 : vector<49x33xf32> to vector<49x33xbf16>
    %cst_33 = arith.constant dense<0.000000e+00> : vector<49x49xf32>
    %73 = tpu.matmul %72, %1, %cst_33 {dimension_numbers = #tpu.dot_dimension_numbers<[1], [1], [0], [0], [0, 0, 1, 0], [], []>} : vector<49x33xbf16>, vector<49x33xbf16>, vector<49x49xf32> -> vector<49x49xf32>
    %c2_34 = arith.constant 2 : index
    %c0_35 = arith.constant 0 : index
    %c0_36 = arith.constant 0 : index
    %74 = vector.load %arg3[%c2_34, %c0_35, %c0_36] : memref<4x49x49xf32, #tpu.memory_space<vmem>>, vector<1x49x49xf32>
    %75 = vector.shape_cast %74 : vector<1x49x49xf32> to vector<49x49xf32>
    %76 = arith.addf %73, %75 : vector<49x49xf32>
    %cst_37 = arith.constant dense<0xFF800000> : vector<49xf32>
    %77 = vector.multi_reduction <maximumf>, %76, %cst_37 [1] : vector<49x49xf32> to vector<49xf32>
    %78 = vector.shape_cast %77 : vector<49xf32> to vector<49x1xf32>
    %79 = vector.broadcast %78 : vector<49x1xf32> to vector<49x49xf32>
    %80 = arith.subf %76, %79 : vector<49x49xf32>
    %81 = math.exp %80 : vector<49x49xf32>
    %cst_38 = arith.constant dense<0.000000e+00> : vector<49xf32>
    %82 = vector.multi_reduction <add>, %81, %cst_38 [1] : vector<49x49xf32> to vector<49xf32>
    %83 = vector.shape_cast %82 : vector<49xf32> to vector<49x1xf32>
    %84 = tpu.reciprocal %83 {approx = true} : vector<49x1xf32> -> vector<49x1xf32>
    %85 = vector.broadcast %84 : vector<49x1xf32> to vector<49x49xf32>
    %86 = arith.mulf %81, %85 : vector<49x49xf32>
    %c2_39 = arith.constant 2 : index
    %c0_40 = arith.constant 0 : index
    %c0_41 = arith.constant 0 : index
    %87 = vector.load %arg9[%c2_39, %c0_40, %c0_41] : memref<4x49x49xf32, #tpu.memory_space<vmem>>, vector<1x49x49xf32>
    %88 = vector.shape_cast %87 : vector<1x49x49xf32> to vector<49x49xf32>
    %89 = vector.shape_cast %86 : vector<49x49xf32> to vector<1x49x49xf32>
    tpu.vector_store %arg9[%c2_39, %c0_40, %c0_41], %89 {strides = array<i32>} : memref<4x49x49xf32, #tpu.memory_space<vmem>>, vector<1x49x49xf32>,
    %c3 = arith.constant 3 : index
    %c0_42 = arith.constant 0 : index
    %c0_43 = arith.constant 0 : index
    %90 = vector.load %arg2[%c3, %c0_42, %c0_43] : memref<4x33x33xbf16, #tpu.memory_space<vmem>>, vector<1x33x33xbf16>
    %91 = vector.shape_cast %90 : vector<1x33x33xbf16> to vector<33x33xbf16>
    %cst_44 = arith.constant dense<0.000000e+00> : vector<49x33xf32>
    %92 = tpu.matmul %1, %91, %cst_44 {dimension_numbers = #tpu.dot_dimension_numbers<[1], [0], [0], [1], [0, 0, 1, 1], [], []>} : vector<49x33xbf16>, vector<33x33xbf16>, vector<49x33xf32> -> vector<49x33xf32>
    %93 = arith.truncf %92 : vector<49x33xf32> to vector<49x33xbf16>
    %cst_45 = arith.constant dense<0.000000e+00> : vector<49x49xf32>
    %94 = tpu.matmul %93, %1, %cst_45 {dimension_numbers = #tpu.dot_dimension_numbers<[1], [1], [0], [0], [0, 0, 1, 0], [], []>} : vector<49x33xbf16>, vector<49x33xbf16>, vector<49x49xf32> -> vector<49x49xf32>
    %c3_46 = arith.constant 3 : index
    %c0_47 = arith.constant 0 : index
    %c0_48 = arith.constant 0 : index
    %95 = vector.load %arg3[%c3_46, %c0_47, %c0_48] : memref<4x49x49xf32, #tpu.memory_space<vmem>>, vector<1x49x49xf32>
    %96 = vector.shape_cast %95 : vector<1x49x49xf32> to vector<49x49xf32>
    %97 = arith.addf %94, %96 : vector<49x49xf32>
    %cst_49 = arith.constant dense<0xFF800000> : vector<49xf32>
    %98 = vector.multi_reduction <maximumf>, %97, %cst_49 [1] : vector<49x49xf32> to vector<49xf32>
    %99 = vector.shape_cast %98 : vector<49xf32> to vector<49x1xf32>
    %100 = vector.broadcast %99 : vector<49x1xf32> to vector<49x49xf32>
    %101 = arith.subf %97, %100 : vector<49x49xf32>
    %102 = math.exp %101 : vector<49x49xf32>
    %cst_50 = arith.constant dense<0.000000e+00> : vector<49xf32>
    %103 = vector.multi_reduction <add>, %102, %cst_50 [1] : vector<49x49xf32> to vector<49xf32>
    %104 = vector.shape_cast %103 : vector<49xf32> to vector<49x1xf32>
    %105 = tpu.reciprocal %104 {approx = true} : vector<49x1xf32> -> vector<49x1xf32>
    %106 = vector.broadcast %105 : vector<49x1xf32> to vector<49x49xf32>
    %107 = arith.mulf %102, %106 : vector<49x49xf32>
    %c3_51 = arith.constant 3 : index
    %c0_52 = arith.constant 0 : index
    %c0_53 = arith.constant 0 : index
    %108 = vector.load %arg9[%c3_51, %c0_52, %c0_53] : memref<4x49x49xf32, #tpu.memory_space<vmem>>, vector<1x49x49xf32>
    %109 = vector.shape_cast %108 : vector<1x49x49xf32> to vector<49x49xf32>
    %110 = vector.shape_cast %107 : vector<49x49xf32> to vector<1x49x49xf32>
    tpu.vector_store %arg9[%c3_51, %c0_52, %c0_53], %110 {strides = array<i32>} : memref<4x49x49xf32, #tpu.memory_space<vmem>>, vector<1x49x49xf32>,
    %c0_54 = arith.constant 0 : index
    %c0_55 = arith.constant 0 : index
    %c0_56 = arith.constant 0 : index
    %111 = vector.load %arg6[%c0_54, %c0_55, %c0_56] : memref<4x17x32xf32, #tpu.memory_space<vmem>>, vector<1x17x32xf32>
    %112 = vector.shape_cast %111 : vector<1x17x32xf32> to vector<17x32xf32>
    %113 = vector.extract_strided_slice %112 {offsets = [16, 0], sizes = [1, 32], strides = [1, 1]} : vector<17x32xf32> to vector<1x32xf32>
    %c0_57 = arith.constant 0 : index
    %c0_58 = arith.constant 0 : index
    %c0_59 = arith.constant 0 : index
    %114 = vector.load %arg4[%c0_57, %c0_58, %c0_59] : memref<4x33x16xbf16, #tpu.memory_space<vmem>>, vector<1x33x16xbf16>
    %115 = vector.shape_cast %114 : vector<1x33x16xbf16> to vector<33x16xbf16>
    %cst_60 = arith.constant dense<0.000000e+00> : vector<49x16xf32>
    %116 = tpu.matmul %1, %115, %cst_60 {dimension_numbers = #tpu.dot_dimension_numbers<[1], [0], [0], [1], [0, 0, 1, 1], [], []>} : vector<49x33xbf16>, vector<33x16xbf16>, vector<49x16xf32> -> vector<49x16xf32>
    %c0_61 = arith.constant 0 : index
    %c0_62 = arith.constant 0 : index
    %c0_63 = arith.constant 0 : index
    %117 = vector.load %arg5[%c0_61, %c0_62, %c0_63] : memref<4x10x16xf32, #tpu.memory_space<vmem>>, vector<1x10x16xf32>
    %118 = vector.shape_cast %117 : vector<1x10x16xf32> to vector<10x16xf32>
    %cst_64 = arith.constant 0.000000e+00 : f32
    %119 = vector.broadcast %cst_64 : f32 to vector<1x16xf32>
    %120 = vector.extract_strided_slice %116 {offsets = [0, 0], sizes = [48, 16], strides = [1, 1]} : vector<49x16xf32> to vector<48x16xf32>
    %121 = tpu.concatenate %119, %120 in 0 : vector<1x16xf32>, vector<48x16xf32> -> vector<49x16xf32>
    %122 = vector.broadcast %22 : vector<49x1xf32> to vector<49x16xf32>
    %123 = arith.mulf %121, %122 : vector<49x16xf32>
    %cst_65 = arith.constant 0.000000e+00 : f32
    %124 = vector.broadcast %cst_65 : f32 to vector<1x16xf32>
    %125 = vector.extract_strided_slice %116 {offsets = [1, 0], sizes = [48, 16], strides = [1, 1]} : vector<49x16xf32> to vector<48x16xf32>
    %126 = tpu.concatenate %125, %124 in 0 : vector<48x16xf32>, vector<1x16xf32> -> vector<49x16xf32>
    %127 = vector.broadcast %26 : vector<49x1xf32> to vector<49x16xf32>
    %128 = arith.mulf %126, %127 : vector<49x16xf32>
    %129 = vector.extract_strided_slice %118 {offsets = [9, 0], sizes = [1, 16], strides = [1, 1]} : vector<10x16xf32> to vector<1x16xf32>
    %cst_66 = arith.constant 0.000000e+00 : f32
    %130 = vector.broadcast %cst_66 : f32 to vector<49x16xf32>
    %131 = vector.broadcast %129 : vector<1x16xf32> to vector<49x16xf32>
    %132 = arith.addf %131, %130 : vector<49x16xf32>
    %133 = vector.extract_strided_slice %118 {offsets = [0, 0], sizes = [1, 16], strides = [1, 1]} : vector<10x16xf32> to vector<1x16xf32>
    %134 = vector.broadcast %133 : vector<1x16xf32> to vector<49x16xf32>
    %135 = arith.mulf %123, %134 : vector<49x16xf32>
    %136 = vector.extract_strided_slice %118 {offsets = [1, 0], sizes = [1, 16], strides = [1, 1]} : vector<10x16xf32> to vector<1x16xf32>
    %137 = vector.broadcast %136 : vector<1x16xf32> to vector<49x16xf32>
    %138 = arith.mulf %116, %137 : vector<49x16xf32>
    %139 = arith.addf %135, %138 : vector<49x16xf32>
    %140 = vector.extract_strided_slice %118 {offsets = [2, 0], sizes = [1, 16], strides = [1, 1]} : vector<10x16xf32> to vector<1x16xf32>
    %141 = vector.broadcast %140 : vector<1x16xf32> to vector<49x16xf32>
    %142 = arith.mulf %128, %141 : vector<49x16xf32>
    %143 = arith.addf %139, %142 : vector<49x16xf32>
    %cst_67 = arith.constant 0.000000e+00 : f32
    %144 = vector.broadcast %cst_67 : f32 to vector<7x16xf32>
    %145 = vector.extract_strided_slice %143 {offsets = [0, 0], sizes = [42, 16], strides = [1, 1]} : vector<49x16xf32> to vector<42x16xf32>
    %146 = tpu.concatenate %144, %145 in 0 : vector<7x16xf32>, vector<42x16xf32> -> vector<49x16xf32>
    %147 = arith.addf %132, %146 : vector<49x16xf32>
    %148 = vector.extract_strided_slice %118 {offsets = [3, 0], sizes = [1, 16], strides = [1, 1]} : vector<10x16xf32> to vector<1x16xf32>
    %149 = vector.broadcast %148 : vector<1x16xf32> to vector<49x16xf32>
    %150 = arith.mulf %123, %149 : vector<49x16xf32>
    %151 = vector.extract_strided_slice %118 {offsets = [4, 0], sizes = [1, 16], strides = [1, 1]} : vector<10x16xf32> to vector<1x16xf32>
    %152 = vector.broadcast %151 : vector<1x16xf32> to vector<49x16xf32>
    %153 = arith.mulf %116, %152 : vector<49x16xf32>
    %154 = arith.addf %150, %153 : vector<49x16xf32>
    %155 = vector.extract_strided_slice %118 {offsets = [5, 0], sizes = [1, 16], strides = [1, 1]} : vector<10x16xf32> to vector<1x16xf32>
    %156 = vector.broadcast %155 : vector<1x16xf32> to vector<49x16xf32>
    %157 = arith.mulf %128, %156 : vector<49x16xf32>
    %158 = arith.addf %154, %157 : vector<49x16xf32>
    %159 = arith.addf %147, %158 : vector<49x16xf32>
    %160 = vector.extract_strided_slice %118 {offsets = [6, 0], sizes = [1, 16], strides = [1, 1]} : vector<10x16xf32> to vector<1x16xf32>
    %161 = vector.broadcast %160 : vector<1x16xf32> to vector<49x16xf32>
    %162 = arith.mulf %123, %161 : vector<49x16xf32>
    %163 = vector.extract_strided_slice %118 {offsets = [7, 0], sizes = [1, 16], strides = [1, 1]} : vector<10x16xf32> to vector<1x16xf32>
    %164 = vector.broadcast %163 : vector<1x16xf32> to vector<49x16xf32>
    %165 = arith.mulf %116, %164 : vector<49x16xf32>
    %166 = arith.addf %162, %165 : vector<49x16xf32>
    %167 = vector.extract_strided_slice %118 {offsets = [8, 0], sizes = [1, 16], strides = [1, 1]} : vector<10x16xf32> to vector<1x16xf32>
    %168 = vector.broadcast %167 : vector<1x16xf32> to vector<49x16xf32>
    %169 = arith.mulf %128, %168 : vector<49x16xf32>
    %170 = arith.addf %166, %169 : vector<49x16xf32>
    %cst_68 = arith.constant 0.000000e+00 : f32
    %171 = vector.broadcast %cst_68 : f32 to vector<7x16xf32>
    %172 = vector.extract_strided_slice %170 {offsets = [7, 0], sizes = [42, 16], strides = [1, 1]} : vector<49x16xf32> to vector<42x16xf32>
    %173 = tpu.concatenate %172, %171 in 0 : vector<42x16xf32>, vector<7x16xf32> -> vector<49x16xf32>
    %174 = arith.addf %159, %173 : vector<49x16xf32>
    %c0_69 = arith.constant 0 : index
    %c0_70 = arith.constant 0 : index
    %c0_71 = arith.constant 0 : index
    %175 = vector.load %arg9[%c0_69, %c0_70, %c0_71] : memref<4x49x49xf32, #tpu.memory_space<vmem>>, vector<1x49x49xf32>
    %176 = vector.shape_cast %175 : vector<1x49x49xf32> to vector<49x49xf32>
    %c0_72 = arith.constant 0 : index
    %c0_73 = arith.constant 0 : index
    %177 = memref.load %arg7[%c0_72, %c0_73] : memref<4x5xf32, #tpu.memory_space<smem>>
    %178 = vector.broadcast %177 : f32 to vector<49x49xf32>
    %179 = arith.mulf %176, %178 : vector<49x49xf32>
    %c1_74 = arith.constant 1 : index
    %c0_75 = arith.constant 0 : index
    %c0_76 = arith.constant 0 : index
    %180 = vector.load %arg9[%c1_74, %c0_75, %c0_76] : memref<4x49x49xf32, #tpu.memory_space<vmem>>, vector<1x49x49xf32>
    %181 = vector.shape_cast %180 : vector<1x49x49xf32> to vector<49x49xf32>
    %c0_77 = arith.constant 0 : index
    %c1_78 = arith.constant 1 : index
    %182 = memref.load %arg7[%c0_77, %c1_78] : memref<4x5xf32, #tpu.memory_space<smem>>
    %183 = vector.broadcast %182 : f32 to vector<49x49xf32>
    %184 = arith.mulf %181, %183 : vector<49x49xf32>
    %185 = arith.addf %179, %184 : vector<49x49xf32>
    %c2_79 = arith.constant 2 : index
    %c0_80 = arith.constant 0 : index
    %c0_81 = arith.constant 0 : index
    %186 = vector.load %arg9[%c2_79, %c0_80, %c0_81] : memref<4x49x49xf32, #tpu.memory_space<vmem>>, vector<1x49x49xf32>
    %187 = vector.shape_cast %186 : vector<1x49x49xf32> to vector<49x49xf32>
    %c0_82 = arith.constant 0 : index
    %c2_83 = arith.constant 2 : index
    %188 = memref.load %arg7[%c0_82, %c2_83] : memref<4x5xf32, #tpu.memory_space<smem>>
    %189 = vector.broadcast %188 : f32 to vector<49x49xf32>
    %190 = arith.mulf %187, %189 : vector<49x49xf32>
    %191 = arith.addf %185, %190 : vector<49x49xf32>
    %c3_84 = arith.constant 3 : index
    %c0_85 = arith.constant 0 : index
    %c0_86 = arith.constant 0 : index
    %192 = vector.load %arg9[%c3_84, %c0_85, %c0_86] : memref<4x49x49xf32, #tpu.memory_space<vmem>>, vector<1x49x49xf32>
    %193 = vector.shape_cast %192 : vector<1x49x49xf32> to vector<49x49xf32>
    %c0_87 = arith.constant 0 : index
    %c3_88 = arith.constant 3 : index
    %194 = memref.load %arg7[%c0_87, %c3_88] : memref<4x5xf32, #tpu.memory_space<smem>>
    %195 = vector.broadcast %194 : f32 to vector<49x49xf32>
    %196 = arith.mulf %193, %195 : vector<49x49xf32>
    %197 = arith.addf %191, %196 : vector<49x49xf32>
    %c0_89 = arith.constant 0 : index
    %c4 = arith.constant 4 : index
    %198 = memref.load %arg7[%c0_89, %c4] : memref<4x5xf32, #tpu.memory_space<smem>>
    %199 = vector.broadcast %198 : f32 to vector<49x49xf32>
    %200 = arith.addf %197, %199 : vector<49x49xf32>
    %201 = arith.truncf %200 : vector<49x49xf32> to vector<49x49xbf16>
    %202 = arith.truncf %116 : vector<49x16xf32> to vector<49x16xbf16>
    %cst_90 = arith.constant dense<0.000000e+00> : vector<49x16xf32>
    %203 = tpu.matmul %201, %202, %cst_90 {dimension_numbers = #tpu.dot_dimension_numbers<[1], [0], [0], [1], [0, 0, 1, 1], [], []>} : vector<49x49xbf16>, vector<49x16xbf16>, vector<49x16xf32> -> vector<49x16xf32>
    %204 = arith.addf %203, %174 : vector<49x16xf32>
    %cst_91 = arith.constant 0.000000e+00 : f32
    %205 = vector.broadcast %cst_91 : f32 to vector<49x16xf32>
    %206 = arith.maximumf %204, %205 : vector<49x16xf32>
    %207 = arith.truncf %206 : vector<49x16xf32> to vector<49x16xbf16>
    %c0_92 = arith.constant 0 : index
    %c0_93 = arith.constant 0 : index
    %c0_94 = arith.constant 0 : index
    %208 = vector.load %arg6[%c0_92, %c0_93, %c0_94] : memref<4x17x32xf32, #tpu.memory_space<vmem>>, vector<1x17x32xf32>
    %209 = vector.shape_cast %208 : vector<1x17x32xf32> to vector<17x32xf32>
    %210 = vector.extract_strided_slice %209 {offsets = [0, 0], sizes = [16, 32], strides = [1, 1]} : vector<17x32xf32> to vector<16x32xf32>
    %211 = arith.truncf %210 : vector<16x32xf32> to vector<16x32xbf16>
    %cst_95 = arith.constant dense<0.000000e+00> : vector<49x32xf32>
    %212 = tpu.matmul %207, %211, %cst_95 {dimension_numbers = #tpu.dot_dimension_numbers<[1], [0], [0], [1], [0, 0, 1, 1], [], []>} : vector<49x16xbf16>, vector<16x32xbf16>, vector<49x32xf32> -> vector<49x32xf32>
    %213 = vector.broadcast %113 : vector<1x32xf32> to vector<49x32xf32>
    %214 = arith.addf %213, %212 : vector<49x32xf32>
    %c1_96 = arith.constant 1 : index
    %c0_97 = arith.constant 0 : index
    %c0_98 = arith.constant 0 : index
    %215 = vector.load %arg4[%c1_96, %c0_97, %c0_98] : memref<4x33x16xbf16, #tpu.memory_space<vmem>>, vector<1x33x16xbf16>
    %216 = vector.shape_cast %215 : vector<1x33x16xbf16> to vector<33x16xbf16>
    %cst_99 = arith.constant dense<0.000000e+00> : vector<49x16xf32>
    %217 = tpu.matmul %1, %216, %cst_99 {dimension_numbers = #tpu.dot_dimension_numbers<[1], [0], [0], [1], [0, 0, 1, 1], [], []>} : vector<49x33xbf16>, vector<33x16xbf16>, vector<49x16xf32> -> vector<49x16xf32>
    %c1_100 = arith.constant 1 : index
    %c0_101 = arith.constant 0 : index
    %c0_102 = arith.constant 0 : index
    %218 = vector.load %arg5[%c1_100, %c0_101, %c0_102] : memref<4x10x16xf32, #tpu.memory_space<vmem>>, vector<1x10x16xf32>
    %219 = vector.shape_cast %218 : vector<1x10x16xf32> to vector<10x16xf32>
    %cst_103 = arith.constant 0.000000e+00 : f32
    %220 = vector.broadcast %cst_103 : f32 to vector<1x16xf32>
    %221 = vector.extract_strided_slice %217 {offsets = [0, 0], sizes = [48, 16], strides = [1, 1]} : vector<49x16xf32> to vector<48x16xf32>
    %222 = tpu.concatenate %220, %221 in 0 : vector<1x16xf32>, vector<48x16xf32> -> vector<49x16xf32>
    %223 = vector.broadcast %22 : vector<49x1xf32> to vector<49x16xf32>
    %224 = arith.mulf %222, %223 : vector<49x16xf32>
    %cst_104 = arith.constant 0.000000e+00 : f32
    %225 = vector.broadcast %cst_104 : f32 to vector<1x16xf32>
    %226 = vector.extract_strided_slice %217 {offsets = [1, 0], sizes = [48, 16], strides = [1, 1]} : vector<49x16xf32> to vector<48x16xf32>
    %227 = tpu.concatenate %226, %225 in 0 : vector<48x16xf32>, vector<1x16xf32> -> vector<49x16xf32>
    %228 = vector.broadcast %26 : vector<49x1xf32> to vector<49x16xf32>
    %229 = arith.mulf %227, %228 : vector<49x16xf32>
    %230 = vector.extract_strided_slice %219 {offsets = [9, 0], sizes = [1, 16], strides = [1, 1]} : vector<10x16xf32> to vector<1x16xf32>
    %cst_105 = arith.constant 0.000000e+00 : f32
    %231 = vector.broadcast %cst_105 : f32 to vector<49x16xf32>
    %232 = vector.broadcast %230 : vector<1x16xf32> to vector<49x16xf32>
    %233 = arith.addf %232, %231 : vector<49x16xf32>
    %234 = vector.extract_strided_slice %219 {offsets = [0, 0], sizes = [1, 16], strides = [1, 1]} : vector<10x16xf32> to vector<1x16xf32>
    %235 = vector.broadcast %234 : vector<1x16xf32> to vector<49x16xf32>
    %236 = arith.mulf %224, %235 : vector<49x16xf32>
    %237 = vector.extract_strided_slice %219 {offsets = [1, 0], sizes = [1, 16], strides = [1, 1]} : vector<10x16xf32> to vector<1x16xf32>
    %238 = vector.broadcast %237 : vector<1x16xf32> to vector<49x16xf32>
    %239 = arith.mulf %217, %238 : vector<49x16xf32>
    %240 = arith.addf %236, %239 : vector<49x16xf32>
    %241 = vector.extract_strided_slice %219 {offsets = [2, 0], sizes = [1, 16], strides = [1, 1]} : vector<10x16xf32> to vector<1x16xf32>
    %242 = vector.broadcast %241 : vector<1x16xf32> to vector<49x16xf32>
    %243 = arith.mulf %229, %242 : vector<49x16xf32>
    %244 = arith.addf %240, %243 : vector<49x16xf32>
    %cst_106 = arith.constant 0.000000e+00 : f32
    %245 = vector.broadcast %cst_106 : f32 to vector<7x16xf32>
    %246 = vector.extract_strided_slice %244 {offsets = [0, 0], sizes = [42, 16], strides = [1, 1]} : vector<49x16xf32> to vector<42x16xf32>
    %247 = tpu.concatenate %245, %246 in 0 : vector<7x16xf32>, vector<42x16xf32> -> vector<49x16xf32>
    %248 = arith.addf %233, %247 : vector<49x16xf32>
    %249 = vector.extract_strided_slice %219 {offsets = [3, 0], sizes = [1, 16], strides = [1, 1]} : vector<10x16xf32> to vector<1x16xf32>
    %250 = vector.broadcast %249 : vector<1x16xf32> to vector<49x16xf32>
    %251 = arith.mulf %224, %250 : vector<49x16xf32>
    %252 = vector.extract_strided_slice %219 {offsets = [4, 0], sizes = [1, 16], strides = [1, 1]} : vector<10x16xf32> to vector<1x16xf32>
    %253 = vector.broadcast %252 : vector<1x16xf32> to vector<49x16xf32>
    %254 = arith.mulf %217, %253 : vector<49x16xf32>
    %255 = arith.addf %251, %254 : vector<49x16xf32>
    %256 = vector.extract_strided_slice %219 {offsets = [5, 0], sizes = [1, 16], strides = [1, 1]} : vector<10x16xf32> to vector<1x16xf32>
    %257 = vector.broadcast %256 : vector<1x16xf32> to vector<49x16xf32>
    %258 = arith.mulf %229, %257 : vector<49x16xf32>
    %259 = arith.addf %255, %258 : vector<49x16xf32>
    %260 = arith.addf %248, %259 : vector<49x16xf32>
    %261 = vector.extract_strided_slice %219 {offsets = [6, 0], sizes = [1, 16], strides = [1, 1]} : vector<10x16xf32> to vector<1x16xf32>
    %262 = vector.broadcast %261 : vector<1x16xf32> to vector<49x16xf32>
    %263 = arith.mulf %224, %262 : vector<49x16xf32>
    %264 = vector.extract_strided_slice %219 {offsets = [7, 0], sizes = [1, 16], strides = [1, 1]} : vector<10x16xf32> to vector<1x16xf32>
    %265 = vector.broadcast %264 : vector<1x16xf32> to vector<49x16xf32>
    %266 = arith.mulf %217, %265 : vector<49x16xf32>
    %267 = arith.addf %263, %266 : vector<49x16xf32>
    %268 = vector.extract_strided_slice %219 {offsets = [8, 0], sizes = [1, 16], strides = [1, 1]} : vector<10x16xf32> to vector<1x16xf32>
    %269 = vector.broadcast %268 : vector<1x16xf32> to vector<49x16xf32>
    %270 = arith.mulf %229, %269 : vector<49x16xf32>
    %271 = arith.addf %267, %270 : vector<49x16xf32>
    %cst_107 = arith.constant 0.000000e+00 : f32
    %272 = vector.broadcast %cst_107 : f32 to vector<7x16xf32>
    %273 = vector.extract_strided_slice %271 {offsets = [7, 0], sizes = [42, 16], strides = [1, 1]} : vector<49x16xf32> to vector<42x16xf32>
    %274 = tpu.concatenate %273, %272 in 0 : vector<42x16xf32>, vector<7x16xf32> -> vector<49x16xf32>
    %275 = arith.addf %260, %274 : vector<49x16xf32>
    %c0_108 = arith.constant 0 : index
    %c0_109 = arith.constant 0 : index
    %c0_110 = arith.constant 0 : index
    %276 = vector.load %arg9[%c0_108, %c0_109, %c0_110] : memref<4x49x49xf32, #tpu.memory_space<vmem>>, vector<1x49x49xf32>
    %277 = vector.shape_cast %276 : vector<1x49x49xf32> to vector<49x49xf32>
    %c1_111 = arith.constant 1 : index
    %c0_112 = arith.constant 0 : index
    %278 = memref.load %arg7[%c1_111, %c0_112] : memref<4x5xf32, #tpu.memory_space<smem>>
    %279 = vector.broadcast %278 : f32 to vector<49x49xf32>
    %280 = arith.mulf %277, %279 : vector<49x49xf32>
    %c1_113 = arith.constant 1 : index
    %c0_114 = arith.constant 0 : index
    %c0_115 = arith.constant 0 : index
    %281 = vector.load %arg9[%c1_113, %c0_114, %c0_115] : memref<4x49x49xf32, #tpu.memory_space<vmem>>, vector<1x49x49xf32>
    %282 = vector.shape_cast %281 : vector<1x49x49xf32> to vector<49x49xf32>
    %c1_116 = arith.constant 1 : index
    %c1_117 = arith.constant 1 : index
    %283 = memref.load %arg7[%c1_116, %c1_117] : memref<4x5xf32, #tpu.memory_space<smem>>
    %284 = vector.broadcast %283 : f32 to vector<49x49xf32>
    %285 = arith.mulf %282, %284 : vector<49x49xf32>
    %286 = arith.addf %280, %285 : vector<49x49xf32>
    %c2_118 = arith.constant 2 : index
    %c0_119 = arith.constant 0 : index
    %c0_120 = arith.constant 0 : index
    %287 = vector.load %arg9[%c2_118, %c0_119, %c0_120] : memref<4x49x49xf32, #tpu.memory_space<vmem>>, vector<1x49x49xf32>
    %288 = vector.shape_cast %287 : vector<1x49x49xf32> to vector<49x49xf32>
    %c1_121 = arith.constant 1 : index
    %c2_122 = arith.constant 2 : index
    %289 = memref.load %arg7[%c1_121, %c2_122] : memref<4x5xf32, #tpu.memory_space<smem>>
    %290 = vector.broadcast %289 : f32 to vector<49x49xf32>
    %291 = arith.mulf %288, %290 : vector<49x49xf32>
    %292 = arith.addf %286, %291 : vector<49x49xf32>
    %c3_123 = arith.constant 3 : index
    %c0_124 = arith.constant 0 : index
    %c0_125 = arith.constant 0 : index
    %293 = vector.load %arg9[%c3_123, %c0_124, %c0_125] : memref<4x49x49xf32, #tpu.memory_space<vmem>>, vector<1x49x49xf32>
    %294 = vector.shape_cast %293 : vector<1x49x49xf32> to vector<49x49xf32>
    %c1_126 = arith.constant 1 : index
    %c3_127 = arith.constant 3 : index
    %295 = memref.load %arg7[%c1_126, %c3_127] : memref<4x5xf32, #tpu.memory_space<smem>>
    %296 = vector.broadcast %295 : f32 to vector<49x49xf32>
    %297 = arith.mulf %294, %296 : vector<49x49xf32>
    %298 = arith.addf %292, %297 : vector<49x49xf32>
    %c1_128 = arith.constant 1 : index
    %c4_129 = arith.constant 4 : index
    %299 = memref.load %arg7[%c1_128, %c4_129] : memref<4x5xf32, #tpu.memory_space<smem>>
    %300 = vector.broadcast %299 : f32 to vector<49x49xf32>
    %301 = arith.addf %298, %300 : vector<49x49xf32>
    %302 = arith.truncf %301 : vector<49x49xf32> to vector<49x49xbf16>
    %303 = arith.truncf %217 : vector<49x16xf32> to vector<49x16xbf16>
    %cst_130 = arith.constant dense<0.000000e+00> : vector<49x16xf32>
    %304 = tpu.matmul %302, %303, %cst_130 {dimension_numbers = #tpu.dot_dimension_numbers<[1], [0], [0], [1], [0, 0, 1, 1], [], []>} : vector<49x49xbf16>, vector<49x16xbf16>, vector<49x16xf32> -> vector<49x16xf32>
    %305 = arith.addf %304, %275 : vector<49x16xf32>
    %cst_131 = arith.constant 0.000000e+00 : f32
    %306 = vector.broadcast %cst_131 : f32 to vector<49x16xf32>
    %307 = arith.maximumf %305, %306 : vector<49x16xf32>
    %308 = arith.truncf %307 : vector<49x16xf32> to vector<49x16xbf16>
    %c1_132 = arith.constant 1 : index
    %c0_133 = arith.constant 0 : index
    %c0_134 = arith.constant 0 : index
    %309 = vector.load %arg6[%c1_132, %c0_133, %c0_134] : memref<4x17x32xf32, #tpu.memory_space<vmem>>, vector<1x17x32xf32>
    %310 = vector.shape_cast %309 : vector<1x17x32xf32> to vector<17x32xf32>
    %311 = vector.extract_strided_slice %310 {offsets = [0, 0], sizes = [16, 32], strides = [1, 1]} : vector<17x32xf32> to vector<16x32xf32>
    %312 = arith.truncf %311 : vector<16x32xf32> to vector<16x32xbf16>
    %cst_135 = arith.constant dense<0.000000e+00> : vector<49x32xf32>
    %313 = tpu.matmul %308, %312, %cst_135 {dimension_numbers = #tpu.dot_dimension_numbers<[1], [0], [0], [1], [0, 0, 1, 1], [], []>} : vector<49x16xbf16>, vector<16x32xbf16>, vector<49x32xf32> -> vector<49x32xf32>
    %314 = arith.addf %214, %313 : vector<49x32xf32>
    %c2_136 = arith.constant 2 : index
    %c0_137 = arith.constant 0 : index
    %c0_138 = arith.constant 0 : index
    %315 = vector.load %arg4[%c2_136, %c0_137, %c0_138] : memref<4x33x16xbf16, #tpu.memory_space<vmem>>, vector<1x33x16xbf16>
    %316 = vector.shape_cast %315 : vector<1x33x16xbf16> to vector<33x16xbf16>
    %cst_139 = arith.constant dense<0.000000e+00> : vector<49x16xf32>
    %317 = tpu.matmul %1, %316, %cst_139 {dimension_numbers = #tpu.dot_dimension_numbers<[1], [0], [0], [1], [0, 0, 1, 1], [], []>} : vector<49x33xbf16>, vector<33x16xbf16>, vector<49x16xf32> -> vector<49x16xf32>
    %c2_140 = arith.constant 2 : index
    %c0_141 = arith.constant 0 : index
    %c0_142 = arith.constant 0 : index
    %318 = vector.load %arg5[%c2_140, %c0_141, %c0_142] : memref<4x10x16xf32, #tpu.memory_space<vmem>>, vector<1x10x16xf32>
    %319 = vector.shape_cast %318 : vector<1x10x16xf32> to vector<10x16xf32>
    %cst_143 = arith.constant 0.000000e+00 : f32
    %320 = vector.broadcast %cst_143 : f32 to vector<1x16xf32>
    %321 = vector.extract_strided_slice %317 {offsets = [0, 0], sizes = [48, 16], strides = [1, 1]} : vector<49x16xf32> to vector<48x16xf32>
    %322 = tpu.concatenate %320, %321 in 0 : vector<1x16xf32>, vector<48x16xf32> -> vector<49x16xf32>
    %323 = vector.broadcast %22 : vector<49x1xf32> to vector<49x16xf32>
    %324 = arith.mulf %322, %323 : vector<49x16xf32>
    %cst_144 = arith.constant 0.000000e+00 : f32
    %325 = vector.broadcast %cst_144 : f32 to vector<1x16xf32>
    %326 = vector.extract_strided_slice %317 {offsets = [1, 0], sizes = [48, 16], strides = [1, 1]} : vector<49x16xf32> to vector<48x16xf32>
    %327 = tpu.concatenate %326, %325 in 0 : vector<48x16xf32>, vector<1x16xf32> -> vector<49x16xf32>
    %328 = vector.broadcast %26 : vector<49x1xf32> to vector<49x16xf32>
    %329 = arith.mulf %327, %328 : vector<49x16xf32>
    %330 = vector.extract_strided_slice %319 {offsets = [9, 0], sizes = [1, 16], strides = [1, 1]} : vector<10x16xf32> to vector<1x16xf32>
    %cst_145 = arith.constant 0.000000e+00 : f32
    %331 = vector.broadcast %cst_145 : f32 to vector<49x16xf32>
    %332 = vector.broadcast %330 : vector<1x16xf32> to vector<49x16xf32>
    %333 = arith.addf %332, %331 : vector<49x16xf32>
    %334 = vector.extract_strided_slice %319 {offsets = [0, 0], sizes = [1, 16], strides = [1, 1]} : vector<10x16xf32> to vector<1x16xf32>
    %335 = vector.broadcast %334 : vector<1x16xf32> to vector<49x16xf32>
    %336 = arith.mulf %324, %335 : vector<49x16xf32>
    %337 = vector.extract_strided_slice %319 {offsets = [1, 0], sizes = [1, 16], strides = [1, 1]} : vector<10x16xf32> to vector<1x16xf32>
    %338 = vector.broadcast %337 : vector<1x16xf32> to vector<49x16xf32>
    %339 = arith.mulf %317, %338 : vector<49x16xf32>
    %340 = arith.addf %336, %339 : vector<49x16xf32>
    %341 = vector.extract_strided_slice %319 {offsets = [2, 0], sizes = [1, 16], strides = [1, 1]} : vector<10x16xf32> to vector<1x16xf32>
    %342 = vector.broadcast %341 : vector<1x16xf32> to vector<49x16xf32>
    %343 = arith.mulf %329, %342 : vector<49x16xf32>
    %344 = arith.addf %340, %343 : vector<49x16xf32>
    %cst_146 = arith.constant 0.000000e+00 : f32
    %345 = vector.broadcast %cst_146 : f32 to vector<7x16xf32>
    %346 = vector.extract_strided_slice %344 {offsets = [0, 0], sizes = [42, 16], strides = [1, 1]} : vector<49x16xf32> to vector<42x16xf32>
    %347 = tpu.concatenate %345, %346 in 0 : vector<7x16xf32>, vector<42x16xf32> -> vector<49x16xf32>
    %348 = arith.addf %333, %347 : vector<49x16xf32>
    %349 = vector.extract_strided_slice %319 {offsets = [3, 0], sizes = [1, 16], strides = [1, 1]} : vector<10x16xf32> to vector<1x16xf32>
    %350 = vector.broadcast %349 : vector<1x16xf32> to vector<49x16xf32>
    %351 = arith.mulf %324, %350 : vector<49x16xf32>
    %352 = vector.extract_strided_slice %319 {offsets = [4, 0], sizes = [1, 16], strides = [1, 1]} : vector<10x16xf32> to vector<1x16xf32>
    %353 = vector.broadcast %352 : vector<1x16xf32> to vector<49x16xf32>
    %354 = arith.mulf %317, %353 : vector<49x16xf32>
    %355 = arith.addf %351, %354 : vector<49x16xf32>
    %356 = vector.extract_strided_slice %319 {offsets = [5, 0], sizes = [1, 16], strides = [1, 1]} : vector<10x16xf32> to vector<1x16xf32>
    %357 = vector.broadcast %356 : vector<1x16xf32> to vector<49x16xf32>
    %358 = arith.mulf %329, %357 : vector<49x16xf32>
    %359 = arith.addf %355, %358 : vector<49x16xf32>
    %360 = arith.addf %348, %359 : vector<49x16xf32>
    %361 = vector.extract_strided_slice %319 {offsets = [6, 0], sizes = [1, 16], strides = [1, 1]} : vector<10x16xf32> to vector<1x16xf32>
    %362 = vector.broadcast %361 : vector<1x16xf32> to vector<49x16xf32>
    %363 = arith.mulf %324, %362 : vector<49x16xf32>
    %364 = vector.extract_strided_slice %319 {offsets = [7, 0], sizes = [1, 16], strides = [1, 1]} : vector<10x16xf32> to vector<1x16xf32>
    %365 = vector.broadcast %364 : vector<1x16xf32> to vector<49x16xf32>
    %366 = arith.mulf %317, %365 : vector<49x16xf32>
    %367 = arith.addf %363, %366 : vector<49x16xf32>
    %368 = vector.extract_strided_slice %319 {offsets = [8, 0], sizes = [1, 16], strides = [1, 1]} : vector<10x16xf32> to vector<1x16xf32>
    %369 = vector.broadcast %368 : vector<1x16xf32> to vector<49x16xf32>
    %370 = arith.mulf %329, %369 : vector<49x16xf32>
    %371 = arith.addf %367, %370 : vector<49x16xf32>
    %cst_147 = arith.constant 0.000000e+00 : f32
    %372 = vector.broadcast %cst_147 : f32 to vector<7x16xf32>
    %373 = vector.extract_strided_slice %371 {offsets = [7, 0], sizes = [42, 16], strides = [1, 1]} : vector<49x16xf32> to vector<42x16xf32>
    %374 = tpu.concatenate %373, %372 in 0 : vector<42x16xf32>, vector<7x16xf32> -> vector<49x16xf32>
    %375 = arith.addf %360, %374 : vector<49x16xf32>
    %c0_148 = arith.constant 0 : index
    %c0_149 = arith.constant 0 : index
    %c0_150 = arith.constant 0 : index
    %376 = vector.load %arg9[%c0_148, %c0_149, %c0_150] : memref<4x49x49xf32, #tpu.memory_space<vmem>>, vector<1x49x49xf32>
    %377 = vector.shape_cast %376 : vector<1x49x49xf32> to vector<49x49xf32>
    %c2_151 = arith.constant 2 : index
    %c0_152 = arith.constant 0 : index
    %378 = memref.load %arg7[%c2_151, %c0_152] : memref<4x5xf32, #tpu.memory_space<smem>>
    %379 = vector.broadcast %378 : f32 to vector<49x49xf32>
    %380 = arith.mulf %377, %379 : vector<49x49xf32>
    %c1_153 = arith.constant 1 : index
    %c0_154 = arith.constant 0 : index
    %c0_155 = arith.constant 0 : index
    %381 = vector.load %arg9[%c1_153, %c0_154, %c0_155] : memref<4x49x49xf32, #tpu.memory_space<vmem>>, vector<1x49x49xf32>
    %382 = vector.shape_cast %381 : vector<1x49x49xf32> to vector<49x49xf32>
    %c2_156 = arith.constant 2 : index
    %c1_157 = arith.constant 1 : index
    %383 = memref.load %arg7[%c2_156, %c1_157] : memref<4x5xf32, #tpu.memory_space<smem>>
    %384 = vector.broadcast %383 : f32 to vector<49x49xf32>
    %385 = arith.mulf %382, %384 : vector<49x49xf32>
    %386 = arith.addf %380, %385 : vector<49x49xf32>
    %c2_158 = arith.constant 2 : index
    %c0_159 = arith.constant 0 : index
    %c0_160 = arith.constant 0 : index
    %387 = vector.load %arg9[%c2_158, %c0_159, %c0_160] : memref<4x49x49xf32, #tpu.memory_space<vmem>>, vector<1x49x49xf32>
    %388 = vector.shape_cast %387 : vector<1x49x49xf32> to vector<49x49xf32>
    %c2_161 = arith.constant 2 : index
    %c2_162 = arith.constant 2 : index
    %389 = memref.load %arg7[%c2_161, %c2_162] : memref<4x5xf32, #tpu.memory_space<smem>>
    %390 = vector.broadcast %389 : f32 to vector<49x49xf32>
    %391 = arith.mulf %388, %390 : vector<49x49xf32>
    %392 = arith.addf %386, %391 : vector<49x49xf32>
    %c3_163 = arith.constant 3 : index
    %c0_164 = arith.constant 0 : index
    %c0_165 = arith.constant 0 : index
    %393 = vector.load %arg9[%c3_163, %c0_164, %c0_165] : memref<4x49x49xf32, #tpu.memory_space<vmem>>, vector<1x49x49xf32>
    %394 = vector.shape_cast %393 : vector<1x49x49xf32> to vector<49x49xf32>
    %c2_166 = arith.constant 2 : index
    %c3_167 = arith.constant 3 : index
    %395 = memref.load %arg7[%c2_166, %c3_167] : memref<4x5xf32, #tpu.memory_space<smem>>
    %396 = vector.broadcast %395 : f32 to vector<49x49xf32>
    %397 = arith.mulf %394, %396 : vector<49x49xf32>
    %398 = arith.addf %392, %397 : vector<49x49xf32>
    %c2_168 = arith.constant 2 : index
    %c4_169 = arith.constant 4 : index
    %399 = memref.load %arg7[%c2_168, %c4_169] : memref<4x5xf32, #tpu.memory_space<smem>>
    %400 = vector.broadcast %399 : f32 to vector<49x49xf32>
    %401 = arith.addf %398, %400 : vector<49x49xf32>
    %402 = arith.truncf %401 : vector<49x49xf32> to vector<49x49xbf16>
    %403 = arith.truncf %317 : vector<49x16xf32> to vector<49x16xbf16>
    %cst_170 = arith.constant dense<0.000000e+00> : vector<49x16xf32>
    %404 = tpu.matmul %402, %403, %cst_170 {dimension_numbers = #tpu.dot_dimension_numbers<[1], [0], [0], [1], [0, 0, 1, 1], [], []>} : vector<49x49xbf16>, vector<49x16xbf16>, vector<49x16xf32> -> vector<49x16xf32>
    %405 = arith.addf %404, %375 : vector<49x16xf32>
    %cst_171 = arith.constant 0.000000e+00 : f32
    %406 = vector.broadcast %cst_171 : f32 to vector<49x16xf32>
    %407 = arith.maximumf %405, %406 : vector<49x16xf32>
    %408 = arith.truncf %407 : vector<49x16xf32> to vector<49x16xbf16>
    %c2_172 = arith.constant 2 : index
    %c0_173 = arith.constant 0 : index
    %c0_174 = arith.constant 0 : index
    %409 = vector.load %arg6[%c2_172, %c0_173, %c0_174] : memref<4x17x32xf32, #tpu.memory_space<vmem>>, vector<1x17x32xf32>
    %410 = vector.shape_cast %409 : vector<1x17x32xf32> to vector<17x32xf32>
    %411 = vector.extract_strided_slice %410 {offsets = [0, 0], sizes = [16, 32], strides = [1, 1]} : vector<17x32xf32> to vector<16x32xf32>
    %412 = arith.truncf %411 : vector<16x32xf32> to vector<16x32xbf16>
    %cst_175 = arith.constant dense<0.000000e+00> : vector<49x32xf32>
    %413 = tpu.matmul %408, %412, %cst_175 {dimension_numbers = #tpu.dot_dimension_numbers<[1], [0], [0], [1], [0, 0, 1, 1], [], []>} : vector<49x16xbf16>, vector<16x32xbf16>, vector<49x32xf32> -> vector<49x32xf32>
    %414 = arith.addf %314, %413 : vector<49x32xf32>
    %c3_176 = arith.constant 3 : index
    %c0_177 = arith.constant 0 : index
    %c0_178 = arith.constant 0 : index
    %415 = vector.load %arg4[%c3_176, %c0_177, %c0_178] : memref<4x33x16xbf16, #tpu.memory_space<vmem>>, vector<1x33x16xbf16>
    %416 = vector.shape_cast %415 : vector<1x33x16xbf16> to vector<33x16xbf16>
    %cst_179 = arith.constant dense<0.000000e+00> : vector<49x16xf32>
    %417 = tpu.matmul %1, %416, %cst_179 {dimension_numbers = #tpu.dot_dimension_numbers<[1], [0], [0], [1], [0, 0, 1, 1], [], []>} : vector<49x33xbf16>, vector<33x16xbf16>, vector<49x16xf32> -> vector<49x16xf32>
    %c3_180 = arith.constant 3 : index
    %c0_181 = arith.constant 0 : index
    %c0_182 = arith.constant 0 : index
    %418 = vector.load %arg5[%c3_180, %c0_181, %c0_182] : memref<4x10x16xf32, #tpu.memory_space<vmem>>, vector<1x10x16xf32>
    %419 = vector.shape_cast %418 : vector<1x10x16xf32> to vector<10x16xf32>
    %cst_183 = arith.constant 0.000000e+00 : f32
    %420 = vector.broadcast %cst_183 : f32 to vector<1x16xf32>
    %421 = vector.extract_strided_slice %417 {offsets = [0, 0], sizes = [48, 16], strides = [1, 1]} : vector<49x16xf32> to vector<48x16xf32>
    %422 = tpu.concatenate %420, %421 in 0 : vector<1x16xf32>, vector<48x16xf32> -> vector<49x16xf32>
    %423 = vector.broadcast %22 : vector<49x1xf32> to vector<49x16xf32>
    %424 = arith.mulf %422, %423 : vector<49x16xf32>
    %cst_184 = arith.constant 0.000000e+00 : f32
    %425 = vector.broadcast %cst_184 : f32 to vector<1x16xf32>
    %426 = vector.extract_strided_slice %417 {offsets = [1, 0], sizes = [48, 16], strides = [1, 1]} : vector<49x16xf32> to vector<48x16xf32>
    %427 = tpu.concatenate %426, %425 in 0 : vector<48x16xf32>, vector<1x16xf32> -> vector<49x16xf32>
    %428 = vector.broadcast %26 : vector<49x1xf32> to vector<49x16xf32>
    %429 = arith.mulf %427, %428 : vector<49x16xf32>
    %430 = vector.extract_strided_slice %419 {offsets = [9, 0], sizes = [1, 16], strides = [1, 1]} : vector<10x16xf32> to vector<1x16xf32>
    %cst_185 = arith.constant 0.000000e+00 : f32
    %431 = vector.broadcast %cst_185 : f32 to vector<49x16xf32>
    %432 = vector.broadcast %430 : vector<1x16xf32> to vector<49x16xf32>
    %433 = arith.addf %432, %431 : vector<49x16xf32>
    %434 = vector.extract_strided_slice %419 {offsets = [0, 0], sizes = [1, 16], strides = [1, 1]} : vector<10x16xf32> to vector<1x16xf32>
    %435 = vector.broadcast %434 : vector<1x16xf32> to vector<49x16xf32>
    %436 = arith.mulf %424, %435 : vector<49x16xf32>
    %437 = vector.extract_strided_slice %419 {offsets = [1, 0], sizes = [1, 16], strides = [1, 1]} : vector<10x16xf32> to vector<1x16xf32>
    %438 = vector.broadcast %437 : vector<1x16xf32> to vector<49x16xf32>
    %439 = arith.mulf %417, %438 : vector<49x16xf32>
    %440 = arith.addf %436, %439 : vector<49x16xf32>
    %441 = vector.extract_strided_slice %419 {offsets = [2, 0], sizes = [1, 16], strides = [1, 1]} : vector<10x16xf32> to vector<1x16xf32>
    %442 = vector.broadcast %441 : vector<1x16xf32> to vector<49x16xf32>
    %443 = arith.mulf %429, %442 : vector<49x16xf32>
    %444 = arith.addf %440, %443 : vector<49x16xf32>
    %cst_186 = arith.constant 0.000000e+00 : f32
    %445 = vector.broadcast %cst_186 : f32 to vector<7x16xf32>
    %446 = vector.extract_strided_slice %444 {offsets = [0, 0], sizes = [42, 16], strides = [1, 1]} : vector<49x16xf32> to vector<42x16xf32>
    %447 = tpu.concatenate %445, %446 in 0 : vector<7x16xf32>, vector<42x16xf32> -> vector<49x16xf32>
    %448 = arith.addf %433, %447 : vector<49x16xf32>
    %449 = vector.extract_strided_slice %419 {offsets = [3, 0], sizes = [1, 16], strides = [1, 1]} : vector<10x16xf32> to vector<1x16xf32>
    %450 = vector.broadcast %449 : vector<1x16xf32> to vector<49x16xf32>
    %451 = arith.mulf %424, %450 : vector<49x16xf32>
    %452 = vector.extract_strided_slice %419 {offsets = [4, 0], sizes = [1, 16], strides = [1, 1]} : vector<10x16xf32> to vector<1x16xf32>
    %453 = vector.broadcast %452 : vector<1x16xf32> to vector<49x16xf32>
    %454 = arith.mulf %417, %453 : vector<49x16xf32>
    %455 = arith.addf %451, %454 : vector<49x16xf32>
    %456 = vector.extract_strided_slice %419 {offsets = [5, 0], sizes = [1, 16], strides = [1, 1]} : vector<10x16xf32> to vector<1x16xf32>
    %457 = vector.broadcast %456 : vector<1x16xf32> to vector<49x16xf32>
    %458 = arith.mulf %429, %457 : vector<49x16xf32>
    %459 = arith.addf %455, %458 : vector<49x16xf32>
    %460 = arith.addf %448, %459 : vector<49x16xf32>
    %461 = vector.extract_strided_slice %419 {offsets = [6, 0], sizes = [1, 16], strides = [1, 1]} : vector<10x16xf32> to vector<1x16xf32>
    %462 = vector.broadcast %461 : vector<1x16xf32> to vector<49x16xf32>
    %463 = arith.mulf %424, %462 : vector<49x16xf32>
    %464 = vector.extract_strided_slice %419 {offsets = [7, 0], sizes = [1, 16], strides = [1, 1]} : vector<10x16xf32> to vector<1x16xf32>
    %465 = vector.broadcast %464 : vector<1x16xf32> to vector<49x16xf32>
    %466 = arith.mulf %417, %465 : vector<49x16xf32>
    %467 = arith.addf %463, %466 : vector<49x16xf32>
    %468 = vector.extract_strided_slice %419 {offsets = [8, 0], sizes = [1, 16], strides = [1, 1]} : vector<10x16xf32> to vector<1x16xf32>
    %469 = vector.broadcast %468 : vector<1x16xf32> to vector<49x16xf32>
    %470 = arith.mulf %429, %469 : vector<49x16xf32>
    %471 = arith.addf %467, %470 : vector<49x16xf32>
    %cst_187 = arith.constant 0.000000e+00 : f32
    %472 = vector.broadcast %cst_187 : f32 to vector<7x16xf32>
    %473 = vector.extract_strided_slice %471 {offsets = [7, 0], sizes = [42, 16], strides = [1, 1]} : vector<49x16xf32> to vector<42x16xf32>
    %474 = tpu.concatenate %473, %472 in 0 : vector<42x16xf32>, vector<7x16xf32> -> vector<49x16xf32>
    %475 = arith.addf %460, %474 : vector<49x16xf32>
    %c0_188 = arith.constant 0 : index
    %c0_189 = arith.constant 0 : index
    %c0_190 = arith.constant 0 : index
    %476 = vector.load %arg9[%c0_188, %c0_189, %c0_190] : memref<4x49x49xf32, #tpu.memory_space<vmem>>, vector<1x49x49xf32>
    %477 = vector.shape_cast %476 : vector<1x49x49xf32> to vector<49x49xf32>
    %c3_191 = arith.constant 3 : index
    %c0_192 = arith.constant 0 : index
    %478 = memref.load %arg7[%c3_191, %c0_192] : memref<4x5xf32, #tpu.memory_space<smem>>
    %479 = vector.broadcast %478 : f32 to vector<49x49xf32>
    %480 = arith.mulf %477, %479 : vector<49x49xf32>
    %c1_193 = arith.constant 1 : index
    %c0_194 = arith.constant 0 : index
    %c0_195 = arith.constant 0 : index
    %481 = vector.load %arg9[%c1_193, %c0_194, %c0_195] : memref<4x49x49xf32, #tpu.memory_space<vmem>>, vector<1x49x49xf32>
    %482 = vector.shape_cast %481 : vector<1x49x49xf32> to vector<49x49xf32>
    %c3_196 = arith.constant 3 : index
    %c1_197 = arith.constant 1 : index
    %483 = memref.load %arg7[%c3_196, %c1_197] : memref<4x5xf32, #tpu.memory_space<smem>>
    %484 = vector.broadcast %483 : f32 to vector<49x49xf32>
    %485 = arith.mulf %482, %484 : vector<49x49xf32>
    %486 = arith.addf %480, %485 : vector<49x49xf32>
    %c2_198 = arith.constant 2 : index
    %c0_199 = arith.constant 0 : index
    %c0_200 = arith.constant 0 : index
    %487 = vector.load %arg9[%c2_198, %c0_199, %c0_200] : memref<4x49x49xf32, #tpu.memory_space<vmem>>, vector<1x49x49xf32>
    %488 = vector.shape_cast %487 : vector<1x49x49xf32> to vector<49x49xf32>
    %c3_201 = arith.constant 3 : index
    %c2_202 = arith.constant 2 : index
    %489 = memref.load %arg7[%c3_201, %c2_202] : memref<4x5xf32, #tpu.memory_space<smem>>
    %490 = vector.broadcast %489 : f32 to vector<49x49xf32>
    %491 = arith.mulf %488, %490 : vector<49x49xf32>
    %492 = arith.addf %486, %491 : vector<49x49xf32>
    %c3_203 = arith.constant 3 : index
    %c0_204 = arith.constant 0 : index
    %c0_205 = arith.constant 0 : index
    %493 = vector.load %arg9[%c3_203, %c0_204, %c0_205] : memref<4x49x49xf32, #tpu.memory_space<vmem>>, vector<1x49x49xf32>
    %494 = vector.shape_cast %493 : vector<1x49x49xf32> to vector<49x49xf32>
    %c3_206 = arith.constant 3 : index
    %c3_207 = arith.constant 3 : index
    %495 = memref.load %arg7[%c3_206, %c3_207] : memref<4x5xf32, #tpu.memory_space<smem>>
    %496 = vector.broadcast %495 : f32 to vector<49x49xf32>
    %497 = arith.mulf %494, %496 : vector<49x49xf32>
    %498 = arith.addf %492, %497 : vector<49x49xf32>
    %c3_208 = arith.constant 3 : index
    %c4_209 = arith.constant 4 : index
    %499 = memref.load %arg7[%c3_208, %c4_209] : memref<4x5xf32, #tpu.memory_space<smem>>
    %500 = vector.broadcast %499 : f32 to vector<49x49xf32>
    %501 = arith.addf %498, %500 : vector<49x49xf32>
    %502 = arith.truncf %501 : vector<49x49xf32> to vector<49x49xbf16>
    %503 = arith.truncf %417 : vector<49x16xf32> to vector<49x16xbf16>
    %cst_210 = arith.constant dense<0.000000e+00> : vector<49x16xf32>
    %504 = tpu.matmul %502, %503, %cst_210 {dimension_numbers = #tpu.dot_dimension_numbers<[1], [0], [0], [1], [0, 0, 1, 1], [], []>} : vector<49x49xbf16>, vector<49x16xbf16>, vector<49x16xf32> -> vector<49x16xf32>
    %505 = arith.addf %504, %475 : vector<49x16xf32>
    %cst_211 = arith.constant 0.000000e+00 : f32
    %506 = vector.broadcast %cst_211 : f32 to vector<49x16xf32>
    %507 = arith.maximumf %505, %506 : vector<49x16xf32>
    %508 = arith.truncf %507 : vector<49x16xf32> to vector<49x16xbf16>
    %c3_212 = arith.constant 3 : index
    %c0_213 = arith.constant 0 : index
    %c0_214 = arith.constant 0 : index
    %509 = vector.load %arg6[%c3_212, %c0_213, %c0_214] : memref<4x17x32xf32, #tpu.memory_space<vmem>>, vector<1x17x32xf32>
    %510 = vector.shape_cast %509 : vector<1x17x32xf32> to vector<17x32xf32>
    %511 = vector.extract_strided_slice %510 {offsets = [0, 0], sizes = [16, 32], strides = [1, 1]} : vector<17x32xf32> to vector<16x32xf32>
    %512 = arith.truncf %511 : vector<16x32xf32> to vector<16x32xbf16>
    %cst_215 = arith.constant dense<0.000000e+00> : vector<49x32xf32>
    %513 = tpu.matmul %508, %512, %cst_215 {dimension_numbers = #tpu.dot_dimension_numbers<[1], [0], [0], [1], [0, 0, 1, 1], [], []>} : vector<49x16xbf16>, vector<16x32xbf16>, vector<49x32xf32> -> vector<49x32xf32>
    %514 = arith.addf %414, %513 : vector<49x32xf32>
    %c0_216 = arith.constant 0 : index
    %c0_217 = arith.constant 0 : index
    %c0_218 = arith.constant 0 : index
    %515 = vector.load %arg8[%c0_216, %c0_217, %c0_218] : memref<1x49x32xf32, #tpu.memory_space<vmem>>, vector<1x49x32xf32>
    %516 = vector.shape_cast %515 : vector<1x49x32xf32> to vector<49x32xf32>
    %517 = vector.shape_cast %514 : vector<49x32xf32> to vector<1x49x32xf32>
    tpu.vector_store %arg8[%c0_216, %c0_217, %c0_218], %517 {strides = array<i32>} : memref<1x49x32xf32, #tpu.memory_space<vmem>>, vector<1x49x32xf32>,
    return
  }
  func.func @transform_0(%arg0: i32) -> (i32, i32, i32) {
    %c0_i32 = arith.constant 0 : i32
    %c0_i32_0 = arith.constant 0 : i32
    %c0_i32_1 = arith.constant 0 : i32
    return %arg0, %c0_i32, %c0_i32_0 : i32, i32, i32
  }
  func.func @transform_1(%arg0: i32) -> (i32, i32, i32) {
    %c0_i32 = arith.constant 0 : i32
    %c0_i32_0 = arith.constant 0 : i32
    %c0_i32_1 = arith.constant 0 : i32
    %c0_i32_2 = arith.constant 0 : i32
    return %c0_i32, %c0_i32_0, %c0_i32_1 : i32, i32, i32
  }
  func.func @transform_2(%arg0: i32) -> (i32, i32, i32) {
    %c0_i32 = arith.constant 0 : i32
    %c0_i32_0 = arith.constant 0 : i32
    %c0_i32_1 = arith.constant 0 : i32
    %c0_i32_2 = arith.constant 0 : i32
    return %c0_i32, %c0_i32_0, %c0_i32_1 : i32, i32, i32
  }
  func.func @transform_3(%arg0: i32) -> (i32, i32, i32) {
    %c0_i32 = arith.constant 0 : i32
    %c0_i32_0 = arith.constant 0 : i32
    %c0_i32_1 = arith.constant 0 : i32
    %c0_i32_2 = arith.constant 0 : i32
    return %c0_i32, %c0_i32_0, %c0_i32_1 : i32, i32, i32
  }
  func.func @transform_4(%arg0: i32) -> (i32, i32, i32) {
    %c0_i32 = arith.constant 0 : i32
    %c0_i32_0 = arith.constant 0 : i32
    %c0_i32_1 = arith.constant 0 : i32
    %c0_i32_2 = arith.constant 0 : i32
    return %c0_i32, %c0_i32_0, %c0_i32_1 : i32, i32, i32
  }
  func.func @transform_5(%arg0: i32) -> (i32, i32, i32) {
    %c0_i32 = arith.constant 0 : i32
    %c0_i32_0 = arith.constant 0 : i32
    %c0_i32_1 = arith.constant 0 : i32
    %c0_i32_2 = arith.constant 0 : i32
    return %c0_i32, %c0_i32_0, %c0_i32_1 : i32, i32, i32
  }
  func.func @transform_6(%arg0: i32) -> (i32, i32) {
    %c0_i32 = arith.constant 0 : i32
    %c0_i32_0 = arith.constant 0 : i32
    %c0_i32_1 = arith.constant 0 : i32
    return %c0_i32, %c0_i32_0 : i32, i32
  }
  func.func @transform_7(%arg0: i32) -> (i32, i32, i32) {
    %c0_i32 = arith.constant 0 : i32
    %c0_i32_0 = arith.constant 0 : i32
    %c0_i32_1 = arith.constant 0 : i32
    return %arg0, %c0_i32, %c0_i32_0 : i32, i32, i32
  }
}

</mosaic_0001>

<bundles_post_ra>
// kernel: attention4d_forward.1
= control target key start
LH: loop header
LB: loop body
LE: loop exit
PB: predicated region body
PF: predicated region fallthrough
CT: control target
= control target key end

     0   :  { %12 = vsyncpa [#allocation4], 0  ;;  %s5061_s24 = smov 0   ;;  %s7877_s0 = inlined_call_operand.vmem [shape: bf16[2,49,33], index: 0, kind: input, shape index: {}]   ;;  %s7878_s1 = inlined_call_operand.vmem [shape: bf16[4,33,33], index: 1, kind: input, shape index: {}]   ;;  %s7879_s2 = inlined_call_operand.vmem [shape: f32[4,49,49], index: 2, kind: input, shape index: {}]   ;;  %s7880_s3 = inlined_call_operand.vmem [shape: bf16[4,33,16], index: 3, kind: input, shape index: {}]   ;;  %s7881_s4 = inlined_call_operand.vmem [shape: f32[4,10,16], index: 4, kind: input, shape index: {}]   ;;  %s7882_s5 = inlined_call_operand.vmem [shape: f32[4,17,32], index: 5, kind: input, shape index: {}]   ;;  %s7883_s6 = inlined_call_operand.vmem [shape: f32[4,5], index: 6, kind: input, shape index: {}]   ;;  %s7884_s7 = inlined_call_operand.vmem [shape: f32[2,49,32], index: 7, kind: output, shape index: {}]  }
   0x1 LB: > { %s5067_s25 = sadd.s32 4294967295, %s5016_s24   ;;  %p4129_p0 = scmp.ge.s32.totalorder %s5016_s24, 1  ;;  %s5016_s24 = sphi %s5061_s24, %s18_s24  }
   0x2   : > { %p201_p1 = scmp.lt.s32.totalorder %s5016_s24, 3  ;;  %s229_s28 = sshll.u32 %s7883_s6, 4  ;;  %s230_s28 = int_to_ptr.vmem [resolvable:$true] %s229_s28 }
   0x3   : > { %p4834_p3 = scmp.eq.s32.totalorder %s5067_s25, 0  ;;  %s4991_s30 = scalar_lea.vmem %s230_s28, 64 }
   0x4   : > { %p5074_p2 = pnand %p4129_p0, %p201_p1  ;;  %p4992_p6 = scmp.ne.s32.totalorder %s230_s28, %s4991_s30 }
   0x5   : > { %p4999_p10 = scmp.lt.s32.totalorder %s230_s28, %s230_s28  ;;  %p5000_p11 = scmp.lt.s32.totalorder %s4991_s30, %s4991_s30 }
   0x6   : > { %p4830_p4 = pneg %p5074_p2 }
   0x7   : > { %p5001_p12 = por %p5000_p11, %p4999_p10 }
   0x8   : > { %p4831_p5 = pnand %p4834_p3, %p4830_p4 }
   0xa   : > { %p4993_p7 = pneg %p4831_p5 }
   0xc   : > { %p4994_p8 = pnand %p4993_p7, %p4992_p6 }
   0xe   : > { %p4995_p9 = pneg %p4994_p8 }
  0x10   : > { %p5002_p13 = pnand %p5001_p12, %p4995_p9 }
  0x12   : > { %5005 = shalt.err (!%p5002_p13)
}
  0x13   : > { %s5018_s8 = smov [#allocation3]   ;;  %250 = sbr.rel (%p5074_p2) target bundleno = 2028 (0x7ec), region = 48 }
  0x14   : > { %4833 = dma.vmem_to_smem (!%p4831_p5), %s230_s28, 64, %s5018_s8, [#allocation4]  }
  0x1a   : > { %5011 = dma.done.wait (%p4834_p3), [#allocation4], 64  }
  0x1b   : > { %5013 = vsyncadd (%p4834_p3), [#allocation4], 4294967232 }
  0x1c   : > { %256 = sfence }
  0x1d   : > { %v4847_v0 = vld [vmem:[%s7878_s1] sm:$0xff]   ;;  %v4848_v1 = vld [vmem:[%s7878_s1 + $0x14] sm:$0xff]   ;;  %vm535_vm0 = vcmask 1040384   ;;  %v4849_v2 = vld [vmem:[%s7878_s1 + $0x8] sm:$0xff]   ;;  %v7887_v3 = vmov 0   ;;  %p283_p0 = scmp.lt.s32.totalorder %s5067_s25, 1 }
  0x1e   : > { %4483 = vmatprep.subr.bf16.mxu1 %v4847_v0  ;;  %v5100_v4 = vsel %vm535_vm0, 65535, %v7887_v3  ;;  %4513 = vmatprep.subr.bf16.mxu0 %v4848_v1  ;;  %v4850_v5 = vld [vmem:[%s7878_s1 + $0x1c] sm:$0xff]   ;;  %v4851_v6 = vld [vmem:[%s7878_s1 + $0x10] ss:$0 sps:$4 sm:$0x11]   ;;  %vm522_vm1 = vcmask 269312  }
  0x1f   : > { %8015 = vst [vmem:[#allocation6_spill] sm:$0xff] %v5100_v4  ;;  %4484 = vmatpush3.bf16.msra.mxu1 %v4847_v0  ;;  %4514 = vmatpush3.bf16.msra.mxu0 %v4848_v1  ;;  %v4852_v7 = vld [vmem:[%s7878_s1 + $0x24] ss:$0 sps:$4 sm:$0x11]   ;;  %s8286_s25 = smov (!%p283_p0, %s5067_s25), 1  ;;  %v539_v8 = vand.u32 %v4851_v6, %v5100_v4  ;;  %v4857_v18 = vld [vmem:[%s7878_s1 + $0x28] sm:$0xff]  }
  0x20   : > { %4485 = vmatprep.subr.bf16.mxu1 %v4849_v2  ;;  %4515 = vmatprep.subr.bf16.mxu0 %v4850_v5  ;;  %v800_v9 = vand.u32 %v4852_v7, %v5100_v4  ;;  %s4810_s21 = smul.u32 28, %s8286_s25  ;;  %v4858_v19 = vld [vmem:[%s7878_s1 + $0x3c] sm:$0xff]   ;;  %v4859_v32 = vld [vmem:[%s7878_s1 + $0x30] sm:$0xff]   ;;  %v4861_v33 = vld [vmem:[%s7878_s1 + $0x38] ss:$0 sps:$4 sm:$0x11]  }
  0x21   : > { %v4860_v34 = vld [vmem:[%s7878_s1 + $0x44] sm:$0xff]   ;;  %v4862_v35 = vld [vmem:[%s7878_s1 + $0x4c] ss:$0 sps:$4 sm:$0x11]   ;;  %v1061_v39 = vand.u32 %v4861_v33, %v5100_v4  ;;  %v611_v50 = vld [vmem:[%s7879_s2 + $0x10] sm:$0xff]  ;;  %vm692_vm2 = vcmask 400384  }
  0x22   : > { %s5121_s26 = scalar_lea.vmem %s7877_s0, %s4810_s21  ;;  %v1322_v42 = vand.u32 %v4862_v35, %v5100_v4  ;;  %v4179_v52 = vld [vmem:[%s7879_s2 + $0x48] sm:$0xff]  ;;  %v4177_v53 = vld [vmem:[%s7879_s2 + $0x38] sm:$0xff]  ;;  %v609_v1 = vld [vmem:[%s7879_s2] sm:$0xff]  ;;  %vm711_vm3 = vcmask 393216   ;;  %s4241_s27 = sld [smem:[#allocation3 + $0x1]] }
  0x23   : > { %4486 = vmatpush3.bf16.msra.mxu1 %v4849_v2  ;;  %4516 = vmatpush3.bf16.msra.mxu0 %v4850_v5  ;;  %v5124_v10 = vld [vmem:[%s5121_s26] sm:$0xff]   ;;  %v5127_v11 = vld [vmem:[%s5121_s26 + $0x8] sm:$0xff]   ;;  %v5132_v12 = vld [vmem:[%s5121_s26 + $0x10] sm:$0xff]   ;;  %s1935_s28 = sld [smem:[#allocation3]]  ;;  %s4298_s8 = sld [smem:[#allocation3 + $0x101]] }
  0x24   : > { %4487 = vmatprep.subr.bf16.mxu1 %v539_v8  ;;  %4517 = vmatprep.subr.bf16.mxu0 %v800_v9  ;;  %v5144_v13 = vsel %vm522_vm1, %v5124_v10, 0  ;;  %v5153_v14 = vld [vmem:[%s5121_s26 + $0x18] ss:$0 sps:$4 sm:$0x11]   ;;  %v5167_v15 = vsel %vm522_vm1, %v5127_v11, 0  ;;  %v5177_v16 = vsel %vm522_vm1, %v5132_v12, 0 }
  0x25   : > { %4489 = vmatprep.mubr.msk.bf16.mxu1 %vm522_vm1, %v5124_v10  ;;  %4519 = vmatprep.mubr.msk.bf16.mxu0 %vm522_vm1, %v5124_v10  ;;  %v5187_v17 = vsel %vm522_vm1, %v5153_v14, 0  ;;  %v612_v58 = vld [vmem:[%s7879_s2 + $0x18] sm:$0xff]  ;;  %v4180_v7 = vld [vmem:[%s7879_s2 + $0x50] sm:$0xff]  ;;  %s4297_s29 = sld [smem:[#allocation3 + $0x100]]  ;;  %s4269_s9 = sld [smem:[#allocation3 + $0x81]] }
  0x26   : > { %s4268_s30 = sld [smem:[#allocation3 + $0x80]]  ;;  %s4327_s11 = sld [smem:[#allocation3 + $0x181]] }
  0x27   : > { %4488 = vmatpush3.bf16.msra.mxu1 %v539_v8  ;;  %4518 = vmatpush3.bf16.msra.mxu0 %v800_v9  ;;  %s4326_s10 = sld [smem:[#allocation3 + $0x180]]  ;;  %s6172_s12 = sld [smem:[#allocation3 + $0x2]] }
  0x28   : > { %4794 = vmatprep.subr.msk.bf16.mxu1 %vm522_vm1, %v5124_v10  ;;  %4798 = vmatprep.subr.msk.bf16.mxu0 %vm522_vm1, %v5124_v10  ;;  %s6182_s13 = sld [smem:[#allocation3 + $0x3]]  ;;  %s6184_s14 = sld [smem:[#allocation3 + $0x4]] }
  0x29   : > { %s6203_s15 = sld [smem:[#allocation3 + $0x102]]  ;;  %s6210_s16 = sld [smem:[#allocation3 + $0x103]] }
  0x2a   : > { %4490 = vmatmul.mubr.msk.bf16.vlgmr.msra.gmra.mrb[0].mxu1 %vm522_vm1, %v5127_v11  ;;  %4520 = vmatmul.mubr.msk.bf16.vlgmr.msra.gmra.mrb[0].mxu0 %vm522_vm1, %v5127_v11  ;;  %s6212_s17 = sld [smem:[#allocation3 + $0x104]]  ;;  %s6235_s18 = sld [smem:[#allocation3 + $0x82]] }
  0x2b   : > { %4493 = vmatprep.mubr.msk.bf16.mxu1 %vm522_vm1, %v5132_v12  ;;  %4523 = vmatprep.mubr.msk.bf16.mxu0 %vm522_vm1, %v5132_v12  ;;  %s6249_s21 = sld [smem:[#allocation3 + $0x83]]  ;;  %s6266_s22 = sld [smem:[#allocation3 + $0x84]] }
  0x2c   : > { %s6330_s23 = sld [smem:[#allocation3 + $0x182]] }
  0x30   : > { %4498 = vmatpush3.bf16.xpose.msra.mxu1 %v5144_v13  ;;  %4528 = vmatpush3.bf16.xpose.msra.mxu0 %v5144_v13 }
  0x31   : > { %4795 = vmatprep.subr.msk.bf16.mxu1 %vm522_vm1, %v5127_v11  ;;  %4799 = vmatprep.subr.msk.bf16.mxu0 %vm522_vm1, %v5127_v11 }
  0x32   : > { %4494 = vmatmul.mubr.msk.bf16.gmra.mrb[4].mxu1 %vm522_vm1, %v5153_v14  ;;  %4524 = vmatmul.mubr.msk.bf16.gmra.mrb[4].mxu0 %vm522_vm1, %v5153_v14 }
  0x38   : > { %4500 = vmatpush3.bf16.xpose.msra.mxu1 %v5167_v15  ;;  %4530 = vmatpush3.bf16.xpose.msra.mxu0 %v5167_v15 }
  0x39   : > { %4796 = vmatprep.subr.msk.bf16.mxu1 %vm522_vm1, %v5132_v12  ;;  %4800 = vmatprep.subr.msk.bf16.mxu0 %vm522_vm1, %v5132_v12 }
  0x40   : > { %4502 = vmatpush3.bf16.xpose.msra.mxu1 %v5177_v16  ;;  %4532 = vmatpush3.bf16.xpose.msra.mxu0 %v5177_v16 }
  0x41   : > { %4797 = vmatprep.subr.msk.bf16.mxu1 %vm522_vm1, %v5153_v14  ;;  %4801 = vmatprep.subr.msk.bf16.mxu0 %vm522_vm1, %v5153_v14 }
  0x48   : > { %4504 = vmatpush3.bf16.xpose.msra.mxu1 %v5187_v17  ;;  %4534 = vmatpush3.bf16.xpose.msra.mxu0 %v5187_v17 }
  0x49   : > { %4543 = vmatprep.subr.bf16.mxu1 %v4857_v18  ;;  %4573 = vmatprep.subr.bf16.mxu0 %v4858_v19 }
  0xfd   : > { %v4491_v20 = vpop.f32.mrb[0].mxu1  ;;  %v4521_v21 = vpop.f32.mrb[0].mxu0 }
  0xfe   : > { %v575_v22 = vpop.f32.mrb[1].mxu1  ;;  %v836_v23 = vpop.f32.mrb[1].mxu0 }
  0xff   : > { %v4492_v24 = vpop.f32.mrb[2].mxu1  ;;  %v4522_v26 = vpop.f32.mrb[2].mxu0 }
 0x100   : > { %v606_v25 = vpack.c.bf16 %v4492_v24, %v4491_v20  ;;  %v578_v27 = vpop.f32.mrb[3].mxu1  ;;  %v867_v28 = vpack.c.bf16 %v4522_v26, %v4521_v21  ;;  %v839_v30 = vpop.f32.mrb[3].mxu0  ;;  %v4178_v20 = vld [vmem:[%s7879_s2 + $0x40] sm:$0xff] }
 0x101   : > { %v605_v29 = vpack.c.bf16 %v578_v27, %v575_v22  ;;  %v866_v31 = vpack.c.bf16 %v839_v30, %v836_v23  ;;  %v615_v27 = vld [vmem:[%s7879_s2 + $0x30] sm:$0x1] }
 0x103   : > { %4505 = vmatprep.mubr.msk.bf16.mxu1 %vm522_vm1, %v605_v29  ;;  %4535 = vmatprep.mubr.msk.bf16.mxu0 %vm522_vm1, %v866_v31  ;;  %v4183_v31 = vld [vmem:[%s7879_s2 + $0x68] sm:$0x1] }
 0x104   : > { %4506 = vmatmul.mubr.msk.bf16.vlgmr.msra.gmra.mrb[8].mxu1 %vm522_vm1, %v606_v25  ;;  %4536 = vmatmul.mubr.msk.bf16.vlgmr.msra.gmra.mrb[8].mxu0 %vm522_vm1, %v867_v28 }
 0x105   : > { %v4495_v36 = vpop.f32.mrb[4].mxu1  ;;  %4544 = vmatpush3.bf16.msra.mxu1 %v4857_v18  ;;  %v4525_v37 = vpop.f32.mrb[4].mxu0  ;;  %4574 = vmatpush3.bf16.msra.mxu0 %v4858_v19 }
 0x106   : > { %v591_v38 = vpop.f32.mrb[5].mxu1  ;;  %4545 = vmatprep.subr.bf16.mxu1 %v4859_v32  ;;  %v852_v40 = vpop.f32.mrb[5].mxu0  ;;  %4575 = vmatprep.subr.bf16.mxu0 %v4860_v34  ;;  %v869_v45 = vpack.c.bf16 %v4525_v37, %v4525_v37  ;;  %v608_v48 = vpack.c.bf16 %v4495_v36, %v4495_v36 }
 0x107   : > { %v4496_v41 = vpop.f32.mrb[6].mxu1  ;;  %v4526_v43 = vpop.f32.mrb[6].mxu0 }
 0x108   : > { %v594_v44 = vpop.f32.mrb[7].mxu1  ;;  %v855_v47 = vpop.f32.mrb[7].mxu0 }
 0x109   : > { %v607_v46 = vpack.c.bf16 %v594_v44, %v591_v38  ;;  %4546 = vmatpush3.bf16.msra.mxu1 %v4859_v32  ;;  %v868_v49 = vpack.c.bf16 %v855_v47, %v852_v40  ;;  %4576 = vmatpush3.bf16.msra.mxu0 %v4860_v34  ;;  %v613_v34 = vld [vmem:[%s7879_s2 + $0x20] sm:$0xff]  ;;  %v614_v40 = vld [vmem:[%s7879_s2 + $0x28] sm:$0xff] }
 0x10a   : > { %4547 = vmatprep.subr.bf16.mxu1 %v1061_v39  ;;  %4577 = vmatprep.subr.bf16.mxu0 %v1322_v42 }
 0x10b   : > { %4509 = vmatprep.mubr.msk.bf16.mxu1 %vm522_vm1, %v607_v46  ;;  %4539 = vmatprep.mubr.msk.bf16.mxu0 %vm522_vm1, %v868_v49 }
 0x10c   : > { %4510 = vmatmul.mubr.msk.bf16.gmra.mrb[12].mxu1 %vm522_vm1, %v608_v48  ;;  %4540 = vmatmul.mubr.msk.bf16.gmra.mrb[12].mxu0 %vm522_vm1, %v869_v45  ;;  %v4181_v48 = vld [vmem:[%s7879_s2 + $0x58] sm:$0xff] }
 0x10d   : > { %4548 = vmatpush3.bf16.msra.mxu1 %v1061_v39  ;;  %4578 = vmatpush3.bf16.msra.mxu0 %v1322_v42 }
 0x10e   : > { %4549 = vmatprep.mubr.msk.bf16.mxu1 %vm522_vm1, %v5124_v10  ;;  %4579 = vmatprep.mubr.msk.bf16.mxu0 %vm522_vm1, %v5124_v10 }
 0x10f   : > { %4802 = vmatprep.subr.msk.bf16.mxu1 %vm522_vm1, %v5124_v10  ;;  %4806 = vmatprep.subr.msk.bf16.mxu0 %vm522_vm1, %v5124_v10 }
 0x114   : > { %4550 = vmatmul.mubr.msk.bf16.vlgmr.msra.gmra.mrb[16].mxu1 %vm522_vm1, %v5127_v11  ;;  %4580 = vmatmul.mubr.msk.bf16.vlgmr.msra.gmra.mrb[16].mxu0 %vm522_vm1, %v5127_v11 }
 0x115   : > { %4553 = vmatprep.mubr.msk.bf16.mxu1 %vm522_vm1, %v5132_v12  ;;  %4583 = vmatprep.mubr.msk.bf16.mxu0 %vm522_vm1, %v5132_v12 }
 0x116   : > { %4558 = vmatpush3.bf16.xpose.msra.mxu1 %v5144_v13  ;;  %4588 = vmatpush3.bf16.xpose.msra.mxu0 %v5144_v13  ;;  %v610_v13 = vld [vmem:[%s7879_s2 + $0x8] sm:$0xff] }
 0x117   : > { %4803 = vmatprep.subr.msk.bf16.mxu1 %vm522_vm1, %v5127_v11  ;;  %4807 = vmatprep.subr.msk.bf16.mxu0 %vm522_vm1, %v5127_v11 }
 0x11c   : > { %4554 = vmatmul.mubr.msk.bf16.gmra.mrb[20].mxu1 %vm522_vm1, %v5153_v14  ;;  %4584 = vmatmul.mubr.msk.bf16.gmra.mrb[20].mxu0 %vm522_vm1, %v5153_v14 }
 0x11e   : > { %4560 = vmatpush3.bf16.xpose.msra.mxu1 %v5167_v15  ;;  %4590 = vmatpush3.bf16.xpose.msra.mxu0 %v5167_v15 }
 0x11f   : > { %4804 = vmatprep.subr.msk.bf16.mxu1 %vm522_vm1, %v5132_v12  ;;  %4808 = vmatprep.subr.msk.bf16.mxu0 %vm522_vm1, %v5132_v12 }
 0x126   : > { %4562 = vmatpush3.bf16.xpose.msra.mxu1 %v5177_v16  ;;  %4592 = vmatpush3.bf16.xpose.msra.mxu0 %v5177_v16 }
 0x127   : > { %4805 = vmatprep.subr.msk.bf16.mxu1 %vm522_vm1, %v5153_v14  ;;  %4809 = vmatprep.subr.msk.bf16.mxu0 %vm522_vm1, %v5153_v14 }
 0x12e   : > { %4564 = vmatpush3.bf16.xpose.msra.mxu1 %v5187_v17  ;;  %4594 = vmatpush3.bf16.xpose.msra.mxu0 %v5187_v17 }
 0x1d7   : > { %v4507_v51 = vpop.f32.mrb[8].mxu1  ;;  %v4537_v55 = vpop.f32.mrb[8].mxu0 }
 0x1d8   : > { %v5268_v54 = vadd.f32 %v4507_v51, %v611_v50  ;;  %v662_v56 = vpop.f32.mrb[9].mxu1  ;;  %v924_v57 = vpop.f32.mrb[9].mxu0  ;;  %v5273_v60 = vadd.f32 %v4537_v55, %v4179_v52 }
 0x1d9   : > { %v4508_v59 = vpop.f32.mrb[10].mxu1  ;;  %v5275_v61 = vadd.f32 %v4177_v53, %v924_v57  ;;  %v4538_v62 = vpop.f32.mrb[10].mxu0  ;;  %v5289_v8 = vadd.f32 %v662_v56, %v609_v1  ;;  %v4182_v56 = vld [vmem:[%s7879_s2 + $0x60] sm:$0xff] }
 0x1da   : > { %v665_v63 = vpop.f32.mrb[11].mxu1  ;;  %v699_v0 = vsel %vm692_vm2, %v5268_v54, -inf  ;;  %v927_v2 = vpop.f32.mrb[11].mxu0  ;;  %v5282_v5 = vadd.f32 %v4508_v59, %v612_v58  ;;  %v960_v9 = vsel %vm692_vm2, %v5273_v60, -inf  ;;  %v5296_v16 = vadd.f32 %v4538_v62, %v4180_v7 }
 0x1db   : > { %700 = vmax.xlane.f32.xlu0 %v699_v0  ;;  %v954_v6 = vsel %vm692_vm2, %v5275_v61, -inf  ;;  %v5303_v23 = vadd.f32 %v665_v63, %v610_v13  ;;  %v693_v26 = vsel %vm692_vm2, %v5289_v8, -inf  ;;  %v5310_v29 = vadd.f32 %v4178_v20, %v927_v2 }
 0x1dc   : > { %955 = vmax.xlane.f32.xlu1 %v954_v6  ;;  %v702_v18 = vsel %vm692_vm2, %v5282_v5, -inf  ;;  %v963_v30 = vsel %vm692_vm2, %v5296_v16, -inf }
 0x1dd   : > { %v696_v33 = vsel %vm692_vm2, %v5303_v23, -inf  ;;  %v957_v38 = vsel %vm692_vm2, %v5310_v29, -inf }
 0x1df   : > { %961 = vmax.xlane.f32.xlu0 %v960_v9  ;;  %v4511_v15 = vpop.f32.mrb[12].mxu1  ;;  %v4541_v17 = vpop.f32.mrb[12].mxu0 }
 0x1e0   : > { %v678_v19 = vpop.f32.mrb[13].mxu1  ;;  %v940_v21 = vpop.f32.mrb[13].mxu0  ;;  %703 = vmax.xlane.f32.xlu1 %v702_v18  ;;  %v5317_v32 = vadd.f32 %v4511_v15, %v615_v27  ;;  %v5324_v36 = vadd.f32 %v4541_v17, %v4183_v31  ;;  %v4202_v31 = vld [vmem:[%s7879_s2 + $0x80] sm:$0xff] }
 0x1e1   : > { %v4512_v22 = vpop.f32.mrb[14].mxu1  ;;  %v4542_v24 = vpop.f32.mrb[14].mxu0  ;;  %v5331_v43 = vadd.f32 %v678_v19, %v613_v34  ;;  %v5346_v57 = vadd.f32 %v4181_v48, %v940_v21  ;;  %v4200_v48 = vld [vmem:[%s7879_s2 + $0x70] sm:$0xff] }
 0x1e2   : > { %v681_v25 = vpop.f32.mrb[15].mxu1  ;;  %v943_v28 = vpop.f32.mrb[15].mxu0  ;;  %v712_v47 = vsel %vm711_vm3, %v5317_v32, -inf  ;;  %v972_v55 = vsel %vm711_vm3, %v5324_v36, -inf  ;;  %v4863_v22 = vld [vmem:[%s7880_s3] sm:$0xff]   ;;  %v4864_v24 = vld [vmem:[%s7880_s3 + $0x8] sm:$0xff]  }
 0x1e3   : > { %694 = vmax.xlane.f32.xlu0 %v693_v26  ;;  %v5338_v52 = vadd.f32 %v681_v25, %v614_v40  ;;  %v705_v58 = vsel %vm692_vm2, %v5331_v43, -inf  ;;  %v5353_v62 = vadd.f32 %v4182_v56, %v943_v28  ;;  %v966_v13 = vsel %vm692_vm2, %v5346_v57, -inf  ;;  %v4865_v25 = vld [vmem:[%s7880_s3 + $0x10] ss:$0 sps:$4 sm:$0x11]   ;;  %4603 = vmatprep.subr.bf16.mxu1 %v4863_v22 }
 0x1e4   : > { %964 = vmax.xlane.f32.xlu1 %v963_v30  ;;  %v1585_v26 = vand.u32 %v4865_v25, %v5100_v4 }
 0x1e5   : > { %v708_v63 = vsel %vm692_vm2, %v5338_v52, -inf  ;;  %v969_v21 = vsel %vm692_vm2, %v5353_v62, -inf }
 0x1e7   : > { %v4551_v35 = vpop.f32.mrb[16].mxu1  ;;  %697 = vmax.xlane.f32.xlu0 %v696_v33  ;;  %v4581_v37 = vpop.f32.mrb[16].mxu0 }
 0x1e8   : > { %v1097_v39 = vpop.f32.mrb[17].mxu1  ;;  %v1358_v41 = vpop.f32.mrb[17].mxu0  ;;  %958 = vmax.xlane.f32.xlu1 %v957_v38 }
 0x1e9   : > { %v4552_v42 = vpop.f32.mrb[18].mxu1  ;;  %v4582_v45 = vpop.f32.mrb[18].mxu0 }
 0x1ea   : > { %v1128_v44 = vpack.c.bf16 %v4552_v42, %v4551_v35  ;;  %v1100_v46 = vpop.f32.mrb[19].mxu1  ;;  %v1389_v49 = vpack.c.bf16 %v4582_v45, %v4581_v37  ;;  %v1361_v51 = vpop.f32.mrb[19].mxu0 }
 0x1eb   : > { %v1127_v50 = vpack.c.bf16 %v1100_v46, %v1097_v39  ;;  %713 = vmax.xlane.f32.xlu0 %v712_v47  ;;  %v1388_v53 = vpack.c.bf16 %v1361_v51, %v1358_v41  ;;  %v4226_v41 = vld [vmem:[%s7879_s2 + $0xc0] sm:$0xff] }
 0x1ec   : > { %973 = vmax.xlane.f32.xlu1 %v972_v55 }
 0x1ed   : > { %4565 = vmatprep.mubr.msk.bf16.mxu1 %vm522_vm1, %v1127_v50  ;;  %4595 = vmatprep.mubr.msk.bf16.mxu0 %vm522_vm1, %v1388_v53  ;;  %v4201_v53 = vld [vmem:[%s7879_s2 + $0x78] sm:$0xff] }
 0x1ee   : > { %4566 = vmatmul.mubr.msk.bf16.vlgmr.msra.gmra.mrb[24].mxu1 %vm522_vm1, %v1128_v44  ;;  %4596 = vmatmul.mubr.msk.bf16.vlgmr.msra.gmra.mrb[24].mxu0 %vm522_vm1, %v1389_v49 }
 0x1ef   : > { %706 = vmax.xlane.f32.xlu0 %v705_v58  ;;  %v4555_v59 = vpop.f32.mrb[20].mxu1  ;;  %v4585_v0 = vpop.f32.mrb[20].mxu0  ;;  %4604 = vmatpush3.bf16.msra.mxu1 %v4863_v22 }
 0x1f0   : > { %v1113_v1 = vpop.f32.mrb[21].mxu1  ;;  %709 = vmax.xlane.f32.xlu1 %v708_v63  ;;  %v1374_v2 = vpop.f32.mrb[21].mxu0  ;;  %v1130_v7 = vpack.c.bf16 %v4555_v59, %v4555_v59  ;;  %v1391_v17 = vpack.c.bf16 %v4585_v0, %v4585_v0  ;;  %4605 = vmatprep.subr.bf16.mxu1 %v4864_v24  ;;  %v4223_v63 = vld [vmem:[%s7879_s2 + $0xa8] sm:$0xff] }
 0x1f1   : > { %v4556_v6 = vpop.f32.mrb[22].mxu1  ;;  %v4586_v9 = vpop.f32.mrb[22].mxu0 }
 0x1f2   : > { %v1116_v15 = vpop.f32.mrb[23].mxu1  ;;  %v1377_v19 = vpop.f32.mrb[23].mxu0 }
 0x1f3   : > { %967 = vmax.xlane.f32.xlu0 %v966_v13  ;;  %v1129_v18 = vpack.c.bf16 %v1116_v15, %v1113_v1  ;;  %v1390_v20 = vpack.c.bf16 %v1377_v19, %v1374_v2  ;;  %4606 = vmatpush3.bf16.msra.mxu1 %v4864_v24  ;;  %v4224_v13 = vld [vmem:[%s7879_s2 + $0xb0] sm:$0xff] }
 0x1f4   : > { %970 = vmax.xlane.f32.xlu1 %v969_v21  ;;  %4607 = vmatprep.subr.bf16.mxu1 %v1585_v26 }
 0x1f5   : > { %4569 = vmatprep.mubr.msk.bf16.mxu1 %vm522_vm1, %v1129_v18  ;;  %4599 = vmatprep.mubr.msk.bf16.mxu0 %vm522_vm1, %v1390_v20 }
 0x1f6   : > { %4570 = vmatmul.mubr.msk.bf16.gmra.mrb[28].mxu1 %vm522_vm1, %v1130_v7  ;;  %4600 = vmatmul.mubr.msk.bf16.gmra.mrb[28].mxu0 %vm522_vm1, %v1391_v17 }
 0x1f7   : > { %4609 = vmatprep.mubr.msk.bf16.mxu1 %vm522_vm1, %v5124_v10  ;;  %4608 = vmatpush3.bf16.msra.mxu1 %v1585_v26 }
 0x1fe   : > { %4610 = vmatmul.mubr.msk.bf16.vlgmr.msra.gmra.mrb[32].mxu1 %vm522_vm1, %v5127_v11 }
 0x1ff   : > { %4613 = vmatprep.mubr.msk.bf16.mxu1 %vm522_vm1, %v5132_v12  ;;  %v4225_v12 = vld [vmem:[%s7879_s2 + $0xb8] sm:$0xff] }
 0x206   : > { %4614 = vmatmul.mubr.msk.bf16.gmra.mrb[36].mxu1 %vm522_vm1, %v5153_v14  ;;  %v4203_v14 = vld [vmem:[%s7879_s2 + $0x88] sm:$0xff] }
 0x268   : > { %v5383_v10 = vpop.xlane.xlu0 %700 }
 0x269   : > { %v5385_v27 = vpop.xlane.xlu1 %955 }
 0x26c   : > { %v5387_v28 = vpop.xlane.xlu0 %961 }
 0x26d   : > { %v5389_v30 = vpop.xlane.xlu1 %703 }
 0x270   : > { %v695_v33 = vpop.xlane.xlu0 %694 }
 0x271   : > { %v5394_v11 = vpop.xlane.xlu1 %964  ;;  %v715_v9 = vsub.f32 %v5289_v8, %v695_v33  ;;  %v4206_v8 = vld [vmem:[%s7879_s2 + $0xa0] sm:$0x1] }
 0x273   : > { %v722_v33 = vmul.f32 1.442695, %v715_v9 }
 0x274   : > { %v698_v55 = vpop.xlane.xlu0 %697 }
 0x275   : > { %v959_v59 = vpop.xlane.xlu1 %958  ;;  %v716_v22 = vsub.f32 %v5303_v23, %v698_v55  ;;  %4875 = vpow2.f32 %v722_v33 }
 0x278   : > { %v5455_v23 = vpop.xlane.xlu0 %713 }
 0x279   : > { %v721_v33 = vsub.f32 %v5317_v32, %v5455_v23 }
 0x27b   : > { %v734_v32 = vmul.f32 1.442695, %v721_v33 }
 0x2c1   : > { %v4567_v34 = vpop.f32.mrb[24].mxu1  ;;  %v4597_v37 = vpop.f32.mrb[24].mxu0 }
 0x2c2   : > { %v5402_v35 = vadd.f32 %v4567_v34, %v4202_v31  ;;  %v1185_v38 = vpop.f32.mrb[25].mxu1  ;;  %v1446_v39 = vpop.f32.mrb[25].mxu0  ;;  %v5407_v42 = vadd.f32 %v4597_v37, %v4225_v12  ;;  %v975_v31 = vsub.f32 %v5275_v61, %v5385_v27  ;;  %v4227_v34 = vld [vmem:[%s7879_s2 + $0xc8] sm:$0xff]  ;;  %v724_v37 = vmul.f32 1.442695, %v716_v22  ;;  %v4204_v61 = vld [vmem:[%s7879_s2 + $0x90] sm:$0xff] }
 0x2c3   : > { %v4568_v40 = vpop.f32.mrb[26].mxu1  ;;  %v4598_v45 = vpop.f32.mrb[26].mxu0  ;;  %v5423_v56 = vadd.f32 %v4200_v48, %v1185_v38  ;;  %v5438_v18 = vadd.f32 %v4223_v63, %v1446_v39  ;;  %v976_v38 = vsub.f32 %v5310_v29, %v959_v59  ;;  %v4205_v29 = vld [vmem:[%s7879_s2 + $0x98] sm:$0xff]  ;;  %v718_v48 = vsub.f32 %v5282_v5, %v5389_v30 }
 0x2c4   : > { %v5409_v44 = vadd.f32 %v4568_v40, %v4203_v14  ;;  %v1188_v46 = vpop.f32.mrb[27].mxu1  ;;  %v1221_v47 = vsel %vm692_vm2, %v5402_v35, -inf  ;;  %v1449_v49 = vpop.f32.mrb[27].mxu0  ;;  %v5416_v50 = vadd.f32 %v4598_v45, %v4226_v41  ;;  %v1482_v58 = vsel %vm692_vm2, %v5407_v42, -inf  ;;  %v4229_v5 = vld [vmem:[%s7879_s2 + $0xd8] sm:$0x1] }
 0x2c5   : > { %1222 = vmax.xlane.f32.xlu0 %v1221_v47  ;;  %v5430_v1 = vadd.f32 %v4201_v53, %v1188_v46  ;;  %v1215_v20 = vsel %vm692_vm2, %v5423_v56, -inf  ;;  %v5446_v25 = vadd.f32 %v4224_v13, %v1449_v49  ;;  %v1476_v14 = vsel %vm692_vm2, %v5438_v18, -inf  ;;  %v5465_v27 = vpop.xlane.xlu1 %973 }
 0x2c6   : > { %v1224_v51 = vsel %vm692_vm2, %v5409_v44, -inf  ;;  %v1485_v6 = vsel %vm692_vm2, %v5416_v50, -inf  ;;  %v717_v41 = vsub.f32 %v5268_v54, %v5383_v10  ;;  %v982_v45 = vmul.f32 1.442695, %v975_v31  ;;  %v4228_v54 = vld [vmem:[%s7879_s2 + $0xd0] sm:$0xff]  ;;  %v707_v10 = vpop.xlane.xlu0 %706 }
 0x2c7   : > { %1225 = vmax.xlane.f32.xlu1 %v1224_v51  ;;  %v1218_v26 = vsel %vm692_vm2, %v5430_v1, -inf  ;;  %v1479_v40 = vsel %vm692_vm2, %v5446_v25, -inf  ;;  %4877 = vpow2.f32 %v724_v37  ;;  %v984_v49 = vmul.f32 1.442695, %v976_v38 }
 0x2c8   : > { %v726_v55 = vmul.f32 1.442695, %v717_v41  ;;  %4879 = vpow2.f32 %v982_v45  ;;  %v719_v9 = vsub.f32 %v5331_v43, %v707_v10 }
 0x2c9   : > { %1483 = vmax.xlane.f32.xlu0 %v1482_v58  ;;  %v4571_v0 = vpop.f32.mrb[28].mxu1  ;;  %v4601_v2 = vpop.f32.mrb[28].mxu0  ;;  %v977_v58 = vsub.f32 %v5273_v60, %v5387_v28  ;;  %4881 = vpow2.f32 %v984_v49 }
 0x2ca   : > { %v1201_v7 = vpop.f32.mrb[29].mxu1  ;;  %v1462_v15 = vpop.f32.mrb[29].mxu0  ;;  %v5457_v12 = vadd.f32 %v4571_v0, %v4206_v8  ;;  %v728_v0 = vmul.f32 1.442695, %v718_v48  ;;  %4883 = vpow2.f32 %v726_v55  ;;  %v730_v43 = vmul.f32 1.442695, %v719_v9 }
 0x2cb   : > { %1486 = vmax.xlane.f32.xlu1 %v1485_v6  ;;  %v4572_v17 = vpop.f32.mrb[30].mxu1  ;;  %v4602_v19 = vpop.f32.mrb[30].mxu0  ;;  %v5467_v39 = vadd.f32 %v4227_v34, %v1462_v15  ;;  %v5476_v46 = vadd.f32 %v4204_v61, %v1201_v7  ;;  %v978_v6 = vsub.f32 %v5296_v16, %v5394_v11  ;;  %v5500_v7 = vadd.f32 %v4601_v2, %v4229_v5 }
 0x2cc   : > { %v1204_v21 = vpop.f32.mrb[31].mxu1  ;;  %v1465_v24 = vpop.f32.mrb[31].mxu0  ;;  %v1233_v47 = vsel %vm711_vm3, %v5457_v12, -inf  ;;  %v986_v28 = vmul.f32 1.442695, %v977_v58  ;;  %4885 = vpow2.f32 %v728_v0 }
 0x2cd   : > { %1216 = vmax.xlane.f32.xlu0 %v1215_v20  ;;  %v5485_v51 = vadd.f32 %v4205_v29, %v1204_v21  ;;  %v1488_v53 = vsel %vm692_vm2, %v5467_v39, -inf  ;;  %v710_v30 = vpop.xlane.xlu1 %709  ;;  %v5494_v59 = vadd.f32 %v4228_v54, %v1465_v24  ;;  %v1227_v63 = vsel %vm692_vm2, %v5476_v46, -inf  ;;  %v968_v13 = vpop.xlane.xlu0 %967 }
 0x2ce   : > { %v5507_v17 = vpop.eup %4875  ;;  %v988_v16 = vmul.f32 1.442695, %v978_v6  ;;  %v720_v11 = vsub.f32 %v5338_v52, %v710_v30  ;;  %v1494_v19 = vsel %vm711_vm3, %v5500_v7, -inf  ;;  %4887 = vpow2.f32 %v986_v28 }
 0x2cf   : > { %1219 = vmax.xlane.f32.xlu1 %v1218_v26  ;;  %v1230_v60 = vsel %vm692_vm2, %v5485_v51, -inf  ;;  %v1491_v15 = vsel %vm692_vm2, %v5494_v59, -inf  ;;  %v979_v21 = vsub.f32 %v5346_v57, %v968_v13  ;;  %v736_v22 = vsel %vm692_vm2, %v5507_v17, 0.0 }
 0x2d0   : > { %4889 = vpow2.f32 %v988_v16  ;;  %v732_v24 = vmul.f32 1.442695, %v720_v11 }
 0x2d1   : > { %1477 = vmax.xlane.f32.xlu0 %v1476_v14  ;;  %v971_v2 = vpop.xlane.xlu1 %970  ;;  %v5512_v20 = vpop.eup %4877  ;;  %4891 = vpow2.f32 %v730_v43  ;;  %v990_v57 = vmul.f32 1.442695, %v979_v21 }
 0x2d2   : > { %v5517_v8 = vpop.eup %4879  ;;  %v980_v52 = vsub.f32 %v5353_v62, %v971_v2  ;;  %v739_v26 = vsel %vm692_vm2, %v5512_v20, 0.0  ;;  %v981_v62 = vsub.f32 %v5324_v36, %v5465_v27  ;;  %4893 = vpow2.f32 %v732_v24 }
 0x2d3   : > { %1480 = vmax.xlane.f32.xlu1 %v1479_v40  ;;  %v5522_v31 = vpop.eup %4881  ;;  %v996_v34 = vsel %vm692_vm2, %v5517_v8, 0.0  ;;  %4895 = vpow2.f32 %v990_v57 }
 0x2d4   : > { %v5528_v14 = vpop.eup %4883  ;;  %v992_v37 = vmul.f32 1.442695, %v980_v52  ;;  %v999_v38 = vsel %vm692_vm2, %v5522_v31, 0.0  ;;  %v994_v41 = vmul.f32 1.442695, %v981_v62 }
 0x2d5   : > { %1234 = vmax.xlane.f32.xlu0 %v1233_v47  ;;  %v742_v23 = vsel %vm692_vm2, %v5528_v14, 0.0 }
 0x2d6   : > { %v5534_v61 = vpop.eup %4885  ;;  %4897 = vpow2.f32 %v992_v37 }
 0x2d7   : > { %1489 = vmax.xlane.f32.xlu1 %v1488_v53  ;;  %v745_v36 = vsel %vm692_vm2, %v5534_v61, 0.0  ;;  %4899 = vpow2.f32 %v734_v32 }
 0x2d8   : > { %v5538_v40 = vpop.eup %4887  ;;  %4901 = vpow2.f32 %v994_v41 }
 0x2d9   : > { %1228 = vmax.xlane.f32.xlu0 %v1227_v63  ;;  %v1002_v45 = vsel %vm692_vm2, %v5538_v40, 0.0 }
 0x2da   : > { %v5542_v27 = vpop.eup %4889 }
 0x2db   : > { %1231 = vmax.xlane.f32.xlu1 %v1230_v60  ;;  %v5546_v29 = vpop.eup %4891  ;;  %v1005_v47 = vsel %vm692_vm2, %v5542_v27, 0.0 }
 0x2dc   : > { %v5550_v48 = vpop.eup %4893  ;;  %v748_v49 = vsel %vm692_vm2, %v5546_v29, 0.0 }
 0x2dd   : > { %1492 = vmax.xlane.f32.xlu0 %v1491_v15  ;;  %v5554_v54 = vpop.eup %4895  ;;  %v751_v10 = vsel %vm692_vm2, %v5550_v48, 0.0 }
 0x2de   : > { %v1008_v55 = vsel %vm692_vm2, %v5554_v54, 0.0 }
 0x2df   : > { %1495 = vmax.xlane.f32.xlu1 %v1494_v19 }
 0x2e0   : > { %v5558_v53 = vpop.eup %4897 }
 0x2e1   : > { %737 = vadd.xlane.f32.xlu0 %v736_v22  ;;  %v5562_v58 = vpop.eup %4899  ;;  %v1011_v5 = vsel %vm692_vm2, %v5558_v53, 0.0 }
 0x2e2   : > { %v5566_v30 = vpop.eup %4901  ;;  %v754_v63 = vsel %vm711_vm3, %v5562_v58, 0.0 }
 0x2e3   : > { %740 = vadd.xlane.f32.xlu1 %v739_v26  ;;  %v1014_v0 = vsel %vm711_vm3, %v5566_v30, 0.0 }
 0x2e5   : > { %997 = vadd.xlane.f32.xlu0 %v996_v34 }
 0x2e7   : > { %1000 = vadd.xlane.f32.xlu1 %v999_v38 }
 0x2e9   : > { %743 = vadd.xlane.f32.xlu0 %v742_v23 }
 0x2eb   : > { %746 = vadd.xlane.f32.xlu1 %v745_v36 }
 0x2ed   : > { %1003 = vadd.xlane.f32.xlu0 %v1002_v45 }
 0x2ef   : > { %1006 = vadd.xlane.f32.xlu1 %v1005_v47 }
 0x2f1   : > { %749 = vadd.xlane.f32.xlu0 %v748_v49 }
 0x2f3   : > { %752 = vadd.xlane.f32.xlu1 %v751_v10 }
 0x2f5   : > { %1009 = vadd.xlane.f32.xlu0 %v1008_v55 }
 0x2f7   : > { %1012 = vadd.xlane.f32.xlu1 %v1011_v5 }
 0x2f9   : > { %755 = vadd.xlane.f32.xlu0 %v754_v63 }
 0x2fb   : > { %1015 = vadd.xlane.f32.xlu1 %v1014_v0 }
 0x352   : > { %v1223_v6 = vpop.xlane.xlu0 %1222 }
 0x353   : > { %v1238_v60 = vsub.f32 %v5402_v35, %v1223_v6 }
 0x354   : > { %v1226_v28 = vpop.xlane.xlu1 %1225 }
 0x355   : > { %v1247_v9 = vmul.f32 1.442695, %v1238_v60  ;;  %v1239_v13 = vsub.f32 %v5409_v44, %v1226_v28 }
 0x356   : > { %v1484_v15 = vpop.xlane.xlu0 %1483 }
 0x357   : > { %4903 = vpow2.f32 %v1247_v9  ;;  %v1249_v16 = vmul.f32 1.442695, %v1239_v13  ;;  %v1499_v11 = vsub.f32 %v5407_v42, %v1484_v15 }
 0x358   : > { %v1487_v2 = vpop.xlane.xlu1 %1486 }
 0x359   : > { %4905 = vpow2.f32 %v1249_v16  ;;  %v1508_v19 = vmul.f32 1.442695, %v1499_v11  ;;  %v1500_v43 = vsub.f32 %v5416_v50, %v1487_v2 }
 0x35a   : > { %v1217_v21 = vpop.xlane.xlu0 %1216 }
 0x35b   : > { %4907 = vpow2.f32 %v1508_v19  ;;  %v1510_v22 = vmul.f32 1.442695, %v1500_v43  ;;  %v1236_v24 = vsub.f32 %v5423_v56, %v1217_v21  ;;  %v301_v43 = vlaneseq }
 0x35c   : > { %v1220_v35 = vpop.xlane.xlu1 %1219 }
 0x35d   : > { %4909 = vpow2.f32 %v1510_v22  ;;  %v1243_v52 = vmul.f32 1.442695, %v1236_v24  ;;  %v1237_v44 = vsub.f32 %v5430_v1, %v1220_v35  ;;  %v5618_v35 = vshrl.u32 %v301_v43, 7 }
 0x35e   : > { %v1478_v26 = vpop.xlane.xlu0 %1477 }
 0x35f   : > { %4911 = vpow2.f32 %v1243_v52  ;;  %v1245_v33 = vmul.f32 1.442695, %v1237_v44  ;;  %v1497_v42 = vsub.f32 %v5438_v18, %v1478_v26  ;;  %v305_v26 = vadd.s32 24, %v5618_v35 }
 0x360   : > { %v1481_v57 = vpop.xlane.xlu1 %1480 }
 0x361   : > { %v5579_v34 = vpop.eup %4903  ;;  %4913 = vpow2.f32 %v1245_v33  ;;  %v1504_v50 = vmul.f32 1.442695, %v1497_v42  ;;  %v1498_v62 = vsub.f32 %v5446_v25, %v1481_v57  ;;  %v5626_v33 = vadd.s32 8, %v5618_v35 }
 0x362   : > { %v1235_v37 = vpop.xlane.xlu0 %1234  ;;  %v1263_v56 = vsel %vm692_vm2, %v5579_v34, 0.0 }
 0x363   : > { %v5584_v38 = vpop.eup %4905  ;;  %4915 = vpow2.f32 %v1504_v50  ;;  %v1506_v1 = vmul.f32 1.442695, %v1498_v62  ;;  %v1242_v32 = vsub.f32 %v5457_v12, %v1235_v37  ;;  %1264 = vadd.xlane.f32.xlu0 %v1263_v56 }
 0x364   : > { %v1490_v23 = vpop.xlane.xlu1 %1489  ;;  %v1266_v18 = vsel %vm692_vm2, %v5584_v38, 0.0  ;;  %v5633_v62 = vmul.u32.u64.low 2454267026, %v5618_v35  ;;  %v5634_v37 = vmul.u32.u64.high 2454267026, %v5618_v35, %v5633_v62 }
 0x365   : > { %v5589_v41 = vpop.eup %4907  ;;  %4917 = vpow2.f32 %v1506_v1  ;;  %v1255_v36 = vmul.f32 1.442695, %v1242_v32  ;;  %v1501_v25 = vsub.f32 %v5467_v39, %v1490_v23  ;;  %1267 = vadd.xlane.f32.xlu1 %v1266_v18 }
 0x366   : > { %v1229_v45 = vpop.xlane.xlu0 %1228  ;;  %v1524_v47 = vsel %vm692_vm2, %v5589_v41, 0.0  ;;  %v5638_v1 = vmul.u32.u64.low 2454267026, %v305_v26  ;;  %v5639_v32 = vmul.u32.u64.high 2454267026, %v305_v26, %v5638_v1  ;;  %vm315_vm4 = vc.u32 %v5633_v62, 2454267026 }
 0x367   : > { %v5594_v49 = vpop.eup %4909  ;;  %4919 = vpow2.f32 %v1255_v36  ;;  %v1512_v12 = vmul.f32 1.442695, %v1501_v25  ;;  %v1240_v10 = vsub.f32 %v5476_v46, %v1229_v45  ;;  %1525 = vadd.xlane.f32.xlu0 %v1524_v47 }
 0x368   : > { %v1232_v55 = vpop.xlane.xlu1 %1231  ;;  %v1527_v5 = vsel %vm692_vm2, %v5594_v49, 0.0  ;;  %v5644_v36 = vmul.u32.u64.low 2454267026, %v5626_v33  ;;  %v5645_v25 = vmul.u32.u64.high 2454267026, %v5626_v33, %v5644_v36  ;;  %vm357_vm5 = vc.u32 %v5638_v1, 2454267026 }
 0x369   : > { %v5599_v63 = vpop.eup %4911  ;;  %4921 = vpow2.f32 %v1512_v12  ;;  %v1251_v39 = vmul.f32 1.442695, %v1240_v10  ;;  %v1241_v0 = vsub.f32 %v5485_v51, %v1232_v55  ;;  %1528 = vadd.xlane.f32.xlu1 %v1527_v5  ;;  %v316_v10 = vsel %vm315_vm4, 1, %v7887_v3 }
 0x36a   : > { %v1493_v6 = vpop.xlane.xlu0 %1492  ;;  %v1257_v60 = vsel %vm692_vm2, %v5599_v63, 0.0  ;;  %v358_v55 = vsel %vm357_vm5, 1, %v7887_v3  ;;  %vm329_vm6 = vc.u32 %v5644_v36, 2454267026  ;;  %vm1686_vm4 = vcmask 1046528  }
 0x36b   : > { %v5604_v28 = vpop.eup %4913  ;;  %4923 = vpow2.f32 %v1251_v39  ;;  %v1253_v46 = vmul.f32 1.442695, %v1241_v0  ;;  %v1502_v9 = vsub.f32 %v5494_v59, %v1493_v6  ;;  %1258 = vadd.xlane.f32.xlu0 %v1257_v60  ;;  %v359_v39 = vadd.s32 %v5639_v32, %v358_v55 }
 0x36c   : > { %8016 = vst [vmem:[#allocation7_spill] sm:$0xff] %v5604_v28  ;;  %v1496_v13 = vpop.xlane.xlu1 %1495  ;;  %v1260_v15 = vsel %vm692_vm2, %v5604_v28, 0.0 }
 0x36d   : > { %v5609_v16 = vpop.eup %4915  ;;  %4925 = vpow2.f32 %v1253_v46  ;;  %v1514_v51 = vmul.f32 1.442695, %v1502_v9  ;;  %v1503_v11 = vsub.f32 %v5500_v7, %v1496_v13  ;;  %1261 = vadd.xlane.f32.xlu1 %v1260_v15  ;;  %v330_v46 = vsel %vm329_vm6, 1, %v7887_v3 }
 0x36e   : > { %8017 = vst [vmem:[#allocation8_spill] sm:$0xff] %v5609_v16  ;;  %v738_v2 = vpop.xlane.xlu0 %737  ;;  %v1518_v19 = vsel %vm692_vm2, %v5609_v16, 0.0  ;;  %v317_v15 = vadd.s32 %v5634_v37, %v316_v10 }
 0x36f   : > { %v5614_v21 = vpop.eup %4917  ;;  %4927 = vpow2.f32 %v1514_v51  ;;  %v1516_v59 = vmul.f32 1.442695, %v1503_v11  ;;  %1519 = vadd.xlane.f32.xlu0 %v1518_v19  ;;  %v360_v51 = vshrl.u32 %v359_v39, 2  ;;  %v5692_v39 = vadd.s32 32, %v5618_v35 }
 0x370   : > { %8018 = vst [vmem:[#allocation9_spill] sm:$0xff] %v5614_v21  ;;  %4929 = vrcp.f32 %v738_v2  ;;  %v741_v22 = vpop.xlane.xlu1 %740  ;;  %v1521_v24 = vsel %vm692_vm2, %v5614_v21, 0.0 }
 0x371   : > { %v5620_v52 = vpop.eup %4919  ;;  %4931 = vpow2.f32 %v1516_v59  ;;  %1522 = vadd.xlane.f32.xlu1 %v1521_v24 }
 0x372   : > { %8019 = vst [vmem:[#allocation10_spill] sm:$0xff] %v5620_v52  ;;  %4933 = vrcp.f32 %v741_v22  ;;  %v998_v7 = vpop.xlane.xlu0 %997  ;;  %v1275_v44 = vsel %vm711_vm3, %v5620_v52, 0.0  ;;  %v361_v22 = vmul.u32 7, %v360_v51 }
 0x373   : > { %v5628_v42 = vpop.eup %4921  ;;  %4935 = vrcp.f32 %v998_v7  ;;  %1276 = vadd.xlane.f32.xlu0 %v1275_v44  ;;  %v5669_v44 = vpop.f32.mrb[32].mxu1 }
 0x374   : > { %8020 = vst [vmem:[#allocation11_spill] sm:$0xff] %v5628_v42  ;;  %v1001_v57 = vpop.xlane.xlu1 %1000  ;;  %v1530_v50 = vsel %vm692_vm2, %v5628_v42, 0.0  ;;  %v5672_v62 = vpop.f32.mrb[33].mxu1  ;;  %v362_v37 = vsub.s32 %v305_v26, %v361_v22  ;;  %v7889_v55 = vrot.slane %v5669_v44, 1 }
 0x375   : > { %v5636_v56 = vpop.eup %4923  ;;  %4937 = vrcp.f32 %v1001_v57  ;;  %1531 = vadd.xlane.f32.xlu1 %v1530_v50  ;;  %v318_v50 = vshrl.u32 %v317_v15, 2  ;;  %v5676_v32 = vpop.f32.mrb[34].mxu1 }
 0x376   : > { %8021 = vst [vmem:[#allocation12_spill] sm:$0xff] %v5636_v56  ;;  %v744_v23 = vpop.xlane.xlu0 %743  ;;  %v1269_v18 = vsel %vm692_vm2, %v5636_v56, 0.0  ;;  %vm410_vm7 = vcmp.ne.s32.totalorder %v362_v37, 0  ;;  %vm417_vm8 = vcmp.lt.s32.totalorder %v362_v37, 0  ;;  %v431_v26 = vadd.s32 7, %v362_v37 }
 0x377   : > { %v5647_v45 = vpop.eup %4925  ;;  %4939 = vrcp.f32 %v744_v23  ;;  %1270 = vadd.xlane.f32.xlu0 %v1269_v18  ;;  %v5678_v18 = vpop.f32.mrb[35].mxu1  ;;  %v319_v10 = vmul.u32 7, %v318_v50  ;;  %vm5687_vm9 = vmand %vm417_vm8, %vm410_vm7 }
 0x378   : > { %8022 = vst [vmem:[#allocation13_spill] sm:$0xff] %v5647_v45  ;;  %v747_v47 = vpop.xlane.xlu1 %746  ;;  %v1272_v12 = vsel %vm692_vm2, %v5647_v45, 0.0 }
 0x379   : > { %v5653_v5 = vpop.eup %4927  ;;  %4941 = vrcp.f32 %v747_v47  ;;  %1273 = vadd.xlane.f32.xlu1 %v1272_v12  ;;  %v5682_v47 = vpop.f32.mrb[36].mxu1  ;;  %v320_v22 = vsub.s32 %v5618_v35, %v319_v10 }
 0x37a   : > { %8023 = vst [vmem:[#allocation14_spill] sm:$0xff] %v5653_v5  ;;  %v4930_v0 = vpop.eup %4929  ;;  %v1004_v6 = vpop.xlane.xlu0 %1003  ;;  %v1533_v60 = vsel %vm692_vm2, %v5653_v5, 0.0  ;;  %v5929_v5 = vsub.s32 5, %v5618_v35 }
 0x37b   : > { %v5659_v9 = vpop.eup %4931  ;;  %v764_v13 = vmul.f32 %v4930_v0, %v5507_v17  ;;  %4943 = vrcp.f32 %v1004_v6  ;;  %1534 = vadd.xlane.f32.xlu0 %v1533_v60  ;;  %v331_v17 = vadd.s32 %v5645_v25, %v330_v46  ;;  %v5694_v0 = vpop.f32.mrb[37].mxu1  ;;  %v5701_v60 = vld [vmem:[%s7881_s4] sm:$0xff]  ;;  %v7891_v46 = vrot.slane %v5669_v44, 7 }
 0x37c   : > { %8024 = vst [vmem:[#allocation15_spill] sm:$0xff] %v5659_v9  ;;  %v4934_v11 = vpop.eup %4933  ;;  %v1007_v2 = vpop.xlane.xlu1 %1006  ;;  %v1536_v19 = vsel %vm711_vm3, %v5659_v9, 0.0  ;;  %vm407_vm11 = vcmp.ne.s32.totalorder %v320_v22, 0  ;;  %vm414_vm12 = vcmp.lt.s32.totalorder %v320_v22, 0  ;;  %v5921_v9 = vsub.s32 3, %v5618_v35  ;;  %8045 = vst [vmem:[#allocation29_spill] sm:$0xff] %v5929_v5 }
 0x37d   : > { %v4936_v43 = vpop.eup %4935  ;;  %771 = vst.msk [vmem:[#allocation2] sm:$0xff] %vm692_vm2, %v764_v13  ;;  %v765_v59 = vmul.f32 %v4934_v11, %v5512_v20  ;;  %4945 = vrcp.f32 %v1007_v2  ;;  %1537 = vadd.xlane.f32.xlu1 %v1536_v19  ;;  %v4616_v13 = vpop.f32.mrb[38].mxu1  ;;  %v5712_v19 = vsel %vm5687_vm9, %v431_v26, %v362_v37  ;;  %v5731_v37 = vsub.s32 0, %v5618_v35  ;;  %vm421_vm5 = vmand %vm414_vm12, %vm407_vm11 }
 0x37e   : > { %v1024_v24 = vmul.f32 %v4936_v43, %v5517_v8  ;;  %v750_v7 = vpop.xlane.xlu0 %749  ;;  %v332_v8 = vshrl.u32 %v331_v17, 2  ;;  %v1664_v43 = vrot.slane %v5676_v32, 7  ;;  %vm445_vm10 = vcmp.ne.s32.totalorder %v5712_v19, 0  ;;  %8042 = vst [vmem:[#allocation27_spill] sm:$0xff] %v5921_v9 }
 0x37f   : > { %v4938_v57 = vpop.eup %4937  ;;  %772 = vst.msk [vmem:[#allocation2 + $0x8] sm:$0xff] %vm692_vm2, %v765_v59  ;;  %4947 = vrcp.f32 %v750_v7  ;;  %v5720_v7 = vpop.f32.mrb[39].mxu1  ;;  %8028 = vst [vmem:[#allocation17_spill] sm:$0xff] %v5731_v37  ;;  %v5746_v26 = vrot.slane %v5701_v60, %v5731_v37 }
 0x380   : > { %1032 = vst.msk [vmem:[#allocation2 + $0x38] sm:$0xff] %vm692_vm2, %v1024_v24  ;;  %v1025_v20 = vmul.f32 %v4938_v57, %v5522_v31  ;;  %v753_v1 = vpop.xlane.xlu1 %752  ;;  %v5685_v31 = vsub.s32 1, %v5618_v35  ;;  %v333_v11 = vmul.u32 7, %v332_v8  ;;  %v1665_v50 = vsel %vm535_vm0, %v7891_v46, %v1664_v43 }
 0x381   : > { %v4940_v23 = vpop.eup %4939  ;;  %4949 = vrcp.f32 %v753_v1  ;;  %v5717_v17 = vmul.u32.u64.low 2454267026, %v5692_v39  ;;  %v5718_v24 = vmul.u32.u64.high 2454267026, %v5692_v39, %v5717_v17  ;;  %v1659_v1 = vrot.slane %v5672_v62, 7 }
 0x382   : > { %1033 = vst.msk [vmem:[#allocation2 + $0x40] sm:$0xff] %vm692_vm2, %v1025_v20  ;;  %v766_v36 = vmul.f32 %v4940_v23, %v5528_v14  ;;  %v1010_v25 = vpop.xlane.xlu0 %1009  ;;  %8025 = vst [vmem:[#allocation16_spill] sm:$0xff] %v5685_v31  ;;  %v5706_v51 = vrot.slane %v5701_v60, %v5685_v31  ;;  %v7892_v23 = vmov 0.0  }
 0x383   : > { %v4942_v12 = vpop.eup %4941  ;;  %4951 = vrcp.f32 %v1010_v25  ;;  %v5735_v8 = vsel %vm445_vm10, 1.0, %v7892_v23  ;;  %vm371_vm7 = vc.u32 %v5717_v17, 2454267026 }
 0x384   : > { %773 = vst.msk [vmem:[#allocation2 + $0x10] sm:$0xff] %vm692_vm2, %v766_v36  ;;  %v767_v14 = vmul.f32 %v4942_v12, %v5534_v61  ;;  %v1013_v6 = vpop.xlane.xlu1 %1012  ;;  %8029 = vst [vmem:[#allocation18_spill] sm:$0xff] %v5735_v8  ;;  %v5742_v25 = vmul.f32 %v5735_v8, %v1665_v50  ;;  %v334_v12 = vsub.s32 %v5626_v33, %v333_v11  ;;  %v7886_v11 = vrot.slane %v5678_v18, 1 }
 0x385   : > { %v4944_v15 = vpop.eup %4943  ;;  %4953 = vrcp.f32 %v1013_v6 }
 0x386   : > { %774 = vst.msk [vmem:[#allocation2 + $0x18] sm:$0xff] %vm692_vm2, %v767_v14  ;;  %v1026_v61 = vmul.f32 %v4944_v15, %v5538_v40  ;;  %v756_v2 = vpop.xlane.xlu0 %755  ;;  %v7890_v14 = vrot.slane %v5678_v18, 7  ;;  %v1725_v6 = vmul.f32 %v5746_v26, %v5742_v25  ;;  %vm408_vm13 = vcmp.ne.s32.totalorder %v334_v12, 0 }
 0x387   : > { %v4946_v59 = vpop.eup %4945  ;;  %4955 = vrcp.f32 %v756_v2  ;;  %vm415_vm14 = vcmp.lt.s32.totalorder %v334_v12, 0  ;;  %v429_v15 = vadd.s32 7, %v334_v12 }
 0x388   : > { %1034 = vst.msk [vmem:[#allocation2 + $0x48] sm:$0xff] %vm692_vm2, %v1026_v61  ;;  %v1027_v40 = vmul.f32 %v4946_v59, %v5542_v27  ;;  %v1016_v57 = vpop.xlane.xlu1 %1015  ;;  %v1735_v27 = vmul.f32 %v5676_v32, %v5706_v51  ;;  %vm422_vm15 = vmand %vm415_vm14, %vm408_vm13  ;;  %v1661_v33 = vsel %vm535_vm0, %v1659_v1, %v7890_v14  ;;  %v428_v59 = vadd.s32 7, %v320_v22 }
 0x389   : > { %v4948_v20 = vpop.eup %4947  ;;  %4957 = vrcp.f32 %v1016_v57  ;;  %v5772_v57 = vsel %vm1686_vm4, %v7886_v11, %v7889_v55  ;;  %v304_v55 = vadd.s32 16, %v5618_v35  ;;  %vm466_vm14 = vcmp.ne.s32.totalorder %v5712_v19, 6 }
 0x38a   : > { %1035 = vst.msk [vmem:[#allocation2 + $0x50] sm:$0xff] %vm692_vm2, %v1027_v40  ;;  %v768_v36 = vmul.f32 %v4948_v20, %v5546_v29  ;;  %v5763_v61 = vadd.f32 %v1735_v27, %v1725_v6  ;;  %v5765_v40 = vsel %vm422_vm15, %v429_v15, %v334_v12  ;;  %v1733_v12 = vmul.f32 %v5706_v51, %v5678_v18 }
 0x38b   : > { %v4950_v10 = vpop.eup %4949  ;;  %vm443_vm6 = vcmp.ne.s32.totalorder %v5765_v40, 0  ;;  %v1666_v6 = vrot.slane %v5694_v0, 7  ;;  %vm464_vm12 = vcmp.ne.s32.totalorder %v5765_v40, 6 }
 0x38c   : > { %775 = vst.msk [vmem:[#allocation2 + $0x20] sm:$0xff] %vm692_vm2, %v768_v36  ;;  %v769_v29 = vmul.f32 %v4950_v10, %v5550_v48  ;;  %v5780_v20 = vsel %vm443_vm6, 1.0, %v7892_v23  ;;  %v5789_v10 = vsel %vm421_vm5, %v428_v59, %v320_v22  ;;  %v7885_v22 = vrot.slane %v5720_v7, 7 }
 0x38d   : > { %v4952_v13 = vpop.eup %4951  ;;  %8030 = vst [vmem:[#allocation19_spill] sm:$0xff] %v5780_v20  ;;  %v5785_v36 = vmul.f32 %v5780_v20, %v1661_v33  ;;  %v1667_v17 = vsel %vm535_vm0, %v1664_v43, %v1666_v6  ;;  %vm442_vm8 = vcmp.ne.s32.totalorder %v5789_v10, 0  ;;  %v2027_v43 = vpack.c.bf16 %v5676_v32, %v5669_v44 }
 0x38e   : > { %776 = vst.msk [vmem:[#allocation2 + $0x28] sm:$0xff] %vm692_vm2, %v769_v29  ;;  %v1028_v48 = vmul.f32 %v4952_v13, %v5554_v54  ;;  %v372_v29 = vsel %vm371_vm7, 1, %v7887_v3  ;;  %v2028_v59 = vpack.c.bf16 %v5720_v7, %v5694_v0  ;;  %v1736_v3 = vmul.f32 %v5706_v51, %v5694_v0 }
 0x38f   : > { %v4954_v2 = vpop.eup %4953  ;;  %v373_v15 = vadd.s32 %v5718_v24, %v372_v29  ;;  %v5814_v24 = vsel %vm535_vm0, %v1666_v6, %v7885_v22  ;;  %v5871_v22 = vsel %vm464_vm12, 1.0, %v7892_v23  ;;  %v8039_v20 = vrot.slane %v5669_v44, 1 }
 0x390   : > { %1036 = vst.msk [vmem:[#allocation2 + $0x58] sm:$0xff] %vm692_vm2, %v1028_v48  ;;  %v1029_v50 = vmul.f32 %v4954_v2, %v5558_v53  ;;  %v5809_v2 = vsub.s32 7, %v5618_v35  ;;  %8035 = vst [vmem:[#allocation24_spill] sm:$0xff] %v5871_v22  ;;  %v5909_v19 = vmul.f32 %v5871_v22, %v5772_v57  ;;  %v8043_v57 = vmov 0.0  }
 0x391   : > { %v4956_v54 = vpop.eup %4955  ;;  %v374_v48 = vshrl.u32 %v373_v15, 2  ;;  %v1692_v15 = vrot.slane %v5676_v32, 1  ;;  %v5926_v22 = vsel %vm466_vm14, 1.0, %v8043_v57  ;;  %vm463_vm5 = vcmp.ne.s32.totalorder %v5789_v10, 6 }
 0x392   : > { %1037 = vst.msk [vmem:[#allocation2 + $0x60] sm:$0xff] %vm692_vm2, %v1029_v50  ;;  %v770_v27 = vmul.f32 %v4956_v54, %v5562_v58  ;;  %v1723_v58 = vmul.f32 %v5746_v26, %v5785_v36  ;;  %8031 = vst [vmem:[#allocation20_spill] sm:$0xff] %v5809_v2  ;;  %v5821_v54 = vsel %vm442_vm8, 1.0, %v7892_v23  ;;  %v5831_v29 = vrot.slane %v5701_v60, %v5809_v2 }
 0x393   : > { %v4958_v53 = vpop.eup %4957  ;;  %v375_v50 = vmul.u32 7, %v374_v48  ;;  %8032 = vst [vmem:[#allocation21_spill] sm:$0xff] %v5821_v54  ;;  %v5905_v8 = vsel %vm1686_vm4, %v8039_v20, %v1692_v15  ;;  %v5918_v2 = vsub.s32 2, %v5618_v35  ;;  %8044 = vst [vmem:[#allocation28_spill] sm:$0xff] %v5926_v22  ;;  %v8049_v10 = vrot.slane %v5678_v18, 1 }
 0x394   : > { %777 = vst.msk [vmem:[#allocation2 + $0x30] sm:$0x1] %vm711_vm3, %v770_v27  ;;  %v1030_v13 = vmul.f32 %v4958_v53, %v5566_v30  ;;  %v5804_v33 = vadd.f32 %v1733_v12, %v1723_v58  ;;  %v2026_v30 = vpack.c.bf16 %v5678_v18, %v5672_v62  ;;  %v1677_v27 = vsel %vm535_vm0, 0.0, %v1659_v1 }
 0x395   : > { %v2029_v12 = vpack.c.bf16 %v5682_v47, %v5682_v47  ;;  %v376_v53 = vsub.s32 %v5692_v39, %v375_v50  ;;  %v5838_v58 = vmul.f32 %v5821_v54, %v1677_v27  ;;  %v1687_v1 = vrot.slane %v5672_v62, 1  ;;  %8041 = vst [vmem:[#allocation26_spill] sm:$0xff] %v5918_v2 }
 0x396   : > { %1038 = vst.msk [vmem:[#allocation2 + $0x68] sm:$0x1] %vm711_vm3, %v1030_v13  ;;  %4617 = vmatprep.subr.bf16.mxu1 %v2026_v30  ;;  %v5835_v13 = vmul.f32 %v5669_v44, %v5706_v51  ;;  %v5844_v39 = vsub.s32 4, %v5618_v35  ;;  %v5851_v50 = vmul.f32 %v5669_v44, %v5831_v29  ;;  %v1732_v27 = vmul.f32 %v5706_v51, %v5672_v62 }
 0x397   : > { %4618 = vmatpush3.bf16.msra.mxu1 %v2026_v30  ;;  %vm411_vm9 = vcmp.ne.s32.totalorder %v376_v53, 0  ;;  %vm418_vm10 = vcmp.lt.s32.totalorder %v376_v53, 0  ;;  %v432_v6 = vadd.s32 7, %v376_v53  ;;  %v2043_v30 = vand.u32 %v2029_v12, %v5100_v4 }
 0x398   : > { %4619 = vmatprep.subr.bf16.mxu1 %v2027_v43  ;;  %vm425_vm11 = vmand %vm418_vm10, %vm411_vm9  ;;  %8033 = vst [vmem:[#allocation22_spill] sm:$0xff] %v5844_v39  ;;  %v1864_v40 = vmul.f32 %v5676_v32, %v5831_v29  ;;  %v5882_v46 = vrot.slane %v5701_v60, %v5844_v39  ;;  %v5933_v45 = vmul.f32 %v5831_v29, %v5694_v0 }
 0x399   : > { %v5846_v48 = vsel %vm425_vm11, %v432_v6, %v376_v53  ;;  %v5864_v53 = vmul.f32 %v5831_v29, %v5678_v18 }
 0x39a   : > { %vm446_vm13 = vcmp.ne.s32.totalorder %v5846_v48, 0  ;;  %v1807_v21 = vmul.f32 %v5882_v46, %v5672_v62  ;;  %vm467_vm9 = vcmp.ne.s32.totalorder %v5846_v48, 6 }
 0x39b   : > { %4620 = vmatpush3.bf16.msra.mxu1 %v2027_v43  ;;  %v5857_v43 = vmul.f32 %v5831_v29, %v5672_v62  ;;  %v5867_v12 = vsel %vm446_vm13, 1.0, %v7892_v23  ;;  %v5887_v23 = vld [vmem:[%s7880_s3 + $0x14] sm:$0xff]  }
 0x39c   : > { %4621 = vmatprep.subr.bf16.mxu1 %v2028_v59  ;;  %8034 = vst [vmem:[#allocation23_spill] sm:$0xff] %v5867_v12  ;;  %v5874_v11 = vmul.f32 %v5867_v12, %v1667_v17  ;;  %8036 = vst [vmem:[#allocation25_spill] sm:$0xff] %v5887_v23  ;;  %v8037_v17 = vrot.slane %v5669_v44, 7  ;;  %v5899_v12 = vmul.u32.u64.low 2454267026, %v304_v55  ;;  %v5900_v54 = vmul.u32.u64.high 2454267026, %v304_v55, %v5899_v12 }
 0x39e   : > { %v1726_v14 = vmul.f32 %v5746_v26, %v5874_v11  ;;  %vm343_vm15 = vc.u32 %v5899_v12, 2454267026  ;;  %v5948_v12 = vsub.s32 6, %v5618_v35 }
 0x39f   : > { %4622 = vmatpush3.bf16.msra.mxu1 %v2028_v59  ;;  %v8038_v59 = vrot.slane %v5678_v18, 7 }
 0x3a0   : > { %4623 = vmatprep.subr.bf16.mxu1 %v2043_v30  ;;  %v5923_v20 = vadd.f32 %v1736_v3, %v1726_v14  ;;  %v5940_v3 = vrot.slane %v5701_v60, %v5918_v2  ;;  %8047 = vst [vmem:[#allocation30_spill] sm:$0xff] %v5948_v12  ;;  %v5960_v2 = vmul.f32 %v5669_v44, %v5882_v46 }
 0x3a1   : > { %v5895_v6 = vsel %vm535_vm0, %v8038_v59, %v8037_v17  ;;  %v1652_v17 = vld [vmem:[%s7881_s4 + $0x8] sm:$0x3]  ;;  %v8040_v59 = vrot.slane %v5694_v0, 1 }
 0x3a2   : > { %v5951_v42 = vrot.slane %v1652_v17, %v5731_v37 }
 0x3a3   : > { %v1695_v39 = vsel %vm1686_vm4, %v1692_v15, %v8040_v59  ;;  %4624 = vmatpush3.bf16.msra.mxu1 %v2043_v30  ;;  %v8046_v59 = vmov 0   ;;  %v5945_v30 = vrot.slane %v5701_v60, %v5921_v9  ;;  %v5969_v9 = vrot.slane %v5701_v60, %v5948_v12 }
 0x3a4   : > { %4643 = vmatprep.subr.bf16.mxu1 %v5887_v23  ;;  %v344_v56 = vsel %vm343_vm15, 1, %v8046_v59  ;;  %v5954_v15 = vmul.f32 %v5926_v22, %v1695_v39  ;;  %v1749_v23 = vmul.f32 %v5940_v3, %v5909_v19  ;;  %v5972_v39 = vsel %vm463_vm5, 1.0, %v8043_v57 }
 0x3a5   : > { %v345_v14 = vadd.s32 %v5900_v54, %v344_v56  ;;  %v5965_v54 = vrot.slane %v5701_v60, %v5929_v5  ;;  %8048 = vst [vmem:[#allocation31_spill] sm:$0xff] %v5972_v39  ;;  %v1722_v5 = vmul.f32 %v5746_v26, %v5838_v58  ;;  %v1853_v60 = vmul.f32 %v5969_v9, %v5742_v25 }
 0x3a6   : > { %v5975_v22 = vadd.f32 %v1749_v23, %v5804_v33  ;;  %v1882_v44 = vmul.f32 %v5951_v42, %v5954_v15  ;;  %v1796_v23 = vmul.f32 %v5945_v30, %v5838_v58  ;;  %v5990_v33 = vrot.slane %v1652_v17, %v5685_v31 }
 0x3a7   : > { %v346_v56 = vshrl.u32 %v345_v14, 2  ;;  %v1689_v14 = vsel %vm1686_vm4, %v1687_v1, %v8049_v10  ;;  %v1738_v52 = vadd.f32 %v1732_v27, %v1722_v5  ;;  %v1850_v1 = vmul.f32 %v5969_v9, %v5838_v58 }
 0x3a8   : > { %v1706_v12 = vmul.f32 %v5972_v39, %v1689_v14  ;;  %v1814_v14 = vadd.f32 %v1807_v21, %v1796_v23  ;;  %v1851_v39 = vmul.f32 %v5969_v9, %v5785_v36  ;;  %v1880_v21 = vmul.f32 %v5951_v42, %v5909_v19 }
 0x3a9   : > { %v347_v37 = vmul.u32 7, %v346_v56  ;;  %v1871_v56 = vadd.f32 %v1864_v40, %v1853_v60  ;;  %v1868_v17 = vadd.f32 %v5857_v43, %v1850_v1  ;;  %v1767_v60 = vrot.slane %v5975_v22, 1 }
 0x3aa   : > { %v1748_v16 = vmul.f32 %v5940_v3, %v1706_v12  ;;  %v1825_v28 = vmul.f32 %v5965_v54, %v1706_v12  ;;  %v1879_v5 = vmul.f32 %v5951_v42, %v1706_v12  ;;  %v1869_v58 = vadd.f32 %v5864_v53, %v1851_v39 }
 0x3ab   : > { %v348_v10 = vsub.s32 %v304_v55, %v347_v37  ;;  %v6002_v27 = vadd.f32 %v1882_v44, %v1871_v56  ;;  %v8054_v56 = vrot.slane %v5694_v0, 1 }
 0x3ac   : > { %v1754_v37 = vadd.f32 %v1748_v16, %v1738_v52  ;;  %v1832_v55 = vadd.f32 %v1825_v28, %v1814_v14  ;;  %v1886_v23 = vadd.f32 %v1879_v5, %v1868_v17  ;;  %v1887_v12 = vadd.f32 %v1880_v21, %v1869_v58 }
 0x3ad   : > { %vm409_vm6 = vcmp.ne.s32.totalorder %v348_v10, 0  ;;  %vm416_vm7 = vcmp.lt.s32.totalorder %v348_v10, 0  ;;  %v430_v62 = vadd.s32 7, %v348_v10  ;;  %v6016_v52 = vsel %vm467_vm9, 1.0, %v8043_v57 }
 0x3ae   : > { %vm423_vm8 = vmand %vm416_vm7, %vm409_vm6  ;;  %v1766_v43 = vrot.slane %v1754_v37, 1  ;;  %v1900_v16 = vrot.slane %v1886_v23, 7  ;;  %8052 = vst [vmem:[#allocation34_spill] sm:$0xff] %v6016_v52  ;;  %v1901_v39 = vrot.slane %v1887_v12, 7  ;;  %v1751_v17 = vmul.f32 %v5940_v3, %v5954_v15 }
 0x3af   : > { %v437_v40 = vsel %vm423_vm8, %v430_v62, %v348_v10  ;;  %v8053_v10 = vrot.slane %v5720_v7, 1 }
 0x3b0   : > { %vm444_vm10 = vcmp.ne.s32.totalorder %v437_v40, 0  ;;  %vm465_vm11 = vcmp.ne.s32.totalorder %v437_v40, 6  ;;  %v1784_v53 = vsel %vm1686_vm4, 0.0, %v1766_v43  ;;  %v1902_v23 = vsel %vm535_vm0, %v1900_v16, %v1901_v39 }
 0x3b1   : > { %v6010_v44 = vsel %vm444_vm10, 1.0, %v8043_v57  ;;  %v6013_v28 = vsel %vm465_vm11, 1.0, %v8043_v57  ;;  %v1785_v1 = vadd.f32 %v1784_v53, %v5990_v33  ;;  %v1697_v14 = vsel %vm1686_vm4, %v8054_v56, %v8053_v10 }
 0x3b2   : > { %8050 = vst [vmem:[#allocation32_spill] sm:$0xff] %v6010_v44  ;;  %8051 = vst [vmem:[#allocation33_spill] sm:$0xff] %v6013_v28  ;;  %v1680_v22 = vmul.f32 %v6010_v44, %v5895_v6  ;;  %v1708_v48 = vmul.f32 %v6013_v28, %v5905_v8  ;;  %v1799_v6 = vmul.f32 %v5945_v30, %v5742_v25 }
 0x3b3   : > { %v1839_v40 = vadd.f32 %v1832_v55, %v1785_v1  ;;  %v1710_v25 = vmul.f32 %v6016_v52, %v1697_v14  ;;  %v6044_v10 = vadd.f32 %v1751_v17, %v5763_v61  ;;  %v1828_v55 = vmul.f32 %v5965_v54, %v5954_v15 }
 0x3b4   : > { %v1724_v5 = vmul.f32 %v5746_v26, %v1680_v22  ;;  %v1750_v8 = vmul.f32 %v5940_v3, %v1708_v48  ;;  %v1798_v62 = vmul.f32 %v5945_v30, %v1680_v22  ;;  %v1827_v37 = vmul.f32 %v5965_v54, %v1708_v48 }
 0x3b5   : > { %v1852_v58 = vmul.f32 %v5969_v9, %v1680_v22  ;;  %v1881_v21 = vmul.f32 %v5951_v42, %v1708_v48  ;;  %v6047_v28 = vadd.f32 %v1902_v23, %v1839_v40  ;;  %v1810_v22 = vmul.f32 %v5676_v32, %v5882_v46 }
 0x3b6   : > { %v1740_v12 = vadd.f32 %v5835_v13, %v1724_v5  ;;  %v1816_v53 = vadd.f32 %v5960_v2, %v1798_v62  ;;  %v1905_v13 = vrot.slane %v6002_v27, 7  ;;  %v1771_v2 = vrot.slane %v6044_v10, 1 }
 0x3b7   : > { %v1870_v56 = vadd.f32 %v5851_v50, %v1852_v58  ;;  %8055 = vst [vmem:[#allocation35_spill] sm:$0xff] %v6047_v28  ;;  %v1817_v14 = vadd.f32 %v1810_v22, %v1799_v6  ;;  %v1854_v61 = vmul.f32 %v5969_v9, %v5874_v11  ;;  %v1883_v50 = vmul.f32 %v5951_v42, %v1710_v25 }
 0x3b8   : > { %v1756_v16 = vadd.f32 %v1750_v8, %v1740_v12  ;;  %v1834_v48 = vadd.f32 %v1827_v37, %v1816_v53  ;;  %v1768_v5 = vsel %vm1686_vm4, %v1766_v43, %v1767_v60  ;;  %v1797_v32 = vmul.f32 %v5945_v30, %v5785_v36 }
 0x3b9   : > { %v1888_v1 = vadd.f32 %v1881_v21, %v1870_v56  ;;  %v1808_v15 = vmul.f32 %v5882_v46, %v5678_v18  ;;  %v1835_v27 = vadd.f32 %v1828_v55, %v1817_v14  ;;  %v1872_v62 = vadd.f32 %v5933_v45, %v1854_v61 }
 0x3ba   : > { %v1769_v17 = vrot.slane %v1756_v16, 1  ;;  %v1786_v6 = vadd.f32 %v1768_v5, %v5990_v33  ;;  %v1826_v43 = vmul.f32 %v5965_v54, %v5909_v19  ;;  %v307_v53 = vadd.s32 40, %v5618_v35 }
 0x3bb   : > { %v1903_v8 = vrot.slane %v1888_v1, 7  ;;  %v1815_v21 = vadd.f32 %v1808_v15, %v1797_v32  ;;  %v6072_v23 = vadd.f32 %v1883_v50, %v1872_v62  ;;  %v8056_v19 = vrot.slane %v5682_v47, 1 }
 0x3bc   : > { %v1770_v37 = vsel %vm1686_vm4, %v1767_v60, %v1769_v17  ;;  %v1772_v58 = vsel %vm1686_vm4, %v1769_v17, %v1771_v2  ;;  %v308_v60 = vadd.s32 48, %v5618_v35  ;;  %v8057_v55 = vrot.slane %v5720_v7, 1 }
 0x3bd   : > { %v1787_v40 = vadd.f32 %v1770_v37, %v5990_v33  ;;  %v1906_v36 = vsel %vm535_vm0, %v1903_v8, %v1905_v13  ;;  %v1788_v18 = vadd.f32 %v1772_v58, %v5990_v33  ;;  %v1833_v12 = vadd.f32 %v1826_v43, %v1815_v21 }
 0x3be   : > { %v1904_v45 = vsel %vm535_vm0, %v1901_v39, %v1903_v8  ;;  %v1907_v22 = vrot.slane %v6072_v23, 7  ;;  %v1699_v16 = vsel %vm1686_vm4, %v8057_v55, %v8056_v19  ;;  %v1752_v32 = vmul.f32 %v5940_v3, %v1710_v25 }
 0x3bf   : > { %v1841_v10 = vadd.f32 %v1834_v48, %v1787_v40  ;;  %v1842_v56 = vadd.f32 %v1835_v27, %v1788_v18  ;;  %v1840_v1 = vadd.f32 %v1833_v12, %v1786_v6  ;;  %v1800_v8 = vmul.f32 %v5945_v30, %v5874_v11 }
 0x3c0   : > { %v6083_v14 = vmul.u32.u64.low 2454267026, %v307_v53  ;;  %v6084_v61 = vmul.u32.u64.high 2454267026, %v307_v53, %v6083_v14  ;;  %v1908_v35 = vsel %vm535_vm0, %v1905_v13, %v1907_v22  ;;  %v1811_v27 = vmul.f32 %v5882_v46, %v5694_v0 }
 0x3c1   : > { %v6086_v50 = vadd.f32 %v1906_v36, %v1841_v10  ;;  %v6091_v39 = vmul.u32.u64.low 2454267026, %v308_v60  ;;  %v6092_v48 = vmul.u32.u64.high 2454267026, %v308_v60, %v6091_v39  ;;  %v6094_v17 = vadd.f32 %v1908_v35, %v1842_v56 }
 0x3c2   : > { %v6096_v5 = vadd.f32 %v1904_v45, %v1840_v1  ;;  %vm385_vm12 = vc.u32 %v6083_v14, 2454267026  ;;  %v6107_v6 = vadd.f32 %v1752_v32, %v5923_v20  ;;  %v1829_v37 = vmul.f32 %v5965_v54, %v1710_v25 }
 0x3c3   : > { %8058 = vst [vmem:[#allocation36_spill] sm:$0xff] %v6086_v50  ;;  %8059 = vst [vmem:[#allocation37_spill] sm:$0xff] %v6094_v17  ;;  %v386_v15 = vsel %vm385_vm12, 1, %v8046_v59  ;;  %vm399_vm13 = vc.u32 %v6091_v39, 2454267026  ;;  %v1818_v21 = vadd.f32 %v1811_v27, %v1800_v8  ;;  %v1867_v19 = vmul.f32 %v5682_v47, %v5831_v29 }
 0x3c4   : > { %8060 = vst [vmem:[#allocation38_spill] sm:$0xff] %v6096_v5  ;;  %v387_v13 = vadd.s32 %v6084_v61, %v386_v15  ;;  %v400_v62 = vsel %vm399_vm13, 1, %v8046_v59  ;;  %v1773_v40 = vrot.slane %v6107_v6, 1  ;;  %v1866_v55 = vmul.f32 %v5831_v29, %v5720_v7  ;;  %v6178_v6 = vld [vmem:[#allocation2 + $0x8] sm:$0xff] }
 0x3c5   : > { %v401_v58 = vadd.s32 %v6092_v48, %v400_v62  ;;  %v1836_v11 = vadd.f32 %v1829_v37, %v1818_v21  ;;  %v8064_v48 = vrot.slane %v5720_v7, 7  ;;  %v1812_v8 = vmul.f32 %v5882_v46, %v5720_v7  ;;  %8071 = vst [vmem:[#allocation48_spill] sm:$0xff] %v6178_v6 }
 0x3c6   : > { %v388_v43 = vshrl.u32 %v387_v13, 2  ;;  %v1774_v0 = vsel %vm1686_vm4, %v1771_v2, %v1773_v40  ;;  %vm1919_vm13 = vcmask 1041408   ;;  %v1952_v23 = vstv %s4241_s27 }
 0x3c7   : > { %v402_v36 = vshrl.u32 %v401_v58, 2  ;;  %v1789_v59 = vadd.f32 %v1774_v0, %v5990_v33 }
 0x3c8   : > { %v389_v18 = vmul.u32 7, %v388_v43 }
 0x3c9   : > { %v403_v12 = vmul.u32 7, %v402_v36  ;;  %v1843_v10 = vadd.f32 %v1836_v11, %v1789_v59 }
 0x3ca   : > { %v390_v20 = vsub.s32 %v307_v53, %v389_v18  ;;  %v1737_v53 = vmul.f32 %v5706_v51, %v5720_v7  ;;  %v1813_v51 = vmul.f32 %v5682_v47, %v5882_v46 }
 0x3cb   : > { %v404_v45 = vsub.s32 %v308_v60, %v403_v12 }
 0x3cc   : > { %vm412_vm14 = vcmp.ne.s32.totalorder %v390_v20, 0  ;;  %vm419_vm15 = vcmp.lt.s32.totalorder %v390_v20, 0  ;;  %v433_v25 = vadd.s32 7, %v390_v20 }
 0x3cd   : > { %vm413_vm5 = vcmp.ne.s32.totalorder %v404_v45, 0  ;;  %vm420_vm6 = vcmp.lt.s32.totalorder %v404_v45, 0  ;;  %vm426_vm7 = vmand %vm419_vm15, %vm412_vm14  ;;  %v434_v56 = vadd.s32 7, %v404_v45 }
 0x3ce   : > { %vm427_vm8 = vmand %vm420_vm6, %vm413_vm5  ;;  %v440_v2 = vsel %vm426_vm7, %v433_v25, %v390_v20 }
 0x3cf   : > { %v441_v1 = vsel %vm427_vm8, %v434_v56, %v404_v45  ;;  %vm447_vm9 = vcmp.ne.s32.totalorder %v440_v2, 0  ;;  %vm468_vm10 = vcmp.ne.s32.totalorder %v440_v2, 6 }
 0x3d0   : > { %vm448_vm11 = vcmp.ne.s32.totalorder %v441_v1, 0  ;;  %v6123_v60 = vsel %vm447_vm9, 1.0, %v8043_v57  ;;  %vm469_vm12 = vcmp.ne.s32.totalorder %v441_v1, 6  ;;  %v6126_v14 = vsel %vm468_vm10, 1.0, %v8043_v57 }
 0x3d1   : > { %8061 = vst [vmem:[#allocation39_spill] sm:$0xff] %v6123_v60  ;;  %8062 = vst [vmem:[#allocation40_spill] sm:$0xff] %v6126_v14  ;;  %v6129_v61 = vsel %vm448_vm11, 1.0, %v8043_v57  ;;  %v4149_v29 = vsel %vm469_vm12, 1.0, %v8043_v57  ;;  %v1683_v35 = vmul.f32 %v6123_v60, %v5814_v24  ;;  %v1711_v39 = vmul.f32 %v6126_v14, %v1699_v16 }
 0x3d2   : > { %8063 = vst [vmem:[#allocation41_spill] sm:$0xff] %v6129_v61  ;;  %v1684_v32 = vmul.f32 %v6129_v61, %v8064_v48  ;;  %v6140_v15 = vmul.f32 0.0, %v4149_v29  ;;  %v6188_v29 = vld [vmem:[#allocation2 + $0x48] sm:$0xff]  ;;  %v6195_v48 = vld [vmem:[#allocation2 + $0x58] sm:$0xff] }
 0x3d3   : > { %v1727_v27 = vmul.f32 %v5746_v26, %v1683_v35  ;;  %v1753_v57 = vmul.f32 %v5940_v3, %v1711_v39  ;;  %v1855_v24 = vmul.f32 %v5969_v9, %v1683_v35  ;;  %v1884_v16 = vmul.f32 %v5951_v42, %v1711_v39 }
 0x3d4   : > { %8065 = vst [vmem:[#allocation42_spill] sm:$0xff] %v6140_v15  ;;  %v1802_v13 = vmul.f32 %v5945_v30, %v1684_v32  ;;  %v1831_v47 = vmul.f32 %v5965_v54, %v6140_v15  ;;  %v1856_v62 = vmul.f32 %v5969_v9, %v1684_v32  ;;  %v1801_v37 = vmul.f32 %v5945_v30, %v1683_v35  ;;  %v6190_v35 = vld [vmem:[#allocation2 + $0x50] sm:$0xff]  ;;  %v6197_v32 = vld [vmem:[#allocation2 + $0x60] sm:$0xff] }
 0x3d5   : > { %v1743_v58 = vadd.f32 %v1737_v53, %v1727_v27  ;;  %v1873_v21 = vadd.f32 %v1866_v55, %v1855_v24  ;;  %v1830_v46 = vmul.f32 %v5965_v54, %v1711_v39  ;;  %v1885_v7 = vmul.f32 %v5951_v42, %v6140_v15  ;;  %v6186_v53 = vld [vmem:[#allocation2 + $0x10] sm:$0xff] }
 0x3d6   : > { %v1820_v26 = vadd.f32 %v1813_v51, %v1802_v13  ;;  %v1819_v3 = vadd.f32 %v1812_v8, %v1801_v37  ;;  %v1874_v43 = vadd.f32 %v1867_v19, %v1856_v62  ;;  %v6193_v51 = vld [vmem:[#allocation2 + $0x18] sm:$0xff]  ;;  %v6199_v8 = vstv %s4297_s29  ;;  %s6585_s29 = sld [smem:[#allocation3 + $0x183]] }
 0x3d7   : > { %v1759_v36 = vadd.f32 %v1753_v57, %v1743_v58  ;;  %v1891_v11 = vadd.f32 %v1884_v16, %v1873_v21  ;;  %8073 = vst [vmem:[#allocation50_spill] sm:$0xff] %v6199_v8  ;;  %v6201_v27 = vstv %s4298_s8  ;;  %v6205_v57 = vstv %s4268_s30  ;;  %v6208_v16 = vld [vmem:[#allocation2 + $0x68] sm:$0x1]  ;;  %s6608_s30 = sld [smem:[#allocation3 + $0x184]] }
 0x3d8   : > { %v1837_v18 = vadd.f32 %v1830_v46, %v1819_v3  ;;  %v1892_v0 = vadd.f32 %v1885_v7, %v1874_v43  ;;  %v1838_v59 = vadd.f32 %v1831_v47, %v1820_v26  ;;  %8074 = vst [vmem:[#allocation51_spill] sm:$0xff] %v6201_v27  ;;  %v6214_v13 = vstv %s4269_s9  ;;  %v6224_v26 = vld [vmem:[#allocation2 + $0x20] sm:$0xff]  ;;  %v6226_v3 = vld [vmem:[#allocation2 + $0x28] sm:$0xff] }
 0x3d9   : > { %v1775_v12 = vrot.slane %v1759_v36, 1  ;;  %v1909_v20 = vrot.slane %v1891_v11, 7  ;;  %v6216_v47 = vstv %s4326_s10  ;;  %v6218_v62 = vstv %s4327_s11 }
 0x3da   : > { %v1911_v9 = vrot.slane %v1892_v0, 7  ;;  %v1955_v46 = vmul.f32 %v1952_v23, %v6188_v29  ;;  %v1956_v7 = vmul.f32 %v1952_v23, %v6190_v35  ;;  %v6229_v43 = vstv %s6172_s12 }
 0x3db   : > { %v1791_v30 = vadd.f32 %v1775_v12, %v5990_v33  ;;  %v1910_v54 = vsel %vm535_vm0, %v1907_v22, %v1909_v20  ;;  %v1776_v42 = vsel %vm1686_vm4, %v1773_v40, %v1775_v12  ;;  %v6176_v22 = vld [vmem:[#allocation2] sm:$0xff]  ;;  %v1957_v36 = vmul.f32 %v1952_v23, %v6195_v48 }
 0x3dc   : > { %v6163_v45 = vadd.f32 %v1910_v54, %v1843_v10  ;;  %v1790_v25 = vadd.f32 %v1776_v42, %v5990_v33  ;;  %v1912_v56 = vsel %vm535_vm0, %v1909_v20, %v1911_v9  ;;  %v6174_v33 = vld [vmem:[#allocation2 + $0x38] sm:$0xff]  ;;  %8070 = vst [vmem:[#allocation47_spill] sm:$0xff] %v6176_v22  ;;  %v6180_v40 = vld [vmem:[#allocation2 + $0x40] sm:$0xff]  ;;  %v1936_v10 = vstv %s1935_s28 }
 0x3dd   : > { %v6167_v19 = vadd.f32 %v1838_v59, %v1791_v30  ;;  %v1920_v55 = vsel %vm1919_vm13, %v1912_v56, 0.0  ;;  %8069 = vst [vmem:[#allocation46_spill] sm:$0xff] %v6174_v33  ;;  %8072 = vst [vmem:[#allocation49_spill] sm:$0xff] %v6180_v40  ;;  %v1953_v39 = vmul.f32 %v1952_v23, %v6174_v33  ;;  %v1954_v24 = vmul.f32 %v1952_v23, %v6180_v40 }
 0x3de   : > { %8066 = vst [vmem:[#allocation43_spill] sm:$0xff] %v6163_v45  ;;  %v1844_v2 = vadd.f32 %v1837_v18, %v1790_v25  ;;  %v1937_v58 = vmul.f32 %v1936_v10, %v6176_v22  ;;  %v1938_v21 = vmul.f32 %v1936_v10, %v6178_v6  ;;  %v1958_v11 = vmul.f32 %v1952_v23, %v6197_v32  ;;  %v6233_v18 = vld [vmem:[#allocation2 + $0x30] sm:$0x1]  ;;  %v4868_v25 = vld [vmem:[%s7880_s3 + $0x24] ss:$0 sps:$4 sm:$0x11]  }
 0x3df   : > { %8067 = vst [vmem:[#allocation44_spill] sm:$0xff] %v6167_v19  ;;  %v1939_v59 = vmul.f32 %v1936_v10, %v6186_v53  ;;  %v1940_v20 = vmul.f32 %v1936_v10, %v6193_v51  ;;  %v1959_v9 = vmul.f32 %v1952_v23, %v6208_v16  ;;  %v1941_v54 = vmul.f32 %v1936_v10, %v6224_v26 }
 0x3e0   : > { %v6170_v1 = vadd.f32 %v1920_v55, %v1844_v2  ;;  %v6237_v12 = vadd.f32 %v1953_v39, %v1937_v58  ;;  %v6242_v30 = vadd.f32 %v1954_v24, %v1938_v21  ;;  %v1942_v42 = vmul.f32 %v1936_v10, %v6226_v3 }
 0x3e1   : > { %v6252_v55 = vstv %s6182_s13  ;;  %v6254_v2 = vadd.f32 %v1955_v46, %v1939_v59  ;;  %v6256_v23 = vadd.f32 %v1956_v7, %v1940_v20  ;;  %v1943_v39 = vmul.f32 %v1936_v10, %v6233_v18 }
 0x3e2   : > { %8068 = vst [vmem:[#allocation45_spill] sm:$0xff] %v6170_v1  ;;  %v6260_v24 = vstv %s6184_s14  ;;  %v6264_v58 = vadd.f32 %v1958_v11, %v1942_v42  ;;  %v6271_v46 = vstv %s6203_s15  ;;  %v2583_v7 = vmul.f32 %v6214_v13, %v6174_v33 }
 0x3e3   : > { %v2584_v10 = vmul.f32 %v6214_v13, %v6180_v40  ;;  %v6281_v11 = vstv %s6210_s16  ;;  %v6284_v59 = vstv %s6212_s17  ;;  %v2585_v42 = vmul.f32 %v6214_v13, %v6188_v29 }
 0x3e4   : > { %v2576_v52 = vmul.f32 %v6205_v57, %v6186_v53  ;;  %v6310_v15 = vstv %s6249_s21  ;;  %v2578_v1 = vmul.f32 %v6205_v57, %v6224_v26  ;;  %v2589_v31 = vmul.f32 %v6214_v13, %v6208_v16 }
 0x3e5   : > { %v3194_v28 = vmul.f32 %v6199_v8, %v6233_v18 }
 0x3f0   : > { %v1265_v37 = vpop.xlane.xlu0 %1264 }
 0x3f1   : > { %4959 = vrcp.f32 %v1265_v37  ;;  %v6262_v37 = vadd.f32 %v1957_v36, %v1941_v54  ;;  %v6278_v36 = vand.u32 %v4868_v25, %v5100_v4  ;;  %v2575_v54 = vmul.f32 %v6205_v57, %v6178_v6 }
 0x3f2   : > { %v1268_v0 = vpop.xlane.xlu1 %1267  ;;  %v6295_v25 = vstv %s6235_s18 }
 0x3f3   : > { %4961 = vrcp.f32 %v1268_v0  ;;  %v6268_v0 = vadd.f32 %v1959_v9, %v1943_v39  ;;  %v2574_v9 = vmul.f32 %v6205_v57, %v6176_v22  ;;  %v2587_v39 = vmul.f32 %v6214_v13, %v6195_v48 }
 0x3f4   : > { %v1526_v56 = vpop.xlane.xlu0 %1525  ;;  %v6303_v60 = vadd.f32 %v2584_v10, %v2575_v54  ;;  %v6317_v54 = vadd.f32 %v2585_v42, %v2576_v52  ;;  %v2580_v52 = vmul.f32 %v6205_v57, %v6233_v18  ;;  %v3200_v42 = vmul.f32 %v6201_v27, %v6190_v35 }
 0x3f5   : > { %4963 = vrcp.f32 %v1526_v56  ;;  %v2586_v56 = vmul.f32 %v6214_v13, %v6190_v35  ;;  %v6301_v61 = vadd.f32 %v2583_v7, %v2574_v9  ;;  %v2579_v7 = vmul.f32 %v6205_v57, %v6226_v3 }
 0x3f6   : > { %v1529_v21 = vpop.xlane.xlu1 %1528  ;;  %v6326_v5 = vadd.f32 %v2587_v39, %v2578_v1  ;;  %v3191_v39 = vmul.f32 %v6199_v8, %v6193_v51 }
 0x3f7   : > { %4965 = vrcp.f32 %v1529_v21  ;;  %v2588_v21 = vmul.f32 %v6214_v13, %v6197_v32  ;;  %v3199_v13 = vmul.f32 %v6201_v27, %v6188_v29 }
 0x3f8   : > { %v1259_v20 = vpop.xlane.xlu0 %1258 }
 0x3f9   : > { %4967 = vrcp.f32 %v1259_v20  ;;  %v2577_v20 = vmul.f32 %v6205_v57, %v6193_v51  ;;  %v6328_v17 = vadd.f32 %v2588_v21, %v2579_v7  ;;  %v6348_v21 = vadd.f32 %v2589_v31, %v2580_v52 }
 0x3fa   : > { %v1262_v14 = vpop.xlane.xlu1 %1261  ;;  %v3203_v7 = vmul.f32 %v6201_v27, %v6208_v16 }
 0x3fb   : > { %v4960_v44 = vpop.eup %4959  ;;  %4969 = vrcp.f32 %v1262_v14  ;;  %v6319_v45 = vadd.f32 %v2586_v56, %v2577_v20  ;;  %v6324_v14 = vstv %s6266_s22  ;;  %v3190_v56 = vmul.f32 %v6199_v8, %v6186_v53 }
 0x3fc   : > { %v1287_v9 = vmul.f32 %v4960_v44, %v5579_v34  ;;  %v1520_v10 = vpop.xlane.xlu0 %1519  ;;  %v3202_v20 = vmul.f32 %v6201_v27, %v6197_v32 }
 0x3fd   : > { %v4962_v19 = vpop.eup %4961  ;;  %4971 = vrcp.f32 %v1520_v10  ;;  %v3192_v10 = vmul.f32 %v6199_v8, %v6224_v26  ;;  %v3206_v52 = vadd.f32 %v3199_v13, %v3190_v56  ;;  %v6374_v56 = vadd.f32 %v3203_v7, %v3194_v28 }
 0x3fe   : > { %1295 = vst.msk [vmem:[#allocation2 + $0x80] sm:$0xff] %vm692_vm2, %v1287_v9  ;;  %v1288_v34 = vmul.f32 %v4962_v19, %v5584_v38  ;;  %v1523_v44 = vpop.xlane.xlu1 %1522  ;;  %v3201_v38 = vmul.f32 %v6201_v27, %v6195_v48  ;;  %v3802_v27 = vmul.f32 %v6216_v47, %v6176_v22 }
 0x3ff   : > { %v4964_v1 = vpop.eup %4963  ;;  %4973 = vrcp.f32 %v1523_v44  ;;  %v3193_v44 = vmul.f32 %v6199_v8, %v6226_v3 }
 0x400   : > { %1296 = vst.msk [vmem:[#allocation2 + $0x88] sm:$0xff] %vm692_vm2, %v1288_v34  ;;  %v1548_v19 = vmul.f32 %v4964_v1, %v5589_v41  ;;  %v1277_v57 = vpop.xlane.xlu0 %1276  ;;  %v3811_v41 = vmul.f32 %v6218_v62, %v6174_v33  ;;  %v3207_v1 = vadd.f32 %v3200_v42, %v3191_v39  ;;  %v6364_v50 = vadd.f32 %v3201_v38, %v3192_v10 }
 0x401   : > { %v4966_v9 = vpop.eup %4965  ;;  %4975 = vrcp.f32 %v1277_v57  ;;  %v3812_v33 = vmul.f32 %v6218_v62, %v6180_v40  ;;  %v6372_v42 = vadd.f32 %v3202_v20, %v3193_v44  ;;  %v3803_v39 = vmul.f32 %v6216_v47, %v6178_v6 }
 0x402   : > { %1556 = vst.msk [vmem:[#allocation2 + $0xb8] sm:$0xff] %vm692_vm2, %v1548_v19  ;;  %v1549_v31 = vmul.f32 %v4966_v9, %v5594_v49  ;;  %v1532_v34 = vpop.xlane.xlu1 %1531  ;;  %v6380_v9 = vadd.f32 %v3811_v41, %v3802_v27  ;;  %v6383_v10 = vstv %s6330_s23 }
 0x403   : > { %v4968_v57 = vpop.eup %4967  ;;  %4977 = vrcp.f32 %v1532_v34 }
 0x404   : > { %1557 = vst.msk [vmem:[#allocation2 + $0xc0] sm:$0xff] %vm692_vm2, %v1549_v31  ;;  %v1285_v49 = vmul.f32 %v4968_v57, %v5599_v63  ;;  %v1271_v13 = vpop.xlane.xlu0 %1270  ;;  %8075 = vst [vmem:[#allocation52_spill] sm:$0xff] %v6380_v9  ;;  %v3804_v31 = vmul.f32 %v6216_v47, %v6186_v53  ;;  %v8076_v63 = vld [vmem:[#allocation7_spill] sm:$0xff]  ;;  %v6397_v57 = vadd.f32 %v3812_v33, %v3803_v39 }
 0x405   : > { %v4970_v38 = vpop.eup %4969  ;;  %4979 = vrcp.f32 %v1271_v13  ;;  %v6378_v19 = vld [vmem:[#allocation2 + $0x80] sm:$0xff]  ;;  %v3805_v53 = vmul.f32 %v6216_v47, %v6193_v51  ;;  %v8078_v13 = vld [vmem:[#allocation8_spill] sm:$0xff]  ;;  %v3806_v33 = vmul.f32 %v6216_v47, %v6224_v26 }
 0x406   : > { %1293 = vst.msk [vmem:[#allocation2 + $0x70] sm:$0xff] %vm692_vm2, %v1285_v49  ;;  %v1286_v20 = vmul.f32 %v4970_v38, %v8076_v63  ;;  %v1274_v28 = vpop.xlane.xlu1 %1273  ;;  %v1978_v7 = vmul.f32 %v6229_v43, %v6378_v19  ;;  %v2601_v44 = vmul.f32 %v6295_v25, %v6378_v19  ;;  %v3215_v27 = vmul.f32 %v6271_v46, %v6378_v19 }
 0x407   : > { %v4972_v41 = vpop.eup %4971  ;;  %4981 = vrcp.f32 %v1274_v28  ;;  %v6395_v34 = vld [vmem:[#allocation2 + $0x88] sm:$0xff]  ;;  %8077 = vst [vmem:[#allocation7_spill] sm:$0xff] %v6397_v57  ;;  %v3813_v49 = vmul.f32 %v6218_v62, %v6188_v29  ;;  %v3814_v28 = vmul.f32 %v6218_v62, %v6190_v35 }
 0x408   : > { %1294 = vst.msk [vmem:[#allocation2 + $0x78] sm:$0xff] %vm692_vm2, %v1286_v20  ;;  %v1546_v38 = vmul.f32 %v4972_v41, %v8078_v13  ;;  %v1535_v63 = vpop.xlane.xlu0 %1534  ;;  %v1979_v22 = vmul.f32 %v6229_v43, %v6395_v34  ;;  %v2602_v29 = vmul.f32 %v6295_v25, %v6395_v34  ;;  %v3216_v20 = vmul.f32 %v6271_v46, %v6395_v34  ;;  %v8080_v13 = vld [vmem:[#allocation9_spill] sm:$0xff] }
 0x409   : > { %v4974_v39 = vpop.eup %4973  ;;  %4983 = vrcp.f32 %v1535_v63  ;;  %v6411_v51 = vld [vmem:[#allocation2 + $0xb8] sm:$0xff]  ;;  %v3222_v41 = vadd.f32 %v3215_v27, %v3206_v52  ;;  %v1985_v35 = vadd.f32 %v1978_v7, %v6254_v2  ;;  %v2608_v63 = vadd.f32 %v2601_v44, %v6317_v54  ;;  %v8082_v2 = vld [vmem:[#allocation10_spill] sm:$0xff] }
 0x40a   : > { %8079 = vst [vmem:[#allocation8_spill] sm:$0xff] %v6411_v51  ;;  %1554 = vst.msk [vmem:[#allocation2 + $0xa8] sm:$0xff] %vm692_vm2, %v1546_v38  ;;  %v1547_v8 = vmul.f32 %v4974_v39, %v8080_v13  ;;  %v1538_v6 = vpop.xlane.xlu1 %1537  ;;  %v2001_v26 = vmul.f32 %v6252_v55, %v6411_v51  ;;  %v2617_v57 = vmul.f32 %v6310_v15, %v6411_v51 }
 0x40b   : > { %v4976_v40 = vpop.eup %4975  ;;  %4985 = vrcp.f32 %v1538_v6  ;;  %v6423_v4 = vld [vmem:[#allocation2 + $0xc0] sm:$0xff]  ;;  %v6427_v52 = vadd.f32 %v3216_v20, %v3207_v1  ;;  %v3231_v27 = vmul.f32 %v6281_v11, %v6411_v51  ;;  %v1986_v38 = vadd.f32 %v1979_v22, %v6256_v23  ;;  %v8083_v22 = vld [vmem:[#allocation11_spill] sm:$0xff] }
 0x40c   : > { %8081 = vst [vmem:[#allocation9_spill] sm:$0xff] %v6423_v4  ;;  %1555 = vst.msk [vmem:[#allocation2 + $0xb0] sm:$0xff] %vm692_vm2, %v1547_v8  ;;  %v1291_v7 = vmul.f32 %v4976_v40, %v8082_v2  ;;  %v2002_v54 = vmul.f32 %v6252_v55, %v6423_v4  ;;  %v2618_v6 = vmul.f32 %v6310_v15, %v6423_v4 }
 0x40d   : > { %v4978_v44 = vpop.eup %4977  ;;  %v6438_v39 = vld [vmem:[#allocation2 + $0x70] sm:$0xff]  ;;  %v2609_v1 = vadd.f32 %v2602_v29, %v6319_v45  ;;  %v2624_v20 = vadd.f32 %v2617_v57, %v2608_v63  ;;  %v6443_v13 = vmul.f32 %v6281_v11, %v6423_v4  ;;  %v6445_v8 = vadd.f32 %v3231_v27, %v3222_v41 }
 0x40e   : > { %1299 = vst.msk [vmem:[#allocation2 + $0xa0] sm:$0x1] %vm711_vm3, %v1291_v7  ;;  %v1550_v40 = vmul.f32 %v4978_v44, %v8083_v22  ;;  %v1976_v23 = vmul.f32 %v6229_v43, %v6438_v39  ;;  %v3807_v2 = vmul.f32 %v6216_v47, %v6226_v3  ;;  %v3815_v45 = vmul.f32 %v6218_v62, %v6195_v48  ;;  %v8084_v7 = vld [vmem:[#allocation12_spill] sm:$0xff] }
 0x40f   : > { %v4980_v57 = vpop.eup %4979  ;;  %v6455_v29 = vld [vmem:[#allocation2 + $0x78] sm:$0xff]  ;;  %v2008_v63 = vadd.f32 %v2001_v26, %v1985_v35  ;;  %v2009_v4 = vadd.f32 %v2002_v54, %v1986_v38  ;;  %v2599_v41 = vmul.f32 %v6295_v25, %v6438_v39  ;;  %v2625_v27 = vadd.f32 %v2618_v6, %v2609_v1 }
 0x410   : > { %1558 = vst.msk [vmem:[#allocation2 + $0xc8] sm:$0xff] %vm692_vm2, %v1550_v40  ;;  %v1289_v44 = vmul.f32 %v4980_v57, %v8084_v7  ;;  %v1977_v22 = vmul.f32 %v6229_v43, %v6455_v29  ;;  %v6463_v3 = vadd.f32 %v3813_v49, %v3804_v31  ;;  %v3816_v48 = vmul.f32 %v6218_v62, %v6197_v32  ;;  %v8085_v31 = vld [vmem:[#allocation13_spill] sm:$0xff]  ;;  %v8087_v7 = vld [vmem:[#allocation15_spill] sm:$0xff] }
 0x411   : > { %v4982_v51 = vpop.eup %4981  ;;  %v6467_v9 = vld [vmem:[#allocation2 + $0xa8] sm:$0xff]  ;;  %v2600_v35 = vmul.f32 %v6295_v25, %v6455_v29  ;;  %v6471_v26 = vadd.f32 %v3814_v28, %v3805_v53  ;;  %v6475_v38 = vmul.f32 %v6216_v47, %v6233_v18  ;;  %v6479_v54 = vmul.f32 %v6218_v62, %v6208_v16 }
 0x412   : > { %1297 = vst.msk [vmem:[#allocation2 + $0x90] sm:$0xff] %vm692_vm2, %v1289_v44  ;;  %v1290_v32 = vmul.f32 %v4982_v51, %v8085_v31  ;;  %v1983_v49 = vadd.f32 %v1976_v23, %v6237_v12  ;;  %v1999_v6 = vmul.f32 %v6252_v55, %v6467_v9  ;;  %v6486_v1 = vadd.f32 %v3815_v45, %v3806_v33  ;;  %v8086_v12 = vld [vmem:[#allocation14_spill] sm:$0xff] }
 0x413   : > { %v4984_v53 = vpop.eup %4983  ;;  %v6488_v28 = vld [vmem:[#allocation2 + $0xb0] sm:$0xff]  ;;  %v2017_v47 = vadd.f32 %v6260_v24, %v2008_v63  ;;  %v2018_v18 = vadd.f32 %v6260_v24, %v2009_v4  ;;  %v2606_v16 = vadd.f32 %v2599_v41, %v6301_v61  ;;  %v2615_v62 = vmul.f32 %v6310_v15, %v6467_v9 }
 0x414   : > { %1298 = vst.msk [vmem:[#allocation2 + $0x98] sm:$0xff] %vm692_vm2, %v1290_v32  ;;  %v1551_v51 = vmul.f32 %v4984_v53, %v8086_v12  ;;  %v1984_v40 = vadd.f32 %v1977_v22, %v6242_v30  ;;  %v2000_v33 = vmul.f32 %v6252_v55, %v6488_v28  ;;  %v2006_v23 = vadd.f32 %v1999_v6, %v1983_v49 }
 0x415   : > { %v4986_v45 = vpop.eup %4985  ;;  %v6500_v57 = vld [vmem:[#allocation2 + $0xa0] sm:$0x1]  ;;  %v2607_v4 = vadd.f32 %v2600_v35, %v6303_v60  ;;  %v2616_v61 = vmul.f32 %v6310_v15, %v6488_v28  ;;  %v2622_v63 = vadd.f32 %v2615_v62, %v2606_v16  ;;  %v6506_v41 = vadd.f32 %v6324_v14, %v2625_v27 }
 0x416   : > { %1559 = vst.msk [vmem:[#allocation2 + $0xd0] sm:$0xff] %vm692_vm2, %v1551_v51  ;;  %v1552_v30 = vmul.f32 %v4986_v45, %v8087_v7  ;;  %v2007_v44 = vadd.f32 %v2000_v33, %v1984_v40  ;;  %v1982_v22 = vmul.f32 %v6229_v43, %v6500_v57  ;;  %v6513_v31 = vadd.f32 %v6324_v14, %v2624_v20 }
 0x417   : > { %v2023_v32 = vpack.c.bf16 %v2018_v18, %v2017_v47  ;;  %v6515_v60 = vld [vmem:[#allocation2 + $0xc8] sm:$0xff]  ;;  %v2623_v35 = vadd.f32 %v2616_v61, %v2607_v4  ;;  %v6519_v49 = vmul.f32 %v6383_v10, %v6378_v19  ;;  %v6521_v27 = vadd.f32 %v3816_v48, %v3807_v2 }
 0x418   : > { %1560 = vst.msk [vmem:[#allocation2 + $0xd8] sm:$0x1] %vm711_vm3, %v1552_v30  ;;  %v2015_v6 = vadd.f32 %v6260_v24, %v2006_v23  ;;  %v2016_v53 = vadd.f32 %v6260_v24, %v2007_v44  ;;  %v6527_v16 = vadd.f32 %v6324_v14, %v2622_v63  ;;  %v2003_v19 = vmul.f32 %v6252_v55, %v6515_v60  ;;  %v8089_v44 = vld [vmem:[#allocation25_spill] sm:$0xff] }
 0x419   : > { %v6531_v47 = vld [vmem:[#allocation2 + $0x90] sm:$0xff]  ;;  %v1989_v2 = vadd.f32 %v1982_v22, %v6268_v0  ;;  %v6537_v48 = vadd.f32 %v6324_v14, %v2623_v35  ;;  %v2605_v18 = vmul.f32 %v6295_v25, %v6500_v57  ;;  %v3239_v40 = vadd.f32 %v6443_v13, %v6427_v52  ;;  %v4867_v0 = vld [vmem:[%s7880_s3 + $0x1c] sm:$0xff]  }
 0x41a   : > { %v2022_v62 = vpack.c.bf16 %v2016_v53, %v2015_v6  ;;  %v1980_v12 = vmul.f32 %v6229_v43, %v6531_v47  ;;  %v2603_v51 = vmul.f32 %v6295_v25, %v6531_v47  ;;  %v2619_v45 = vmul.f32 %v6310_v15, %v6515_v60 }
 0x41b   : > { %v6547_v33 = vld [vmem:[#allocation2 + $0x98] sm:$0xff]  ;;  %v2612_v4 = vadd.f32 %v2605_v18, %v6348_v21  ;;  %v6559_v61 = vadd.f32 %v6284_v59, %v6445_v8  ;;  %v6572_v21 = vadd.f32 %v6284_v59, %v3239_v40  ;;  %v3217_v8 = vmul.f32 %v6271_v46, %v6531_v47 }
 0x41c   : > { %4625 = vmatprep.mubr.msk.bf16.mxu1 %vm692_vm2, %v2022_v62  ;;  %v1981_v52 = vmul.f32 %v6229_v43, %v6547_v33  ;;  %v1987_v13 = vadd.f32 %v1980_v12, %v6262_v37  ;;  %v2604_v63 = vmul.f32 %v6295_v25, %v6547_v33  ;;  %v2610_v7 = vadd.f32 %v2603_v51, %v6326_v5 }
 0x41d   : > { %8088 = vst [vmem:[#allocation10_spill] sm:$0xff] %v6559_v61  ;;  %4626 = vmatmul.mubr.msk.bf16.vlgmr.msra.gmra.mrb[40].mxu1 %vm692_vm2, %v2023_v32  ;;  %v6569_v30 = vld [vmem:[#allocation2 + $0xd0] sm:$0xff]  ;;  %v3218_v43 = vmul.f32 %v6271_v46, %v6547_v33  ;;  %v3233_v37 = vmul.f32 %v6281_v11, %v6515_v60  ;;  %vm2121_vm3 = vcmask 130048  }
 0x41e   : > { %4644 = vmatpush3.bf16.msra.mxu1 %v8089_v44  ;;  %v1988_v5 = vadd.f32 %v1981_v52, %v6264_v58  ;;  %v2004_v25 = vmul.f32 %v6252_v55, %v6569_v30  ;;  %v2010_v22 = vadd.f32 %v2003_v19, %v1987_v13  ;;  %v2611_v32 = vadd.f32 %v2604_v63, %v6328_v17 }
 0x41f   : > { %4645 = vmatprep.subr.bf16.mxu1 %v4867_v0  ;;  %v6587_v35 = vld [vmem:[#allocation2 + $0xd8] sm:$0x1]  ;;  %v2620_v6 = vmul.f32 %v6310_v15, %v6569_v30  ;;  %v2626_v53 = vadd.f32 %v2619_v45, %v2610_v7  ;;  %v3224_v58 = vadd.f32 %v3217_v8, %v6364_v50  ;;  %v3225_v45 = vadd.f32 %v3218_v43, %v6372_v42 }
 0x420   : > { %v2011_v62 = vadd.f32 %v2004_v25, %v1988_v5  ;;  %v2019_v12 = vadd.f32 %v6260_v24, %v2010_v22  ;;  %v2005_v17 = vmul.f32 %v6252_v55, %v6587_v35  ;;  %v2621_v19 = vmul.f32 %v6310_v15, %v6587_v35  ;;  %v4869_v15 = vld [vmem:[%s7880_s3 + $0x28] sm:$0xff]  }
 0x421   : > { %v2627_v51 = vadd.f32 %v2620_v6, %v2611_v32  ;;  %v6600_v40 = vadd.f32 %v6324_v14, %v2626_v53  ;;  %v3234_v52 = vmul.f32 %v6281_v11, %v6569_v30  ;;  %v3240_v7 = vadd.f32 %v3233_v37, %v3224_v58  ;;  %v8092_v58 = vld [vmem:[#allocation52_spill] sm:$0xff] }
 0x422   : > { %v2020_v50 = vadd.f32 %v6260_v24, %v2011_v62  ;;  %4646 = vmatpush3.bf16.msra.mxu1 %v4867_v0  ;;  %v2012_v13 = vadd.f32 %v2005_v17, %v1989_v2  ;;  %v6606_v63 = vadd.f32 %v2621_v19, %v2612_v4  ;;  %v3219_v0 = vmul.f32 %v6271_v46, %v6500_v57 }
 0x423   : > { %4647 = vmatprep.subr.bf16.mxu1 %v6278_v36  ;;  %v6615_v55 = vadd.f32 %v6324_v14, %v2627_v51  ;;  %v3241_v42 = vadd.f32 %v3234_v52, %v3225_v45  ;;  %v3235_v2 = vmul.f32 %v6281_v11, %v6587_v35  ;;  %v6623_v43 = vadd.f32 %v6284_v59, %v3240_v7  ;;  %v8097_v7 = vld [vmem:[#allocation9_spill] sm:$0xff] }
 0x424   : > { %v2024_v4 = vpack.c.bf16 %v2020_v50, %v2019_v12  ;;  %v2021_v8 = vadd.f32 %v6260_v24, %v2012_v13  ;;  %v3830_v37 = vmul.f32 %v6383_v10, %v6395_v34  ;;  %v3226_v25 = vadd.f32 %v3219_v0, %v6374_v56  ;;  %v8096_v50 = vld [vmem:[#allocation8_spill] sm:$0xff]  ;;  %v8135_v56 = vld [vmem:[#allocation42_spill] sm:$0xff] }
 0x425   : > { %8090 = vst [vmem:[#allocation11_spill] sm:$0xff] %v6623_v43  ;;  %v6630_v5 = vadd.f32 %v6284_v59, %v3241_v42  ;;  %v3827_v22 = vmul.f32 %v6383_v10, %v6438_v39  ;;  %v3828_v34 = vmul.f32 %v6383_v10, %v6455_v29  ;;  %v3842_v32 = vstv %s6585_s29  ;;  %s4811_s29 = smul.u32 56, %s8286_s25 }
 0x426   : > { %4629 = vmatprep.mubr.msk.bf16.mxu1 %vm692_vm2, %v2024_v4  ;;  %v2025_v24 = vpack.c.bf16 %v2021_v8, %v2021_v8  ;;  %4648 = vmatpush3.bf16.msra.mxu1 %v6278_v36  ;;  %v3824_v6 = vadd.f32 %v6479_v54, %v6475_v38  ;;  %v3242_v53 = vadd.f32 %v3235_v2, %v3226_v25  ;;  %v8093_v36 = vld [vmem:[#allocation7_spill] sm:$0xff]  ;;  %v6653_v54 = vld [vmem:[%s5121_s26] sm:$0xff]   ;;  %v6663_v2 = vstv %s6608_s30 }
 0x427   : > { %8091 = vst [vmem:[#allocation12_spill] sm:$0xff] %v6630_v5  ;;  %4683 = vmatprep.subr.bf16.mxu1 %v4869_v15  ;;  %v3834_v62 = vadd.f32 %v3827_v22, %v8092_v58  ;;  %v3843_v12 = vmul.f32 %v3842_v32, %v6467_v9  ;;  %v3835_v17 = vadd.f32 %v3828_v34, %v8093_v36  ;;  %8094 = vst [vmem:[#allocation13_spill] sm:$0xff] %v6653_v54  ;;  %v6710_v36 = vld [vmem:[%s5121_s26 + $0x10] sm:$0xff]   ;;  %s292_s11 = scalar_lea.vmem %s7884_s7, %s4811_s29 }
 0x428   : > { %4630 = vmatmul.mubr.msk.bf16.gmra.mrb[44].mxu1 %vm692_vm2, %v2025_v24  ;;  %v3844_v19 = vmul.f32 %v3842_v32, %v6488_v28  ;;  %v3836_v51 = vadd.f32 %v6519_v49, %v6463_v3  ;;  %v3837_v38 = vadd.f32 %v3830_v37, %v6471_v26  ;;  %v6658_v45 = vadd.f32 %v6284_v59, %v3242_v53 }
 0x429   : > { %4649 = vmatprep.mubr.msk.bf16.mxu1 %vm522_vm1, %v6653_v54  ;;  %v3850_v52 = vadd.f32 %v3843_v12, %v3834_v62  ;;  %v3845_v13 = vmul.f32 %v3842_v32, %v8096_v50  ;;  %v3846_v42 = vmul.f32 %v3842_v32, %v8097_v7  ;;  %8098 = vst [vmem:[#allocation15_spill] sm:$0xff] %v6663_v2  ;;  %8106 = vst [vmem:[#allocation55_spill] sm:$0xff] %v6710_v36  ;;  %v8113_v7 = vld [vmem:[#allocation50_spill] sm:$0xff] }
 0x42a   : > { %8095 = vst [vmem:[#allocation14_spill] sm:$0xff] %v6658_v45  ;;  %v3851_v0 = vadd.f32 %v3844_v19, %v3835_v17  ;;  %v3831_v3 = vmul.f32 %v6383_v10, %v6531_v47  ;;  %v3832_v26 = vmul.f32 %v6383_v10, %v6547_v33  ;;  %v3847_v37 = vmul.f32 %v3842_v32, %v6515_v60  ;;  %v8134_v12 = vld [vmem:[#allocation30_spill] sm:$0xff] }
 0x42b   : > { %v6670_v49 = vadd.f32 %v6663_v2, %v3850_v52  ;;  %v3852_v4 = vadd.f32 %v3845_v13, %v3836_v51  ;;  %v3853_v8 = vadd.f32 %v3846_v42, %v3837_v38  ;;  %v3848_v47 = vmul.f32 %v3842_v32, %v6569_v30  ;;  %v8109_v38 = vld [vmem:[#allocation49_spill] sm:$0xff]  ;;  %v8110_v52 = vld [vmem:[#allocation51_spill] sm:$0xff] }
 0x42c   : > { %v6674_v25 = vadd.f32 %v6663_v2, %v3851_v0  ;;  %v3838_v22 = vadd.f32 %v3831_v3, %v6486_v1  ;;  %v3839_v24 = vadd.f32 %v3832_v26, %v6521_v27  ;;  %v3833_v60 = vmul.f32 %v6383_v10, %v6500_v57  ;;  %v4870_v1 = vld [vmem:[%s7880_s3 + $0x30] sm:$0xff]   ;;  %v4871_v27 = vld [vmem:[%s7880_s3 + $0x38] ss:$0 sps:$4 sm:$0x11]   ;;  %v6699_v57 = vld [vmem:[%s5121_s26 + $0x8] sm:$0xff]  }
 0x42d   : > { %8099 = vst [vmem:[#allocation25_spill] sm:$0xff] %v6670_v49  ;;  %v6680_v34 = vadd.f32 %v6663_v2, %v3852_v4  ;;  %v6683_v33 = vadd.f32 %v6663_v2, %v3853_v8  ;;  %v3849_v53 = vmul.f32 %v3842_v32, %v6587_v35  ;;  %8103 = vst [vmem:[#allocation9_spill] sm:$0xff] %v6699_v57  ;;  %v6722_v13 = vld [vmem:[%s5121_s26 + $0x18] ss:$0 sps:$4 sm:$0x11]   ;;  %v8114_v0 = vld [vmem:[#allocation46_spill] sm:$0xff] }
 0x42e   : > { %8100 = vst [vmem:[#allocation52_spill] sm:$0xff] %v6674_v25  ;;  %v3854_v58 = vadd.f32 %v3847_v37, %v3838_v22  ;;  %v3855_v62 = vadd.f32 %v3848_v47, %v3839_v24  ;;  %v3840_v10 = vadd.f32 %v3833_v60, %v3824_v6  ;;  %v8108_v6 = vld [vmem:[#allocation6_spill] sm:$0xff]  ;;  %v3198_v50 = vmul.f32 %v8110_v52, %v8109_v38  ;;  %v8115_v4 = vld [vmem:[#allocation47_spill] sm:$0xff] }
 0x42f   : > { %8101 = vst [vmem:[#allocation7_spill] sm:$0xff] %v6680_v34  ;;  %8102 = vst [vmem:[#allocation8_spill] sm:$0xff] %v6683_v33  ;;  %v2845_v19 = vand.u32 %v4871_v27, %v8108_v6  ;;  %v3197_v3 = vmul.f32 %v8110_v52, %v8114_v0  ;;  %v3214_v26 = vmul.f32 %v6271_v46, %v6455_v29  ;;  %v8117_v38 = vld [vmem:[#allocation35_spill] sm:$0xff]  ;;  %v8119_v0 = vld [vmem:[#allocation38_spill] sm:$0xff] }
 0x430   : > { %4650 = vmatmul.mubr.msk.bf16.vlgmr.msra.gmra.mrb[48].mxu1 %vm522_vm1, %v6699_v57  ;;  %v6704_v35 = vadd.f32 %v6663_v2, %v3854_v58  ;;  %v6707_v32 = vadd.f32 %v6663_v2, %v3855_v62  ;;  %v6714_v17 = vadd.f32 %v3849_v53, %v3840_v10  ;;  %8111 = vst [vmem:[#allocation49_spill] sm:$0xff] %v6722_v13  ;;  %v8116_v10 = vld [vmem:[#allocation36_spill] sm:$0xff] }
 0x431   : > { %4684 = vmatpush3.bf16.msra.mxu1 %v4869_v15  ;;  %4653 = vmatprep.mubr.msk.bf16.mxu1 %vm522_vm1, %v6710_v36  ;;  %v8112_v15 = vld [vmem:[#allocation48_spill] sm:$0xff]  ;;  %v3188_v8 = vmul.f32 %v8113_v7, %v8115_v4  ;;  %v3213_v22 = vmul.f32 %v6271_v46, %v6438_v39  ;;  %v3230_v24 = vmul.f32 %v6281_v11, %v6488_v28 }
 0x432   : > { %8104 = vst [vmem:[#allocation53_spill] sm:$0xff] %v6704_v35  ;;  %8105 = vst [vmem:[#allocation54_spill] sm:$0xff] %v6707_v32  ;;  %4685 = vmatprep.subr.bf16.mxu1 %v4870_v1  ;;  %v3189_v42 = vmul.f32 %v8113_v7, %v8112_v15  ;;  %v3229_v53 = vmul.f32 %v6281_v11, %v6467_v9  ;;  %v1561_v11 = vld [vmem:[%s7882_s5] sm:$0xff]  ;;  %v1562_v9 = vld [vmem:[%s7882_s5 + $0x8] sm:$0xff] }
 0x433   : > { %8107 = vst [vmem:[#allocation56_spill] sm:$0xff] %v6714_v17  ;;  %v3204_v47 = vadd.f32 %v3197_v3, %v3188_v8  ;;  %v2120_v28 = vpack.c.bf16 %v1562_v9, %v1561_v11  ;;  %v8118_v15 = vld [vmem:[#allocation37_spill] sm:$0xff]  ;;  %v8123_v9 = vld [vmem:[#allocation43_spill] sm:$0xff]  ;;  %v8148_v17 = vld [vmem:[#allocation18_spill] sm:$0xff] }
 0x434   : > { %v3205_v37 = vadd.f32 %v3198_v50, %v3189_v42 }
 0x435   : > { %4686 = vmatpush3.bf16.msra.mxu1 %v4870_v1  ;;  %v3220_v1 = vadd.f32 %v3213_v22, %v3204_v47  ;;  %4633 = vmatprep.subr.bf16.mxu0 %v2120_v28  ;;  %v6763_v47 = vadd.f32 %v6324_v14, %v6606_v63 }
 0x436   : > { %4687 = vmatprep.subr.bf16.mxu1 %v2845_v19  ;;  %v3221_v60 = vadd.f32 %v3214_v26, %v3205_v37  ;;  %4634 = vmatpush3.bf16.msra.mxu0 %v2120_v28 }
 0x437   : > { %v3236_v29 = vadd.f32 %v3229_v53, %v3220_v1  ;;  %v4295_v1 = vld [vmem:[%s7881_s4 + $0x20] sm:$0xff] }
 0x438   : > { %4654 = vmatmul.mubr.msk.bf16.gmra.mrb[52].mxu1 %vm522_vm1, %v6722_v13  ;;  %v3237_v27 = vadd.f32 %v3230_v24, %v3221_v60  ;;  %v4266_v60 = vld [vmem:[%s7881_s4 + $0x10] sm:$0xff]  ;;  %v6858_v23 = vrot.slane %v4295_v1, %v8134_v12 }
 0x439   : > { %4688 = vmatpush3.bf16.msra.mxu1 %v2845_v19  ;;  %4689 = vmatprep.mubr.msk.bf16.mxu1 %vm522_vm1, %v6653_v54  ;;  %v3245_v46 = vadd.f32 %v6284_v59, %v3236_v29  ;;  %v8120_v29 = vld [vmem:[#allocation44_spill] sm:$0xff]  ;;  %v6826_v30 = vrot.slane %v4266_v60, %v8134_v12 }
 0x43a   : > { %v3246_v58 = vadd.f32 %v6284_v59, %v3237_v27  ;;  %v4874_v27 = vld [vmem:[%s7880_s3 + $0x4c] ss:$0 sps:$4 sm:$0x11]  }
 0x43c   : > { %v3252_v39 = vpack.c.bf16 %v3246_v58, %v3245_v46  ;;  %v8121_v58 = vld [vmem:[#allocation16_spill] sm:$0xff] }
 0x43d   : > { %v6778_v46 = vrot.slane %v4266_v60, %v8121_v58 }
 0x43f   : > { %8122 = vst [vmem:[#allocation51_spill] sm:$0xff] %v6778_v46 }
 0x440   : > { %4690 = vmatmul.mubr.msk.bf16.vlgmr.msra.gmra.mrb[56].mxu1 %vm522_vm1, %v6699_v57 }
 0x441   : > { %4693 = vmatprep.mubr.msk.bf16.mxu1 %vm522_vm1, %v6710_v36 }
 0x448   : > { %4694 = vmatmul.mubr.msk.bf16.gmra.mrb[60].mxu1 %vm522_vm1, %v6722_v13 }
 0x449   : > { %4705 = vmatprep.mubr.msk.bf16.mxu1 %vm692_vm2, %v3252_v39 }
 0x4f0   : > { %v4627_v62 = vpop.f32.mrb[40].mxu1 }
 0x4f1   : > { %v2088_v59 = vadd.f32 %v4627_v62, %v8116_v10  ;;  %v2079_v19 = vpop.f32.mrb[41].mxu1  ;;  %v8124_v10 = vld [vmem:[#allocation20_spill] sm:$0xff] }
 0x4f2   : > { %v2080_v52 = vadd.f32 %v2079_v19, %v8117_v38  ;;  %v4628_v50 = vpop.f32.mrb[42].mxu1  ;;  %v8125_v19 = vld [vmem:[#allocation17_spill] sm:$0xff] }
 0x4f3   : > { %v2091_v7 = vadd.f32 %v4628_v50, %v8118_v15  ;;  %v2082_v42 = vpop.f32.mrb[43].mxu1  ;;  %v2111_v26 = vmax.f32 %v2088_v59, 0.0  ;;  %v6786_v59 = vrot.slane %v4266_v60, %v8124_v10  ;;  %v6789_v38 = vrot.slane %v4266_v60, %v8125_v19  ;;  %v4267_v15 = vld [vmem:[%s7881_s4 + $0x18] sm:$0x3] }
 0x4f4   : > { %v2083_v3 = vadd.f32 %v2082_v42, %v8119_v0  ;;  %v2109_v8 = vmax.f32 %v2080_v52, 0.0  ;;  %v8126_v52 = vld [vmem:[#allocation22_spill] sm:$0xff]  ;;  %v6798_v42 = vrot.slane %v4295_v1, %v8121_v58  ;;  %v6801_v0 = vrot.slane %v4295_v1, %v8124_v10 }
 0x4f5   : > { %v2112_v4 = vmax.f32 %v2091_v7, 0.0  ;;  %v6792_v50 = vrot.slane %v4266_v60, %v8126_v52  ;;  %v6832_v11 = vrot.slane %v4267_v15, %v8121_v58 }
 0x4f6   : > { %v2110_v37 = vmax.f32 %v2083_v3, 0.0  ;;  %8127 = vst [vmem:[#allocation48_spill] sm:$0xff] %v6798_v42  ;;  %8128 = vst [vmem:[#allocation50_spill] sm:$0xff] %v6801_v0  ;;  %v6804_v3 = vrot.slane %v4295_v1, %v8125_v19 }
 0x4f7   : > { %v2117_v22 = vpack.c.bf16 %v2112_v4, %v2111_v26  ;;  %v6807_v26 = vrot.slane %v4295_v1, %v8126_v52  ;;  %v8129_v4 = vld [vmem:[#allocation45_spill] sm:$0xff] }
 0x4f8   : > { %v2116_v24 = vpack.c.bf16 %v2110_v37, %v2109_v8  ;;  %v6811_v37 = vand.u32 %v4874_v27, %v8108_v6  ;;  %v6829_v27 = vrot.slane %v4267_v15, %v8125_v19  ;;  %8143 = vst [vmem:[#allocation45_spill] sm:$0xff] %v6858_v23  ;;  %v8151_v23 = vld [vmem:[#allocation21_spill] sm:$0xff] }
 0x4fa   : > { %4635 = vmatprep.mubr.msk.bf16.mxu0 %vm2121_vm3, %v2116_v24  ;;  %8130 = vst [vmem:[#allocation46_spill] sm:$0xff] %v6811_v37 }
 0x4fb   : > { %v4631_v53 = vpop.f32.mrb[44].mxu1  ;;  %4636 = vmatmul.mubr.msk.bf16.vlgmr.msra.gmra.mrb[32].mxu0 %vm2121_vm3, %v2117_v22  ;;  %v8131_v22 = vld [vmem:[#allocation26_spill] sm:$0xff] }
 0x4fc   : > { %v2104_v14 = vadd.f32 %v4631_v53, %v8120_v29  ;;  %v2095_v63 = vpop.f32.mrb[45].mxu1  ;;  %v6814_v24 = vrot.slane %v4266_v60, %v8131_v22  ;;  %v8132_v53 = vld [vmem:[#allocation29_spill] sm:$0xff]  ;;  %v6855_v20 = vrot.slane %v4295_v1, %v8131_v22 }
 0x4fd   : > { %v2096_v28 = vadd.f32 %v2095_v63, %v8123_v9  ;;  %v4632_v62 = vpop.f32.mrb[46].mxu1  ;;  %v6817_v29 = vrot.slane %v4266_v60, %v8132_v53  ;;  %v4296_v63 = vld [vmem:[%s7881_s4 + $0x28] sm:$0x3] }
 0x4fe   : > { %v2098_v7 = vpop.f32.mrb[47].mxu1  ;;  %v2115_v9 = vmax.f32 %v2104_v14, 0.0  ;;  %v8133_v62 = vld [vmem:[#allocation27_spill] sm:$0xff]  ;;  %v6840_v14 = vmul.f32 %v6829_v27, %v8135_v56  ;;  %v6852_v44 = vrot.slane %v4296_v63, %v8121_v58  ;;  %8142 = vst [vmem:[#allocation43_spill] sm:$0xff] %v6855_v20 }
 0x4ff   : > { %v2099_v8 = vadd.f32 %v2098_v7, %v8129_v4  ;;  %v6823_v51 = vrot.slane %v4266_v60, %v8133_v62  ;;  %v2113_v7 = vmax.f32 %v2096_v28, 0.0  ;;  %v6836_v18 = vmul.f32 %v6817_v29, %v8135_v56 }
 0x500   : > { %8137 = vst [vmem:[#allocation36_spill] sm:$0xff] %v6840_v14  ;;  %v6843_v39 = vrot.slane %v4295_v1, %v8133_v62  ;;  %v6846_v60 = vrot.slane %v4295_v1, %v8132_v53  ;;  %v6849_v28 = vrot.slane %v4296_v63, %v8125_v19  ;;  %8141 = vst [vmem:[#allocation44_spill] sm:$0xff] %v6852_v44  ;;  %v8154_v14 = vld [vmem:[#allocation24_spill] sm:$0xff] }
 0x501   : > { %v2114_v4 = vmax.f32 %v2099_v8, 0.0  ;;  %8136 = vst [vmem:[#allocation47_spill] sm:$0xff] %v6836_v18  ;;  %v2119_v35 = vpack.c.bf16 %v2115_v9, %v2115_v9  ;;  %v8147_v19 = vpack.c.bf16 %v6537_v48, %v6527_v16 }
 0x502   : > { %8138 = vst [vmem:[#allocation35_spill] sm:$0xff] %v6843_v39  ;;  %8139 = vst [vmem:[#allocation37_spill] sm:$0xff] %v6846_v60  ;;  %v6864_v33 = vmul.f32 %v6846_v60, %v8135_v56  ;;  %v8153_v39 = vld [vmem:[#allocation32_spill] sm:$0xff] }
 0x503   : > { %8140 = vst [vmem:[#allocation38_spill] sm:$0xff] %v6849_v28  ;;  %v2118_v8 = vpack.c.bf16 %v2114_v4, %v2113_v7  ;;  %v4651_v15 = vpop.f32.mrb[48].mxu1  ;;  %v6868_v7 = vmul.f32 %v6849_v28, %v8135_v56 }
 0x504   : > { %v2309_v32 = vrot.slane %v4651_v15, 7  ;;  %v6860_v34 = vpop.f32.mrb[49].mxu1  ;;  %8144 = vst [vmem:[#allocation57_spill] sm:$0xff] %v6864_v33  ;;  %v2336_v63 = vrot.slane %v4651_v15, 1  ;;  %v2379_v4 = vmul.f32 %v4651_v15, %v6778_v46  ;;  %v6872_v49 = vmul.f32 %v4651_v15, %v6786_v59  ;;  %v8150_v33 = vld [vmem:[#allocation19_spill] sm:$0xff] }
 0x505   : > { %8145 = vst [vmem:[#allocation58_spill] sm:$0xff] %v6868_v7  ;;  %v2306_v1 = vrot.slane %v6860_v34, 7  ;;  %4639 = vmatprep.mubr.msk.bf16.mxu0 %vm2121_vm3, %v2118_v8  ;;  %v6876_v9 = vpop.f32.mrb[50].mxu1  ;;  %v6881_v12 = vmul.f32 %v6778_v46, %v6860_v34  ;;  %v6890_v22 = vmul.f32 %v6786_v59, %v6860_v34  ;;  %v6944_v57 = vmul.f32 %v4651_v15, %v6792_v50 }
 0x506   : > { %8146 = vst [vmem:[#allocation59_spill] sm:$0xff] %v6876_v9  ;;  %v2311_v56 = vrot.slane %v6876_v9, 7  ;;  %v2338_v62 = vrot.slane %v6876_v9, 1  ;;  %4640 = vmatmul.mubr.msk.bf16.gmra.mrb[36].mxu0 %vm2121_vm3, %v2119_v35  ;;  %v6886_v53 = vpop.f32.mrb[51].mxu1  ;;  %v2380_v8 = vmul.f32 %v6876_v9, %v6778_v46  ;;  %v6904_v58 = vmul.f32 %v6876_v9, %v6786_v59 }
 0x507   : > { %v2307_v25 = vrot.slane %v6886_v53, 7  ;;  %4665 = vmatprep.mubr.msk.bf16.mxu0 %vm692_vm2, %v8147_v19  ;;  %v2324_v35 = vsel %vm535_vm0, 0.0, %v2306_v1  ;;  %v2642_v2 = vpack.c.bf16 %v6886_v53, %v6860_v34  ;;  %v8149_v16 = vrot.slane %v6886_v53, 1 }
 0x508   : > { %v2312_v10 = vsel %vm535_vm0, %v2309_v32, %v2311_v56  ;;  %v2643_v19 = vpack.c.bf16 %v6876_v9, %v4651_v15  ;;  %v2378_v28 = vmul.f32 %v6778_v46, %v6886_v53  ;;  %v6924_v60 = vmul.f32 %v8151_v23, %v2324_v35 }
 0x509   : > { %v6909_v7 = vmul.f32 %v8148_v17, %v2312_v10  ;;  %v2308_v52 = vsel %vm535_vm0, %v2306_v1, %v2307_v25  ;;  %v2337_v48 = vsel %vm1686_vm4, %v8149_v16, %v2336_v63  ;;  %4657 = vmatprep.subr.bf16.mxu0 %v2642_v2  ;;  %v2310_v13 = vsel %vm535_vm0, %v2307_v25, %v2309_v32 }
 0x50a   : > { %v6917_v44 = vmul.f32 %v8150_v33, %v2308_v52  ;;  %v2339_v10 = vsel %vm1686_vm4, %v2336_v63, %v2338_v62  ;;  %v6930_v16 = vmul.f32 %v6786_v59, %v6886_v53  ;;  %4658 = vmatpush3.bf16.msra.mxu0 %v2642_v2  ;;  %v2327_v20 = vmul.f32 %v8153_v39, %v2310_v13  ;;  %v8155_v63 = vld [vmem:[#allocation33_spill] sm:$0xff] }
 0x50b   : > { %v2370_v1 = vmul.f32 %v6789_v38, %v6909_v7  ;;  %v6932_v52 = vpop.f32.mrb[52].mxu1  ;;  %v6936_v36 = vmul.f32 %v8154_v14, %v2337_v48  ;;  %4659 = vmatprep.subr.bf16.mxu0 %v2643_v19  ;;  %v2354_v35 = vmul.f32 %v8155_v63, %v2339_v10 }
 0x50c   : > { %8152 = vst [vmem:[#allocation60_spill] sm:$0xff] %v6932_v52  ;;  %v2368_v25 = vmul.f32 %v6789_v38, %v6917_v44  ;;  %v6940_v32 = vpop.f32.mrb[53].mxu1  ;;  %v6953_v45 = vmul.f32 %v6932_v52, %v6792_v50  ;;  %v2645_v10 = vpack.c.bf16 %v6932_v52, %v6932_v52  ;;  %v2369_v15 = vmul.f32 %v6789_v38, %v2327_v20 }
 0x50d   : > { %v6946_v18 = vadd.f32 %v2380_v8, %v2370_v1  ;;  %v2313_v13 = vrot.slane %v6940_v32, 7  ;;  %v4656_v39 = vpop.f32.mrb[54].mxu1  ;;  %v6962_v8 = vmul.f32 %v6932_v52, %v6786_v59  ;;  %v6973_v48 = vmul.f32 %v6786_v59, %v6940_v32 }
 0x50e   : > { %v2384_v54 = vadd.f32 %v2378_v28, %v2368_v25  ;;  %8156 = vst [vmem:[#allocation61_spill] sm:$0xff] %v6953_v45  ;;  %v6957_v63 = vpop.f32.mrb[55].mxu1  ;;  %v2381_v39 = vmul.f32 %v6778_v46, %v6940_v32  ;;  %4660 = vmatpush3.bf16.msra.mxu0 %v2643_v19  ;;  %v8158_v25 = vld [vmem:[#allocation23_spill] sm:$0xff]  ;;  %v2394_v52 = vmul.f32 %v6814_v24, %v6936_v36 }
 0x50f   : > { %8157 = vst [vmem:[#allocation62_spill] sm:$0xff] %v6962_v8  ;;  %v2314_v1 = vsel %vm535_vm0, %v2311_v56, %v2313_v13  ;;  %v7994_v28 = vrot.slane %v6957_v63, 7  ;;  %8160 = vst [vmem:[#allocation64_spill] sm:$0xff] %v6973_v48  ;;  %v2644_v45 = vpack.c.bf16 %v6957_v63, %v6940_v32  ;;  %v8161_v8 = vrot.slane %v6940_v32, 1 }
 0x510   : > { %v6969_v2 = vmul.f32 %v8158_v25, %v2314_v1  ;;  %v2385_v1 = vadd.f32 %v2379_v4, %v2369_v15  ;;  %v6992_v48 = vmul.f32 %v6786_v59, %v6957_v63  ;;  %v2395_v4 = vmul.f32 %v6814_v24, %v2354_v35 }
 0x511   : > { %v2341_v56 = vsel %vm1686_vm4, %v2338_v62, %v8161_v8  ;;  %v6983_v46 = vsel %vm535_vm0, %v2313_v13, %v7994_v28  ;;  %4661 = vmatprep.subr.bf16.mxu0 %v2644_v45  ;;  %v2659_v62 = vand.u32 %v2645_v10, %v8108_v6  ;;  %v8164_v8 = vld [vmem:[#allocation28_spill] sm:$0xff]  ;;  %v7001_v15 = vadd.f32 %v2394_v52, %v2384_v54 }
 0x512   : > { %8159 = vst [vmem:[#allocation63_spill] sm:$0xff] %v6969_v2  ;;  %8162 = vst [vmem:[#allocation65_spill] sm:$0xff] %v6983_v46  ;;  %v2371_v37 = vmul.f32 %v6789_v38, %v6969_v2  ;;  %v6996_v43 = vmul.f32 %v8164_v8, %v2341_v56  ;;  %4662 = vmatpush3.bf16.msra.mxu0 %v2644_v45  ;;  %v2443_v28 = vmul.f32 %v6823_v51, %v2327_v20 }
 0x513   : > { %8163 = vst [vmem:[#allocation66_spill] sm:$0xff] %v6992_v48  ;;  %v6998_v13 = vpop.f32.mrb[56].mxu1  ;;  %v7005_v19 = vmul.f32 %v6817_v29, %v2354_v35  ;;  %4663 = vmatprep.subr.bf16.mxu0 %v2659_v62  ;;  %v2497_v10 = vmul.f32 %v6826_v30, %v2327_v20  ;;  %v7014_v45 = vmul.f32 %v6826_v30, %v6909_v7 }
 0x514   : > { %v7007_v59 = vadd.f32 %v2381_v39, %v2371_v37  ;;  %v7009_v48 = vpop.f32.mrb[57].mxu1  ;;  %v7017_v56 = vmul.f32 %v6829_v27, %v2354_v35  ;;  %v7023_v37 = vmul.f32 %v6998_v13, %v6798_v42  ;;  %v7030_v20 = vmul.f32 %v6998_v13, %v6801_v0 }
 0x515   : > { %v2920_v39 = vrot.slane %v7009_v48, 7  ;;  %v7026_v8 = vpop.f32.mrb[58].mxu1  ;;  %v7035_v35 = vmul.f32 %v6798_v42, %v7009_v48  ;;  %v7043_v46 = vmul.f32 %v6801_v0, %v7009_v48 }
 0x516   : > { %8165 = vst [vmem:[#allocation67_spill] sm:$0xff] %v7007_v59  ;;  %8166 = vst [vmem:[#allocation68_spill] sm:$0xff] %v7023_v37  ;;  %v2925_v52 = vrot.slane %v7026_v8, 7  ;;  %v7038_v54 = vpop.f32.mrb[59].mxu1  ;;  %4664 = vmatpush3.bf16.msra.mxu0 %v2659_v62  ;;  %v2994_v9 = vmul.f32 %v7026_v8, %v6798_v42  ;;  %v7057_v61 = vmul.f32 %v7026_v8, %v6801_v0 }
 0x517   : > { %8167 = vst [vmem:[#allocation69_spill] sm:$0xff] %v7030_v20  ;;  %8168 = vst [vmem:[#allocation70_spill] sm:$0xff] %v7035_v35  ;;  %v2938_v37 = vsel %vm535_vm0, 0.0, %v2920_v39  ;;  %v8003_v2 = vrot.slane %v7038_v54, 7  ;;  %v8171_v35 = vrot.slane %v6998_v13, 7 }
 0x518   : > { %8169 = vst [vmem:[#allocation71_spill] sm:$0xff] %v7043_v46  ;;  %v7048_v59 = vmul.f32 %v8151_v23, %v2938_v37  ;;  %v8172_v37 = vrot.slane %v6998_v13, 1  ;;  %v8173_v23 = vrot.slane %v7038_v54, 1  ;;  %v3256_v46 = vpack.c.bf16 %v7038_v54, %v7009_v48 }
 0x519   : > { %v2926_v5 = vsel %vm535_vm0, %v8171_v35, %v2925_v52  ;;  %v2922_v20 = vsel %vm535_vm0, %v2920_v39, %v8003_v2  ;;  %v3257_v39 = vpack.c.bf16 %v7026_v8, %v6998_v13  ;;  %v7083_v2 = vadd.f32 %v2395_v4, %v2385_v1 }
 0x51a   : > { %8170 = vst [vmem:[#allocation72_spill] sm:$0xff] %v7048_v59  ;;  %v7060_v62 = vmul.f32 %v8148_v17, %v2926_v5  ;;  %v2951_v35 = vsel %vm1686_vm4, %v8173_v23, %v8172_v37  ;;  %v7073_v59 = vmul.f32 %v8150_v33, %v2922_v20  ;;  %v2992_v5 = vmul.f32 %v6798_v42, %v7038_v54 }
 0x51b   : > { %v8174_v17 = vpack.c.bf16 %v6506_v41, %v6513_v31  ;;  %4697 = vmatprep.subr.bf16.mxu1 %v3256_v46  ;;  %v8175_v20 = vpack.c.bf16 %v6615_v55, %v6600_v40  ;;  %v7092_v33 = vpop.f32.mrb[60].mxu1  ;;  %v2461_v41 = vadd.f32 %v6944_v57, %v2443_v28  ;;  %v2515_v31 = vadd.f32 %v6872_v49, %v2497_v10 }
 0x51c   : > { %v2984_v37 = vmul.f32 %v6804_v3, %v7060_v62  ;;  %8176 = vst [vmem:[#allocation73_spill] sm:$0xff] %v7092_v33  ;;  %v2982_v1 = vmul.f32 %v6804_v3, %v7073_v59  ;;  %v7103_v4 = vmul.f32 %v6801_v0, %v7038_v54  ;;  %4698 = vmatpush3.bf16.msra.mxu1 %v3256_v46  ;;  %v7105_v40 = vpop.f32.mrb[61].mxu1 }
 0x51d   : > { %4666 = vmatmul.mubr.msk.bf16.vlgmr.msra.gmra.mrb[40].mxu0 %vm692_vm2, %v8174_v17  ;;  %v7097_v17 = vmul.f32 %v8154_v14, %v2951_v35  ;;  %v3259_v49 = vpack.c.bf16 %v7092_v33, %v7092_v33  ;;  %4699 = vmatprep.subr.bf16.mxu1 %v3257_v39  ;;  %v2927_v28 = vrot.slane %v7105_v40, 7  ;;  %v4696_v10 = vpop.f32.mrb[62].mxu1  ;;  %v7118_v46 = vmul.f32 %v7092_v33, %v6807_v26 }
 0x51e   : > { %4669 = vmatprep.mubr.msk.bf16.mxu0 %vm692_vm2, %v8175_v20  ;;  %v7108_v20 = vadd.f32 %v2994_v9, %v2984_v37  ;;  %v7114_v35 = vadd.f32 %v2992_v5, %v2982_v1  ;;  %v2995_v23 = vmul.f32 %v6798_v42, %v7105_v40  ;;  %v7122_v9 = vpop.f32.mrb[63].mxu1  ;;  %v7128_v55 = vmul.f32 %v6801_v0, %v7105_v40 }
 0x51f   : > { %8177 = vst [vmem:[#allocation74_spill] sm:$0xff] %v7118_v46  ;;  %v2928_v57 = vsel %vm535_vm0, %v2925_v52, %v2927_v28  ;;  %v8010_v5 = vrot.slane %v7122_v9, 7  ;;  %v7133_v1 = vmul.f32 %v6801_v0, %v7122_v9  ;;  %v3258_v14 = vpack.c.bf16 %v7122_v9, %v7105_v40 }
 0x520   : > { %v7136_v10 = vmul.f32 %v8158_v25, %v2928_v57  ;;  %4700 = vmatpush3.bf16.msra.mxu1 %v3257_v39  ;;  %v3273_v37 = vand.u32 %v3259_v49, %v8108_v6  ;;  %v8179_v52 = vrot.slane %v7083_v2, 1  ;;  %v8180_v46 = vrot.slane %v7001_v15, 1 }
 0x521   : > { %8178 = vst [vmem:[#allocation75_spill] sm:$0xff] %v7133_v1  ;;  %v7149_v0 = vsel %vm535_vm0, %v2927_v28, %v8010_v5  ;;  %v2479_v39 = vadd.f32 %v7005_v19, %v2461_v41  ;;  %v2516_v25 = vadd.f32 %v6904_v58, %v7014_v45  ;;  %4701 = vmatprep.subr.bf16.mxu1 %v3258_v14  ;;  %v8183_v58 = vrot.slane %v6886_v53, 1 }
 0x522   : > { %v2415_v42 = vsel %vm1686_vm4, %v8180_v46, %v8179_v52  ;;  %8181 = vst [vmem:[#allocation76_spill] sm:$0xff] %v7149_v0  ;;  %v2985_v6 = vmul.f32 %v6804_v3, %v7136_v10  ;;  %v8182_v46 = vpack.c.bf16 %v6763_v47, %v6763_v47  ;;  %v2527_v28 = vmul.f32 %v6829_v27, %v6996_v43 }
 0x523   : > { %v2432_v57 = vadd.f32 %v2415_v42, %v6832_v11  ;;  %v7165_v42 = vadd.f32 %v7017_v56, %v2515_v31  ;;  %v8184_v45 = vrot.slane %v6860_v34, 1  ;;  %v2367_v52 = vmul.f32 %v6789_v38, %v6924_v60  ;;  %v8186_v31 = vld [vmem:[#allocation31_spill] sm:$0xff] }
 0x524   : > { %v2441_v47 = vmul.f32 %v6823_v51, %v6924_v60  ;;  %4702 = vmatpush3.bf16.msra.mxu1 %v3258_v14  ;;  %v7178_v5 = vadd.f32 %v2527_v28, %v2516_v25  ;;  %v2496_v14 = vmul.f32 %v6826_v30, %v6917_v44  ;;  %v8187_v1 = vrot.slane %v6957_v63, 1 }
 0x525   : > { %4670 = vmatmul.mubr.msk.bf16.gmra.mrb[44].mxu0 %vm692_vm2, %v8182_v46  ;;  %v2486_v19 = vadd.f32 %v2479_v39, %v2432_v57  ;;  %v2335_v41 = vsel %vm1686_vm4, %v8184_v45, %v8183_v58  ;;  %v7176_v46 = vadd.f32 %v2995_v23, %v2985_v6  ;;  %v2548_v56 = vrot.slane %v7165_v42, 7  ;;  %4703 = vmatprep.subr.bf16.mxu1 %v3273_v37  ;;  %v4872_v39 = vld [vmem:[%s7880_s3 + $0x3c] sm:$0xff]  }
 0x526   : > { %v2352_v57 = vmul.f32 %v8186_v31, %v2335_v41  ;;  %v2383_v58 = vadd.f32 %v6881_v12, %v2367_v52  ;;  %v2452_v45 = vmul.f32 %v6792_v50, %v6860_v34  ;;  %v2495_v6 = vmul.f32 %v6826_v30, %v6924_v60 }
 0x527   : > { %8185 = vst [vmem:[#allocation77_spill] sm:$0xff] %v7176_v46  ;;  %v8011_v25 = vrot.slane %v7178_v5, 7  ;;  %v2514_v52 = vadd.f32 %v6930_v16, %v2496_v14  ;;  %v2525_v34 = vmul.f32 %v6829_v27, %v6936_v36  ;;  %v8188_v46 = vrot.slane %v6940_v32, 1  ;;  %v4873_v16 = vld [vmem:[%s7880_s3 + $0x44] sm:$0xff]  }
 0x528   : > { %v2393_v23 = vmul.f32 %v6814_v24, %v2352_v57  ;;  %v2470_v28 = vmul.f32 %v6817_v29, %v2352_v57  ;;  %v2524_v42 = vmul.f32 %v6829_v27, %v2352_v57  ;;  %v2459_v41 = vadd.f32 %v2452_v45, %v2441_v47  ;;  %4704 = vmatpush3.bf16.msra.mxu1 %v3273_v37  ;;  %v8189_v14 = vld [vmem:[#allocation34_spill] sm:$0xff] }
 0x529   : > { %v2513_v12 = vadd.f32 %v6890_v22, %v2495_v6  ;;  %v2551_v60 = vsel %vm535_vm0, %v2548_v56, %v8011_v25  ;;  %v2343_v57 = vsel %vm1686_vm4, %v8188_v46, %v8187_v1  ;;  %v2396_v22 = vmul.f32 %v6814_v24, %v6996_v43  ;;  %4723 = vmatprep.subr.bf16.mxu1 %v4872_v39  ;;  %v8190_v46 = vld [vmem:[#allocation10_spill] sm:$0xff] }
 0x52a   : > { %v2399_v49 = vadd.f32 %v2393_v23, %v2383_v58  ;;  %v7213_v37 = vadd.f32 %v2551_v60, %v2486_v19  ;;  %v2477_v47 = vadd.f32 %v2470_v28, %v2459_v41  ;;  %v2532_v6 = vadd.f32 %v2525_v34, %v2514_v52  ;;  %v8192_v28 = vld [vmem:[#allocation59_spill] sm:$0xff]  ;;  %v8193_v41 = vld [vmem:[#allocation12_spill] sm:$0xff] }
 0x52b   : > { %v2531_v45 = vadd.f32 %v2524_v42, %v2513_v12  ;;  %v2356_v23 = vmul.f32 %v8189_v14, %v2343_v57  ;;  %v7217_v25 = vadd.f32 %v2396_v22, %v6946_v18  ;;  %v2444_v1 = vmul.f32 %v6823_v51, %v6909_v7  ;;  %v8194_v12 = vld [vmem:[#allocation11_spill] sm:$0xff] }
 0x52c   : > { %v2411_v58 = vrot.slane %v2399_v49, 1  ;;  %v8191_v33 = vpack.c.bf16 %v6572_v21, %v8190_v46  ;;  %v2546_v19 = vrot.slane %v2532_v6, 7  ;;  %v2455_v42 = vmul.f32 %v8192_v28, %v6792_v50  ;;  %v8196_v52 = vld [vmem:[#allocation63_spill] sm:$0xff] }
 0x52d   : > { %v2545_v0 = vrot.slane %v2531_v45, 7  ;;  %v2473_v49 = vmul.f32 %v6817_v29, %v6996_v43  ;;  %v8195_v18 = vpack.c.bf16 %v8193_v41, %v8194_v12  ;;  %v2416_v21 = vrot.slane %v7217_v25, 1  ;;  %v8199_v25 = vld [vmem:[#allocation64_spill] sm:$0xff] }
 0x52e   : > { %4706 = vmatmul.mubr.msk.bf16.vlgmr.msra.gmra.mrb[64].mxu1 %vm692_vm2, %v8191_v33  ;;  %v2429_v7 = vsel %vm1686_vm4, 0.0, %v2411_v58  ;;  %v2499_v33 = vmul.f32 %v6826_v30, %v8196_v52  ;;  %v2528_v34 = vmul.f32 %v6829_v27, %v2356_v23  ;;  %v2462_v57 = vadd.f32 %v2455_v42, %v2444_v1  ;;  %v8200_v42 = vld [vmem:[#allocation65_spill] sm:$0xff] }
 0x52f   : > { %4709 = vmatprep.mubr.msk.bf16.mxu1 %vm692_vm2, %v8195_v18  ;;  %4724 = vmatpush3.bf16.msra.mxu1 %v4872_v39  ;;  %v2430_v60 = vadd.f32 %v2429_v7, %v6832_v11  ;;  %v2547_v43 = vsel %vm535_vm0, %v2545_v0, %v2546_v19  ;;  %v8197_v22 = vrot.slane %v7001_v15, 1  ;;  %v8198_v39 = vrot.slane %v7083_v2, 1  ;;  %v8201_v7 = vld [vmem:[#allocation39_spill] sm:$0xff] }
 0x530   : > { %4725 = vmatprep.subr.bf16.mxu1 %v4873_v16  ;;  %v2517_v46 = vadd.f32 %v8199_v25, %v2499_v33  ;;  %v2442_v41 = vmul.f32 %v6823_v51, %v6917_v44  ;;  %v2480_v0 = vadd.f32 %v2473_v49, %v2462_v57  ;;  %v2453_v15 = vmul.f32 %v6792_v50, %v6886_v53  ;;  %v8204_v53 = vld [vmem:[#allocation41_spill] sm:$0xff]  ;;  %v8205_v57 = vld [vmem:[#allocation60_spill] sm:$0xff] }
 0x531   : > { %v2413_v45 = vsel %vm1686_vm4, %v2411_v58, %v8197_v22  ;;  %v2417_v6 = vsel %vm1686_vm4, %v8198_v39, %v2416_v21  ;;  %v2484_v12 = vadd.f32 %v2477_v47, %v2430_v60  ;;  %v2471_v2 = vmul.f32 %v6817_v29, %v6936_v36  ;;  %v8202_v22 = vld [vmem:[#allocation46_spill] sm:$0xff]  ;;  %v8208_v39 = vld [vmem:[#allocation51_spill] sm:$0xff] }
 0x532   : > { %v2431_v28 = vadd.f32 %v2413_v45, %v6832_v11  ;;  %v2433_v18 = vadd.f32 %v2417_v6, %v6832_v11  ;;  %v7253_v58 = vadd.f32 %v2528_v34, %v2517_v46  ;;  %v2549_v1 = vsel %vm535_vm0, %v2546_v19, %v2548_v56  ;;  %v8209_v6 = vld [vmem:[#allocation14_spill] sm:$0xff] }
 0x533   : > { %4726 = vmatpush3.bf16.msra.mxu1 %v4873_v16  ;;  %v2330_v33 = vmul.f32 %v8201_v7, %v8200_v42  ;;  %v7261_v44 = vadd.f32 %v2547_v43, %v2484_v12  ;;  %v2460_v49 = vadd.f32 %v2453_v15, %v2442_v41  ;;  %v8203_v60 = vrot.slane %v6957_v63, 7  ;;  %v8211_v41 = vld [vmem:[#allocation40_spill] sm:$0xff] }
 0x534   : > { %4727 = vmatprep.subr.bf16.mxu1 %v8202_v22  ;;  %v2487_v47 = vadd.f32 %v2480_v0, %v2433_v18  ;;  %v2552_v34 = vrot.slane %v7253_v58, 7  ;;  %v8206_v45 = vrot.slane %v8205_v57, 1  ;;  %v8207_v36 = vrot.slane %v6957_v63, 1 }
 0x535   : > { %v2331_v16 = vmul.f32 %v8204_v53, %v8203_v60  ;;  %v2372_v19 = vmul.f32 %v6789_v38, %v2330_v33  ;;  %v2382_v43 = vmul.f32 %v8208_v39, %v6957_v63  ;;  %v8210_v25 = vpack.c.bf16 %v8209_v6, %v8209_v6  ;;  %v8212_v38 = vld [vmem:[#allocation13_spill] sm:$0xff] }
 0x536   : > { %v2345_v56 = vsel %vm1686_vm4, %v8207_v36, %v8206_v45  ;;  %v2478_v46 = vadd.f32 %v2471_v2, %v2460_v49  ;;  %v2956_v15 = vrot.slane %v7122_v9, 1  ;;  %v8213_v58 = vrot.slane %v7178_v5, 7 }
 0x537   : > { %4710 = vmatmul.mubr.msk.bf16.gmra.mrb[68].mxu1 %vm692_vm2, %v8210_v25  ;;  %v2357_v12 = vmul.f32 %v8211_v41, %v2345_v56  ;;  %v2447_v18 = vmul.f32 %v6823_v51, %v2331_v16  ;;  %v2501_v0 = vmul.f32 %v6826_v30, %v2331_v16  ;;  %v2388_v60 = vadd.f32 %v2382_v43, %v2372_v19  ;;  %v8214_v16 = vld [vmem:[#allocation61_spill] sm:$0xff]  ;;  %v8215_v56 = vld [vmem:[#allocation67_spill] sm:$0xff] }
 0x538   : > { %4728 = vmatpush3.bf16.msra.mxu1 %v8202_v22  ;;  %4729 = vmatprep.mubr.msk.bf16.mxu1 %vm522_vm1, %v8212_v38  ;;  %v2553_v42 = vsel %vm535_vm0, %v8213_v58, %v2552_v34  ;;  %v2397_v2 = vmul.f32 %v6814_v24, %v2356_v23  ;;  %v2485_v57 = vadd.f32 %v2478_v46, %v2431_v28 }
 0x539   : > { %v7290_v49 = vadd.f32 %v2553_v42, %v2487_v47  ;;  %v2398_v45 = vmul.f32 %v6814_v24, %v2357_v12  ;;  %v2465_v36 = vadd.f32 %v8214_v16, %v2447_v18  ;;  %v2445_v22 = vmul.f32 %v6823_v51, %v8196_v52  ;;  %v8216_v47 = vld [vmem:[#allocation47_spill] sm:$0xff]  ;;  %v8217_v52 = vld [vmem:[#allocation66_spill] sm:$0xff]  ;;  %v8223_v16 = vld [vmem:[#allocation36_spill] sm:$0xff] }
 0x53a   : > { %v2403_v39 = vadd.f32 %v2397_v2, %v8215_v56  ;;  %v2456_v5 = vmul.f32 %v6792_v50, %v6940_v32  ;;  %v2474_v6 = vmul.f32 %v6817_v29, %v2356_v23  ;;  %v7300_v19 = vadd.f32 %v2549_v1, %v2485_v57  ;;  %v8218_v2 = vld [vmem:[#allocation62_spill] sm:$0xff]  ;;  %v8224_v56 = vld [vmem:[#allocation32_spill] sm:$0xff] }
 0x53b   : > { %v2404_v43 = vadd.f32 %v2398_v45, %v2388_v60  ;;  %v2483_v25 = vadd.f32 %v8216_v47, %v2465_v36  ;;  %v2500_v28 = vmul.f32 %v6826_v30, %v2330_v33  ;;  %v2529_v18 = vmul.f32 %v6829_v27, %v2357_v12 }
 0x53c   : > { %v2418_v24 = vrot.slane %v2403_v39, 1  ;;  %v2463_v46 = vadd.f32 %v2456_v5, %v2445_v22  ;;  %v2446_v38 = vmul.f32 %v6823_v51, %v2330_v33  ;;  %v2457_v32 = vmul.f32 %v6792_v50, %v6957_v63  ;;  %v8221_v51 = vld [vmem:[#allocation9_spill] sm:$0xff] }
 0x53d   : > { %v2420_v58 = vrot.slane %v2404_v43, 1  ;;  %v2518_v42 = vadd.f32 %v8217_v52, %v2500_v28  ;;  %v2475_v23 = vmul.f32 %v6817_v29, %v2357_v12  ;;  %v2519_v57 = vadd.f32 %v8218_v2, %v2501_v0 }
 0x53e   : > { %v2419_v1 = vsel %vm1686_vm4, %v2416_v21, %v2418_v24  ;;  %v2481_v60 = vadd.f32 %v2474_v6, %v2463_v46  ;;  %v8219_v30 = vrot.slane %v6998_v13, 7  ;;  %v8220_v45 = vrot.slane %v7038_v54, 7  ;;  %v8222_v21 = vld [vmem:[#allocation55_spill] sm:$0xff] }
 0x53f   : > { %4730 = vmatmul.mubr.msk.bf16.vlgmr.msra.gmra.mrb[72].mxu1 %vm522_vm1, %v8221_v51  ;;  %v2436_v33 = vadd.f32 %v2420_v58, %v6832_v11  ;;  %v2434_v50 = vadd.f32 %v2419_v1, %v6832_v11  ;;  %v2536_v63 = vadd.f32 %v2529_v18, %v2518_v42  ;;  %v2421_v29 = vsel %vm1686_vm4, %v2418_v24, %v2420_v58  ;;  %v8229_v58 = vld [vmem:[#allocation33_spill] sm:$0xff]  ;;  %v8230_v42 = vld [vmem:[#allocation28_spill] sm:$0xff] }
 0x540   : > { %v2924_v27 = vsel %vm535_vm0, %v8220_v45, %v8219_v30  ;;  %4733 = vmatprep.mubr.msk.bf16.mxu1 %vm522_vm1, %v8222_v21  ;;  %v2435_v12 = vadd.f32 %v2421_v29, %v6832_v11  ;;  %v2464_v0 = vadd.f32 %v2457_v32, %v2446_v38  ;;  %v2537_v36 = vadd.f32 %v8223_v16, %v2519_v57  ;;  %v8232_v51 = vld [vmem:[#allocation68_spill] sm:$0xff]  ;;  %v8235_v16 = vld [vmem:[#allocation45_spill] sm:$0xff] }
 0x541   : > { %v2941_v39 = vmul.f32 %v8224_v56, %v2924_v27  ;;  %v7327_v22 = vadd.f32 %v2483_v25, %v2436_v33  ;;  %v2488_v5 = vadd.f32 %v2481_v60, %v2434_v50  ;;  %v2554_v6 = vrot.slane %v2536_v63, 7  ;;  %v8231_v60 = vld [vmem:[#allocation43_spill] sm:$0xff] }
 0x542   : > { %v8225_v43 = vrot.slane %v7026_v8, 1  ;;  %v8226_v47 = vrot.slane %v6998_v13, 1  ;;  %v2482_v24 = vadd.f32 %v2475_v23, %v2464_v0  ;;  %v2556_v46 = vrot.slane %v2537_v36, 7  ;;  %v8233_v50 = vld [vmem:[#allocation35_spill] sm:$0xff]  ;;  %v8234_v0 = vld [vmem:[#allocation37_spill] sm:$0xff] }
 0x543   : > { %v8227_v18 = vrot.slane %v7105_v40, 1  ;;  %v2555_v25 = vsel %vm535_vm0, %v2552_v34, %v2554_v6  ;;  %v2983_v1 = vmul.f32 %v6804_v3, %v2941_v39  ;;  %v3008_v2 = vmul.f32 %v8231_v60, %v7097_v17 }
 0x544   : > { %v2953_v28 = vsel %vm1686_vm4, %v8226_v47, %v8225_v43  ;;  %v8228_v11 = vmov %v8225_v43  ;;  %v7347_v23 = vadd.f32 %v2555_v25, %v2488_v5  ;;  %v2489_v57 = vadd.f32 %v2482_v24, %v2435_v12  ;;  %v8236_v5 = vld [vmem:[#allocation49_spill] sm:$0xff]  ;;  %v8237_v47 = vld [vmem:[#allocation38_spill] sm:$0xff] }
 0x545   : > { %v2955_v38 = vsel %vm1686_vm4, %v8228_v11, %v8227_v18  ;;  %v2968_v52 = vmul.f32 %v8229_v58, %v2953_v28  ;;  %v2557_v30 = vsel %vm535_vm0, %v2554_v6, %v2556_v46  ;;  %v2999_v33 = vadd.f32 %v8232_v51, %v2983_v1  ;;  %v8238_v46 = vld [vmem:[#allocation69_spill] sm:$0xff] }
 0x546   : > { %v7342_v32 = vmul.f32 %v8230_v42, %v2955_v38  ;;  %v2564_v27 = vsel %vm1919_vm13, %v2557_v30, 0.0  ;;  %v7354_v34 = vadd.f32 %v3008_v2, %v7114_v35  ;;  %v3057_v63 = vmul.f32 %v8233_v50, %v2941_v39 }
 0x547   : > { %v3009_v45 = vmul.f32 %v8231_v60, %v2968_v52  ;;  %v7357_v29 = vadd.f32 %v2564_v27, %v2489_v57  ;;  %v3068_v21 = vmul.f32 %v6998_v13, %v6807_v26  ;;  %v3086_v12 = vmul.f32 %v8234_v0, %v2968_v52  ;;  %4734 = vmatmul.mubr.msk.bf16.gmra.mrb[76].mxu1 %vm522_vm1, %v8236_v5  ;;  %v8241_v57 = vld [vmem:[#allocation72_spill] sm:$0xff] }
 0x548   : > { %v3111_v36 = vmul.f32 %v8235_v16, %v2941_v39  ;;  %v3026_v43 = vrot.slane %v7354_v34, 1  ;;  %v3112_v35 = vmul.f32 %v8235_v16, %v7060_v62  ;;  %v3140_v28 = vmul.f32 %v8237_v47, %v2968_v52 }
 0x549   : > { %v7365_v6 = vadd.f32 %v3009_v45, %v2999_v33  ;;  %v3075_v24 = vadd.f32 %v3068_v21, %v3057_v63  ;;  %v3141_v13 = vmul.f32 %v8237_v47, %v7342_v32  ;;  %v8239_v39 = vrot.slane %v7038_v54, 1  ;;  %v8242_v63 = vld [vmem:[#allocation70_spill] sm:$0xff] }
 0x54a   : > { %v3129_v18 = vadd.f32 %v8238_v46, %v3111_v36  ;;  %v8240_v11 = vrot.slane %v7009_v48, 1  ;;  %v3130_v1 = vadd.f32 %v7057_v61, %v3112_v35  ;;  %v2981_v52 = vmul.f32 %v6804_v3, %v8241_v57  ;;  %v8243_v36 = vld [vmem:[#allocation44_spill] sm:$0xff] }
 0x54b   : > { %v3028_v25 = vrot.slane %v7365_v6, 1  ;;  %v3093_v30 = vadd.f32 %v3086_v12, %v3075_v24  ;;  %v3055_v27 = vmul.f32 %v8233_v50, %v8241_v57  ;;  %v3066_v51 = vmul.f32 %v6807_v26, %v7009_v48 }
 0x54c   : > { %v2949_v38 = vsel %vm1686_vm4, %v8240_v11, %v8239_v39  ;;  %v3147_v45 = vadd.f32 %v3140_v28, %v3129_v18  ;;  %v7389_v34 = vadd.f32 %v3141_v13, %v3130_v1  ;;  %v2997_v21 = vadd.f32 %v8242_v63, %v2981_v52  ;;  %v8244_v52 = vld [vmem:[#allocation71_spill] sm:$0xff] }
 0x54d   : > { %v2966_v2 = vmul.f32 %v8186_v31, %v2949_v38  ;;  %v3029_v33 = vsel %vm1686_vm4, %v3026_v43, %v3028_v25  ;;  %v3073_v35 = vadd.f32 %v3066_v51, %v3055_v27  ;;  %v3109_v48 = vmul.f32 %v8235_v16, %v8241_v57 }
 0x54e   : > { %v3046_v5 = vadd.f32 %v3029_v33, %v8243_v36  ;;  %v3162_v6 = vrot.slane %v3147_v45, 7  ;;  %v3164_v28 = vrot.slane %v7389_v34, 7  ;;  %v3110_v46 = vmul.f32 %v8235_v16, %v7073_v59 }
 0x54f   : > { %v3007_v61 = vmul.f32 %v8231_v60, %v2966_v2  ;;  %v3084_v12 = vmul.f32 %v8234_v0, %v2966_v2  ;;  %v3138_v39 = vmul.f32 %v8237_v47, %v2966_v2  ;;  %v3139_v11 = vmul.f32 %v8237_v47, %v7097_v17 }
 0x550   : > { %v3100_v18 = vadd.f32 %v3093_v30, %v3046_v5  ;;  %v3165_v38 = vsel %vm535_vm0, %v3162_v6, %v3164_v28  ;;  %v3127_v45 = vadd.f32 %v8244_v52, %v3109_v48  ;;  %v3128_v27 = vadd.f32 %v7103_v4, %v3110_v46 }
 0x551   : > { %v3013_v24 = vadd.f32 %v3007_v61, %v2997_v21  ;;  %v3091_v13 = vadd.f32 %v3084_v12, %v3073_v35  ;;  %v8245_v57 = vrot.slane %v7105_v40, 1  ;;  %v3010_v2 = vmul.f32 %v8231_v60, %v7342_v32 }
 0x552   : > { %v7406_v51 = vadd.f32 %v3165_v38, %v3100_v18  ;;  %v3058_v33 = vmul.f32 %v8233_v50, %v7060_v62  ;;  %v3145_v63 = vadd.f32 %v3138_v39, %v3127_v45  ;;  %v3146_v21 = vadd.f32 %v3139_v11, %v3128_v27 }
 0x553   : > { %v3025_v1 = vrot.slane %v3013_v24, 1  ;;  %v2957_v30 = vsel %vm1686_vm4, %v8245_v57, %v2956_v15  ;;  %v3016_v5 = vadd.f32 %v3010_v2, %v7108_v20  ;;  %v3069_v35 = vmul.f32 %v7026_v8, %v6807_v26 }
 0x554   : > { %v2970_v4 = vmul.f32 %v8189_v14, %v2957_v30  ;;  %v3087_v12 = vmul.f32 %v8234_v0, %v7342_v32  ;;  %v3159_v24 = vrot.slane %v3145_v63, 7  ;;  %v3160_v48 = vrot.slane %v3146_v21, 7  ;;  %v8248_v63 = vld [vmem:[#allocation73_spill] sm:$0xff] }
 0x555   : > { %v3043_v34 = vsel %vm1686_vm4, 0.0, %v3025_v1  ;;  %v3113_v62 = vmul.f32 %v8235_v16, %v7136_v10  ;;  %v3030_v39 = vrot.slane %v3016_v5, 1  ;;  %v3076_v11 = vadd.f32 %v3069_v35, %v3058_v33  ;;  %v8246_v33 = vld [vmem:[#allocation76_spill] sm:$0xff] }
 0x556   : > { %v3044_v61 = vadd.f32 %v3043_v34, %v8243_v36  ;;  %v3142_v46 = vmul.f32 %v8237_v47, %v2970_v4  ;;  %v3027_v38 = vsel %vm1686_vm4, %v3025_v1, %v3026_v43  ;;  %v3161_v20 = vsel %vm535_vm0, %v3159_v24, %v3160_v48 }
 0x557   : > { %v3131_v52 = vadd.f32 %v7128_v55, %v3113_v62  ;;  %v3045_v8 = vadd.f32 %v3027_v38, %v8243_v36  ;;  %v3056_v32 = vmul.f32 %v8233_v50, %v7073_v59  ;;  %v3031_v27 = vsel %vm1686_vm4, %v3028_v25, %v3030_v39 }
 0x558   : > { %v3098_v18 = vadd.f32 %v3091_v13, %v3044_v61  ;;  %v3094_v57 = vadd.f32 %v3087_v12, %v3076_v11  ;;  %v3067_v13 = vmul.f32 %v6807_v26, %v7038_v54  ;;  %v3047_v30 = vadd.f32 %v3031_v27, %v8243_v36 }
 0x559   : > { %v3149_v43 = vadd.f32 %v3142_v46, %v3131_v52  ;;  %v3085_v1 = vmul.f32 %v8234_v0, %v7097_v17  ;;  %v3163_v55 = vsel %vm535_vm0, %v3160_v48, %v3162_v6  ;;  %v2944_v59 = vmul.f32 %v8201_v7, %v8246_v33  ;;  %v8250_v6 = vld [vmem:[#allocation48_spill] sm:$0xff] }
 0x55a   : > { %v7434_v45 = vadd.f32 %v3161_v20, %v3098_v18  ;;  %v3074_v2 = vadd.f32 %v3067_v13, %v3056_v32  ;;  %v8247_v34 = vrot.slane %v7122_v9, 7  ;;  %v8249_v21 = vrot.slane %v8248_v63, 1  ;;  %v8251_v32 = vld [vmem:[#allocation74_spill] sm:$0xff] }
 0x55b   : > { %v3101_v61 = vadd.f32 %v3094_v57, %v3047_v30  ;;  %v3166_v5 = vrot.slane %v3149_v43, 7  ;;  %v2996_v35 = vmul.f32 %v8250_v6, %v7122_v9  ;;  %v2986_v24 = vmul.f32 %v6804_v3, %v2944_v59  ;;  %v8252_v3 = vld [vmem:[#allocation77_spill] sm:$0xff]  ;;  %v8253_v43 = vld [vmem:[#allocation50_spill] sm:$0xff] }
 0x55c   : > { %v2945_v25 = vmul.f32 %v8204_v53, %v8247_v34  ;;  %v2959_v54 = vsel %vm1686_vm4, %v2956_v15, %v8249_v21  ;;  %v3092_v12 = vadd.f32 %v3085_v1, %v3074_v2  ;;  %v3011_v15 = vmul.f32 %v8231_v60, %v2970_v4  ;;  %v8254_v34 = vld [vmem:[#allocation75_spill] sm:$0xff] }
 0x55d   : > { %v2971_v17 = vmul.f32 %v8211_v41, %v2959_v54  ;;  %v3167_v46 = vsel %vm535_vm0, %v3164_v28, %v3166_v5  ;;  %v3059_v11 = vmul.f32 %v8233_v50, %v7136_v10  ;;  %v3002_v52 = vadd.f32 %v2996_v35, %v2986_v24 }
 0x55e   : > { %v3061_v48 = vmul.f32 %v8233_v50, %v2945_v25  ;;  %v3115_v62 = vmul.f32 %v8235_v16, %v2945_v25  ;;  %v7464_v38 = vadd.f32 %v3167_v46, %v3101_v61  ;;  %v3099_v20 = vadd.f32 %v3092_v12, %v3045_v8  ;;  %v8256_v46 = vld [vmem:[#allocation58_spill] sm:$0xff] }
 0x55f   : > { %v3012_v18 = vmul.f32 %v8231_v60, %v2971_v17  ;;  %v3017_v57 = vadd.f32 %v3011_v15, %v8252_v3  ;;  %v3070_v13 = vmul.f32 %v6807_v26, %v7105_v40  ;;  %v3088_v28 = vmul.f32 %v8234_v0, %v2970_v4  ;;  %v8255_v40 = vld [vmem:[#allocation57_spill] sm:$0xff] }
 0x560   : > { %v3079_v27 = vadd.f32 %v8251_v32, %v3061_v48  ;;  %v3114_v30 = vmul.f32 %v8235_v16, %v2944_v59  ;;  %v3126_v60 = vmul.f32 %v8248_v63, %v8253_v43  ;;  %v7474_v1 = vadd.f32 %v3163_v55, %v3099_v20  ;;  %v4278_v32 = vld [vmem:[%s7882_s5 + $0x20] sm:$0xff]  ;;  %v4307_v3 = vld [vmem:[%s7882_s5 + $0x38] sm:$0xff] }
 0x561   : > { %v3018_v10 = vadd.f32 %v3012_v18, %v3002_v52  ;;  %v3143_v8 = vmul.f32 %v8237_v47, %v2971_v17  ;;  %v3032_v2 = vrot.slane %v3017_v57, 1  ;;  %v3077_v33 = vadd.f32 %v3070_v13, %v3059_v11 }
 0x562   : > { %v3132_v25 = vadd.f32 %v8254_v34, %v3114_v30  ;;  %v3060_v21 = vmul.f32 %v8233_v50, %v2944_v59  ;;  %v3097_v61 = vadd.f32 %v8255_v40, %v3079_v27  ;;  %v3071_v16 = vmul.f32 %v6807_v26, %v7122_v9 }
 0x563   : > { %v3034_v54 = vrot.slane %v3018_v10, 1  ;;  %v3133_v4 = vadd.f32 %v3126_v60, %v3115_v62  ;;  %v3033_v63 = vsel %vm1686_vm4, %v3030_v39, %v3032_v2  ;;  %v3095_v55 = vadd.f32 %v3088_v28, %v3077_v33 }
 0x564   : > { %v3150_v6 = vadd.f32 %v3143_v8, %v3132_v25  ;;  %v3089_v35 = vmul.f32 %v8234_v0, %v2971_v17  ;;  %v3048_v12 = vadd.f32 %v3033_v63, %v8243_v36  ;;  %v3078_v50 = vadd.f32 %v3071_v16, %v3060_v21 }
 0x565   : > { %v3050_v47 = vadd.f32 %v3034_v54, %v8243_v36  ;;  %v3035_v24 = vsel %vm1686_vm4, %v3032_v2, %v3034_v54  ;;  %v3151_v18 = vadd.f32 %v8256_v46, %v3133_v4  ;;  %vm4058_vm1 = vcmask 253952  }
 0x566   : > { %v3168_v59 = vrot.slane %v3150_v6, 7  ;;  %v3049_v48 = vadd.f32 %v3035_v24, %v8243_v36  ;;  %v3102_v9 = vadd.f32 %v3095_v55, %v3048_v12  ;;  %v3096_v39 = vadd.f32 %v3089_v35, %v3078_v50  ;;  %v4277_v36 = vld [vmem:[%s7882_s5 + $0x18] sm:$0xff] }
 0x567   : > { %v7489_v26 = vadd.f32 %v3097_v61, %v3050_v47  ;;  %v3170_v15 = vrot.slane %v3151_v18, 7  ;;  %v2739_v27 = vpack.c.bf16 %v4278_v32, %v4277_v36 }
 0x568   : > { %v3169_v62 = vsel %vm535_vm0, %v3166_v5, %v3168_v59  ;;  %v3103_v17 = vadd.f32 %v3096_v39, %v3049_v48  ;;  %v4306_v5 = vld [vmem:[%s7882_s5 + $0x30] sm:$0xff] }
 0x569   : > { %v7492_v0 = vadd.f32 %v3169_v62, %v3102_v9  ;;  %v3171_v11 = vsel %vm535_vm0, %v3168_v59, %v3170_v15  ;;  %4673 = vmatprep.subr.bf16.mxu0 %v2739_v27  ;;  %v3353_v57 = vpack.c.bf16 %v4307_v3, %v4306_v5  ;;  %v4325_v5 = vld [vmem:[%s7881_s4 + $0x38] sm:$0x3] }
 0x56a   : > { %v3178_v20 = vsel %vm1919_vm13, %v3171_v11, 0.0  ;;  %4674 = vmatpush3.bf16.msra.mxu0 %v2739_v27  ;;  %v8258_v11 = vld [vmem:[#allocation15_spill] sm:$0xff] }
 0x56b   : > { %v7496_v52 = vadd.f32 %v3178_v20, %v3103_v17  ;;  %4713 = vmatprep.subr.bf16.mxu0 %v3353_v57  ;;  %v8257_v17 = vld [vmem:[#allocation56_spill] sm:$0xff] }
 0x56c   : > { %v7527_v20 = vadd.f32 %v8258_v11, %v8257_v17 }
 0x5f0   : > { %v4667_v13 = vpop.f32.mrb[40].mxu0 }
 0x5f1   : > { %v2704_v28 = vadd.f32 %v4667_v13, %v7213_v37  ;;  %v2695_v30 = vpop.f32.mrb[41].mxu0 }
 0x5f2   : > { %v2696_v43 = vadd.f32 %v2695_v30, %v7261_v44  ;;  %v4668_v60 = vpop.f32.mrb[42].mxu0  ;;  %v4336_v30 = vld [vmem:[%s7882_s5 + $0x50] sm:$0xff] }
 0x5f3   : > { %v2707_v10 = vadd.f32 %v4668_v60, %v7290_v49  ;;  %v2698_v8 = vpop.f32.mrb[43].mxu0  ;;  %v2727_v33 = vmax.f32 %v2704_v28, 0.0 }
 0x5f4   : > { %v2699_v2 = vadd.f32 %v2698_v8, %v7300_v19  ;;  %v2725_v25 = vmax.f32 %v2696_v43, 0.0  ;;  %v8260_v43 = vld [vmem:[#allocation20_spill] sm:$0xff] }
 0x5f5   : > { %v2728_v34 = vmax.f32 %v2707_v10, 0.0  ;;  %v8261_v10 = vld [vmem:[#allocation17_spill] sm:$0xff] }
 0x5f6   : > { %v2726_v21 = vmax.f32 %v2699_v2, 0.0 }
 0x5f7   : > { %v2733_v54 = vpack.c.bf16 %v2728_v34, %v2727_v33  ;;  %v8263_v33 = vld [vmem:[#allocation26_spill] sm:$0xff] }
 0x5f8   : > { %v2732_v40 = vpack.c.bf16 %v2726_v21, %v2725_v25  ;;  %v4671_v61 = vpop.f32.mrb[44].mxu0 }
 0x5f9   : > { %v2720_v16 = vadd.f32 %v4671_v61, %v7327_v22  ;;  %v2711_v4 = vpop.f32.mrb[45].mxu0  ;;  %v7567_v61 = vrot.slane %v4325_v5, %v8261_v10 }
 0x5fa   : > { %v2712_v37 = vadd.f32 %v2711_v4, %v7347_v23  ;;  %v4672_v63 = vpop.f32.mrb[46].mxu0  ;;  %4675 = vmatprep.mubr.msk.bf16.mxu0 %vm2121_vm3, %v2732_v40 }
 0x5fb   : > { %v2714_v44 = vpop.f32.mrb[47].mxu0  ;;  %4676 = vmatmul.mubr.msk.bf16.vlgmr.msra.gmra.mrb[32].mxu0 %vm2121_vm3, %v2733_v54  ;;  %v2731_v19 = vmax.f32 %v2720_v16, 0.0  ;;  %v8264_v54 = vld [vmem:[#allocation29_spill] sm:$0xff] }
 0x5fc   : > { %v2715_v49 = vadd.f32 %v2714_v44, %v7357_v29  ;;  %4714 = vmatpush3.bf16.msra.mxu0 %v3353_v57  ;;  %v2729_v55 = vmax.f32 %v2712_v37, 0.0  ;;  %v8259_v57 = vld [vmem:[#allocation16_spill] sm:$0xff]  ;;  %v8265_v37 = vld [vmem:[#allocation27_spill] sm:$0xff]  ;;  %v8266_v44 = vld [vmem:[#allocation30_spill] sm:$0xff] }
 0x5fd   : > { %v2735_v47 = vpack.c.bf16 %v2731_v19, %v2731_v19  ;;  %v7572_v4 = vrot.slane %v4325_v5, %v8259_v57  ;;  %v8271_v5 = vld [vmem:[#allocation21_spill] sm:$0xff] }
 0x5fe   : > { %v2730_v6 = vmax.f32 %v2715_v49, 0.0 }
 0x600   : > { %v2734_v35 = vpack.c.bf16 %v2730_v6, %v2729_v55 }
 0x601   : > { %v4707_v12 = vpop.f32.mrb[64].mxu1 }
 0x602   : > { %v3318_v22 = vadd.f32 %v4707_v12, %v7406_v51  ;;  %v3309_v24 = vpop.f32.mrb[65].mxu1  ;;  %4679 = vmatprep.mubr.msk.bf16.mxu0 %vm2121_vm3, %v2734_v35  ;;  %v8267_v35 = vld [vmem:[#allocation42_spill] sm:$0xff] }
 0x603   : > { %v3310_v23 = vadd.f32 %v3309_v24, %v7434_v45  ;;  %v4708_v50 = vpop.f32.mrb[66].mxu1  ;;  %4680 = vmatmul.mubr.msk.bf16.gmra.mrb[36].mxu0 %vm2121_vm3, %v2735_v47  ;;  %v7586_v12 = vmul.f32 %v7567_v61, %v8267_v35 }
 0x604   : > { %v3321_v59 = vadd.f32 %v4708_v50, %v7464_v38  ;;  %v3312_v29 = vpop.f32.mrb[67].mxu1  ;;  %v3341_v46 = vmax.f32 %v3318_v22, 0.0  ;;  %v4324_v38 = vld [vmem:[%s7881_s4 + $0x30] sm:$0xff] }
 0x605   : > { %v3313_v48 = vadd.f32 %v3312_v29, %v7474_v1  ;;  %v3339_v9 = vmax.f32 %v3310_v23, 0.0  ;;  %v7541_v13 = vrot.slane %v4324_v38, %v8259_v57  ;;  %v7552_v60 = vrot.slane %v4324_v38, %v8260_v43 }
 0x606   : > { %v3342_v18 = vmax.f32 %v3321_v59, 0.0  ;;  %v7555_v8 = vrot.slane %v4324_v38, %v8261_v10  ;;  %v7561_v34 = vrot.slane %v4324_v38, %v8263_v33  ;;  %v7564_v40 = vrot.slane %v4324_v38, %v8264_v54  ;;  %v8274_v54 = vld [vmem:[#allocation24_spill] sm:$0xff] }
 0x607   : > { %v3340_v39 = vmax.f32 %v3313_v48, 0.0  ;;  %v7575_v63 = vrot.slane %v4324_v38, %v8265_v37  ;;  %v7578_v49 = vrot.slane %v4324_v38, %v8266_v44 }
 0x608   : > { %v3347_v62 = vpack.c.bf16 %v3342_v18, %v3341_v46  ;;  %v7582_v47 = vmul.f32 %v7564_v40, %v8267_v35 }
 0x609   : > { %v3346_v15 = vpack.c.bf16 %v3340_v39, %v3339_v9 }
 0x60a   : > { %v4711_v51 = vpop.f32.mrb[68].mxu1 }
 0x60b   : > { %v3334_v45 = vadd.f32 %v4711_v51, %v7489_v26  ;;  %v3325_v36 = vpop.f32.mrb[69].mxu1  ;;  %4715 = vmatprep.mubr.msk.bf16.mxu0 %vm2121_vm3, %v3346_v15 }
 0x60c   : > { %v3326_v1 = vadd.f32 %v3325_v36, %v7492_v0  ;;  %v4712_v32 = vpop.f32.mrb[70].mxu1  ;;  %4716 = vmatmul.mubr.msk.bf16.vlgmr.msra.gmra.mrb[32].mxu0 %vm2121_vm3, %v3347_v62  ;;  %v4335_v0 = vld [vmem:[%s7882_s5 + $0x48] sm:$0xff] }
 0x60d   : > { %v3328_v27 = vpop.f32.mrb[71].mxu1  ;;  %v3345_v3 = vmax.f32 %v3334_v45, 0.0  ;;  %v7569_v16 = vpack.c.bf16 %v4336_v30, %v4335_v0  ;;  %v8269_v32 = vld [vmem:[#allocation25_spill] sm:$0xff]  ;;  %v8272_v30 = vld [vmem:[#allocation18_spill] sm:$0xff] }
 0x60e   : > { %v3329_v26 = vadd.f32 %v3328_v27, %v7496_v52  ;;  %v8262_v52 = vld [vmem:[#allocation22_spill] sm:$0xff]  ;;  %v3343_v25 = vmax.f32 %v3326_v1, 0.0  ;;  %v8268_v1 = vld [vmem:[#allocation52_spill] sm:$0xff] }
 0x60f   : > { %v7558_v2 = vrot.slane %v4324_v38, %v8262_v52  ;;  %v3349_v19 = vpack.c.bf16 %v3345_v3, %v3345_v3  ;;  %v8270_v27 = vpack.c.bf16 %v8268_v1, %v8269_v32 }
 0x610   : > { %v3344_v21 = vmax.f32 %v3329_v26, 0.0 }
 0x612   : > { %v3348_v55 = vpack.c.bf16 %v3344_v21, %v3343_v25  ;;  %v4731_v6 = vpop.f32.mrb[72].mxu1  ;;  %v8273_v25 = vld [vmem:[#allocation19_spill] sm:$0xff] }
 0x613   : > { %v3537_v22 = vrot.slane %v4731_v6, 7  ;;  %v3564_v24 = vrot.slane %v4731_v6, 1  ;;  %v7589_v23 = vmul.f32 %v4731_v6, %v7541_v13  ;;  %v7592_v50 = vmul.f32 %v4731_v6, %v7552_v60  ;;  %v7594_v59 = vpop.f32.mrb[73].mxu1 }
 0x614   : > { %v3534_v29 = vrot.slane %v7594_v59, 7  ;;  %v7600_v46 = vmul.f32 %v7541_v13, %v7594_v59  ;;  %v7604_v18 = vmul.f32 %v7552_v60, %v7594_v59  ;;  %4719 = vmatprep.mubr.msk.bf16.mxu0 %vm2121_vm3, %v3348_v55  ;;  %v7607_v9 = vpop.f32.mrb[74].mxu1  ;;  %v3682_v1 = vmul.f32 %v4731_v6, %v7558_v2 }
 0x615   : > { %v3539_v39 = vrot.slane %v7607_v9, 7  ;;  %v3566_v62 = vrot.slane %v7607_v9, 1  ;;  %v3608_v15 = vmul.f32 %v7607_v9, %v7541_v13  ;;  %v7615_v51 = vmul.f32 %v7607_v9, %v7552_v60  ;;  %4720 = vmatmul.mubr.msk.bf16.gmra.mrb[36].mxu0 %vm2121_vm3, %v3349_v19  ;;  %v7618_v17 = vpop.f32.mrb[75].mxu1 }
 0x616   : > { %v3552_v11 = vsel %vm535_vm0, 0.0, %v3534_v29  ;;  %v3535_v45 = vrot.slane %v7618_v17, 7  ;;  %v3562_v36 = vrot.slane %v7618_v17, 1  ;;  %v3606_v38 = vmul.f32 %v7541_v13, %v7618_v17  ;;  %4745 = vmatprep.mubr.msk.bf16.mxu0 %vm692_vm2, %v8270_v27 }
 0x617   : > { %v7630_v3 = vmul.f32 %v8271_v5, %v3552_v11  ;;  %v3540_v26 = vsel %vm535_vm0, %v3537_v22, %v3539_v39  ;;  %v7635_v57 = vmul.f32 %v7552_v60, %v7618_v17  ;;  %v3870_v0 = vpack.c.bf16 %v7618_v17, %v7594_v59 }
 0x618   : > { %v7640_v43 = vmul.f32 %v8272_v30, %v3540_v26  ;;  %v3536_v10 = vsel %vm535_vm0, %v3534_v29, %v3535_v45  ;;  %v3565_v52 = vsel %vm1686_vm4, %v3562_v36, %v3564_v24  ;;  %v3871_v33 = vpack.c.bf16 %v7607_v9, %v4731_v6 }
 0x619   : > { %v7648_v21 = vmul.f32 %v8273_v25, %v3536_v10  ;;  %v7651_v37 = vmul.f32 %v8274_v54, %v3565_v52  ;;  %4737 = vmatprep.subr.bf16.mxu0 %v3870_v0  ;;  %v3538_v44 = vsel %vm535_vm0, %v3535_v45, %v3537_v22  ;;  %v3567_v19 = vsel %vm1686_vm4, %v3564_v24, %v3566_v62 }
 0x61a   : > { %v3598_v55 = vmul.f32 %v7555_v8, %v7640_v43  ;;  %4738 = vmatpush3.bf16.msra.mxu0 %v3870_v0  ;;  %v4735_v35 = vpop.f32.mrb[76].mxu1  ;;  %v3555_v29 = vmul.f32 %v8224_v56, %v3538_v44  ;;  %v3582_v11 = vmul.f32 %v8229_v58, %v3567_v19  ;;  %v8275_v19 = vld [vmem:[#allocation23_spill] sm:$0xff] }
 0x61b   : > { %v3596_v32 = vmul.f32 %v7555_v8, %v7648_v21  ;;  %v3572_v27 = vrot.slane %v4735_v35, 1  ;;  %v7665_v22 = vmul.f32 %v4735_v35, %v7558_v2  ;;  %v7668_v24 = vmul.f32 %v4735_v35, %v7552_v60  ;;  %4739 = vmatprep.subr.bf16.mxu0 %v3871_v33  ;;  %v7670_v45 = vpop.f32.mrb[77].mxu1 }
 0x61c   : > { %v7672_v5 = vadd.f32 %v3608_v15, %v3598_v55  ;;  %v3873_v56 = vpack.c.bf16 %v4735_v35, %v4735_v35  ;;  %v3541_v58 = vrot.slane %v7670_v45, 7  ;;  %v3568_v6 = vrot.slane %v7670_v45, 1  ;;  %v4736_v26 = vpop.f32.mrb[78].mxu1 }
 0x61d   : > { %v3612_v0 = vadd.f32 %v3606_v38, %v3596_v32  ;;  %v3609_v30 = vmul.f32 %v7541_v13, %v7670_v45  ;;  %v7680_v10 = vmul.f32 %v7552_v60, %v7670_v45  ;;  %v7682_v52 = vpop.f32.mrb[79].mxu1  ;;  %v3597_v25 = vmul.f32 %v7555_v8, %v3555_v29 }
 0x61e   : > { %v3542_v15 = vsel %vm535_vm0, %v3539_v39, %v3541_v58  ;;  %v3543_v54 = vrot.slane %v7682_v52, 7  ;;  %v3570_v44 = vrot.slane %v7682_v52, 1  ;;  %v7690_v38 = vmul.f32 %v7541_v13, %v7682_v52  ;;  %4740 = vmatpush3.bf16.msra.mxu0 %v3871_v33 }
 0x61f   : > { %v7693_v55 = vmul.f32 %v8275_v19, %v3542_v15  ;;  %v7697_v35 = vmul.f32 %v7558_v2, %v7682_v52  ;;  %v7701_v32 = vmul.f32 %v7552_v60, %v7682_v52  ;;  %v3872_v39 = vpack.c.bf16 %v7682_v52, %v7670_v45  ;;  %v8276_v15 = vld [vmem:[#allocation6_spill] sm:$0xff] }
 0x620   : > { %v3544_v13 = vsel %vm535_vm0, %v3541_v58, %v3543_v54  ;;  %v3571_v33 = vsel %vm1686_vm4, %v3568_v6, %v3570_v44  ;;  %v7710_v26 = vsel %vm1686_vm4, %v3570_v44, %v3572_v27  ;;  %v3887_v19 = vand.u32 %v3873_v56, %v8276_v15 }
 0x621   : > { %v3599_v28 = vmul.f32 %v7555_v8, %v7693_v55  ;;  %v7716_v60 = vmul.f32 %v8201_v7, %v3544_v13  ;;  %v7719_v48 = vmul.f32 %v8189_v14, %v3571_v33  ;;  %4741 = vmatprep.subr.bf16.mxu0 %v3872_v39  ;;  %v3569_v58 = vsel %vm1686_vm4, %v3566_v62, %v3568_v6 }
 0x622   : > { %4742 = vmatpush3.bf16.msra.mxu0 %v3872_v39  ;;  %v3583_v27 = vmul.f32 %v8230_v42, %v3569_v58  ;;  %v3613_v44 = vadd.f32 %v7589_v23, %v3597_v25  ;;  %v3622_v56 = vmul.f32 %v7561_v34, %v7651_v37  ;;  %v3623_v15 = vmul.f32 %v7561_v34, %v3582_v11 }
 0x623   : > { %v7729_v7 = vadd.f32 %v3609_v30, %v3599_v28  ;;  %4743 = vmatprep.subr.bf16.mxu0 %v3887_v19  ;;  %v3671_v14 = vmul.f32 %v7575_v63, %v3555_v29  ;;  %v3700_v13 = vmul.f32 %v7564_v40, %v3582_v11  ;;  %v3725_v33 = vmul.f32 %v7578_v49, %v3555_v29 }
 0x624   : > { %v3628_v62 = vadd.f32 %v3622_v56, %v3612_v0  ;;  %v7734_v6 = vadd.f32 %v3623_v15, %v3613_v44  ;;  %v3726_v42 = vmul.f32 %v7578_v49, %v7640_v43  ;;  %v3754_v23 = vmul.f32 %v7567_v61, %v3582_v11 }
 0x625   : > { %v3689_v25 = vadd.f32 %v3682_v1, %v3671_v14  ;;  %v3743_v39 = vadd.f32 %v7592_v50, %v3725_v33  ;;  %v3755_v28 = vmul.f32 %v7567_v61, %v3583_v27  ;;  %v8277_v30 = vrot.slane %v7594_v59, 1  ;;  %v8279_v33 = vld [vmem:[#allocation7_spill] sm:$0xff] }
 0x626   : > { %4744 = vmatpush3.bf16.msra.mxu0 %v3887_v19  ;;  %v3640_v29 = vrot.slane %v3628_v62, 1  ;;  %v3642_v0 = vrot.slane %v7734_v6, 1  ;;  %v3744_v44 = vadd.f32 %v7615_v51, %v3726_v42  ;;  %v3595_v1 = vmul.f32 %v7555_v8, %v7630_v3 }
 0x627   : > { %v3563_v58 = vsel %vm1686_vm4, %v8277_v30, %v3562_v36  ;;  %4753 = vmatprep.subr.bf16.mxu0 %v7569_v16  ;;  %v3707_v11 = vadd.f32 %v3700_v13, %v3689_v25  ;;  %v3761_v50 = vadd.f32 %v3754_v23, %v3743_v39  ;;  %v3669_v15 = vmul.f32 %v7575_v63, %v7630_v3  ;;  %v8281_v25 = vld [vmem:[#allocation54_spill] sm:$0xff]  ;;  %v8282_v39 = vld [vmem:[#allocation53_spill] sm:$0xff] }
 0x628   : > { %v3580_v56 = vmul.f32 %v8186_v31, %v3563_v58  ;;  %v3643_v36 = vsel %vm1686_vm4, %v3640_v29, %v3642_v0  ;;  %v7755_v19 = vadd.f32 %v3755_v28, %v3744_v44  ;;  %v3680_v51 = vmul.f32 %v7558_v2, %v7594_v59  ;;  %v8278_v31 = vld [vmem:[#allocation8_spill] sm:$0xff] }
 0x629   : > { %v8280_v62 = vpack.c.bf16 %v8278_v31, %v8279_v33  ;;  %v3660_v13 = vadd.f32 %v3643_v36, %v7572_v4  ;;  %v3776_v6 = vrot.slane %v3761_v50, 7  ;;  %v3611_v42 = vadd.f32 %v7600_v46, %v3595_v1 }
 0x62a   : > { %v3621_v14 = vmul.f32 %v7561_v34, %v3580_v56  ;;  %v3698_v23 = vmul.f32 %v7564_v40, %v3580_v56  ;;  %v8283_v28 = vpack.c.bf16 %v8281_v25, %v8282_v39  ;;  %v3778_v59 = vrot.slane %v7755_v19, 7 }
 0x62b   : > { %4746 = vmatmul.mubr.msk.bf16.vlgmr.msra.gmra.mrb[48].mxu0 %vm692_vm2, %v8280_v62  ;;  %v3687_v30 = vadd.f32 %v3680_v51, %v3669_v15  ;;  %v3723_v58 = vmul.f32 %v7578_v49, %v7630_v3  ;;  %v3724_v44 = vmul.f32 %v7578_v49, %v7648_v21  ;;  %v3714_v50 = vadd.f32 %v3707_v11, %v3660_v13 }
 0x62c   : > { %4749 = vmatprep.mubr.msk.bf16.mxu0 %vm692_vm2, %v8283_v28  ;;  %4754 = vmatpush3.bf16.msra.mxu0 %v7569_v16  ;;  %v3627_v46 = vadd.f32 %v3621_v14, %v3611_v42  ;;  %v3752_v1 = vmul.f32 %v7567_v61, %v3580_v56  ;;  %v3753_v36 = vmul.f32 %v7567_v61, %v7651_v37 }
 0x62d   : > { %v3779_v31 = vsel %vm535_vm0, %v3776_v6, %v3778_v59  ;;  %v3705_v33 = vadd.f32 %v3698_v23, %v3687_v30  ;;  %v3741_v16 = vadd.f32 %v7604_v18, %v3723_v58  ;;  %v3742_v15 = vadd.f32 %v7635_v57, %v3724_v44 }
 0x62e   : > { %v7783_v19 = vadd.f32 %v3779_v31, %v3714_v50  ;;  %v3639_v3 = vrot.slane %v3627_v46, 1  ;;  %v3624_v51 = vmul.f32 %v7561_v34, %v3583_v27  ;;  %v3672_v11 = vmul.f32 %v7575_v63, %v7640_v43 }
 0x62f   : > { %v3759_v14 = vadd.f32 %v3752_v1, %v3741_v16  ;;  %v3760_v56 = vadd.f32 %v3753_v36, %v3742_v15  ;;  %v3683_v62 = vmul.f32 %v7607_v9, %v7558_v2  ;;  %v3701_v13 = vmul.f32 %v7564_v40, %v3583_v27 }
 0x630   : > { %v3657_v42 = vsel %vm1686_vm4, 0.0, %v3639_v3  ;;  %v3630_v18 = vadd.f32 %v3624_v51, %v7672_v5  ;;  %v3727_v57 = vmul.f32 %v7578_v49, %v7693_v55  ;;  %v3756_v23 = vmul.f32 %v7567_v61, %v7719_v48 }
 0x631   : > { %v3658_v25 = vadd.f32 %v3657_v42, %v7572_v4  ;;  %v3773_v43 = vrot.slane %v3759_v14, 7  ;;  %v3774_v39 = vrot.slane %v3760_v56, 7  ;;  %v3690_v28 = vadd.f32 %v3683_v62, %v3672_v11 }
 0x632   : > { %v8284_v9 = vpack.c.bf16 %v7527_v20, %v7527_v20  ;;  %v3644_v27 = vrot.slane %v3630_v18, 1  ;;  %v3745_v30 = vadd.f32 %v7680_v10, %v3727_v57  ;;  %v3641_v5 = vsel %vm1686_vm4, %v3639_v3, %v3640_v29 }
 0x633   : > { %v3670_v58 = vmul.f32 %v7575_v63, %v7648_v21  ;;  %v3712_v44 = vadd.f32 %v3705_v33, %v3658_v25  ;;  %v3775_v50 = vsel %vm535_vm0, %v3773_v43, %v3774_v39  ;;  %v3708_v46 = vadd.f32 %v3701_v13, %v3690_v28 }
 0x634   : > { %4750 = vmatmul.mubr.msk.bf16.gmra.mrb[52].mxu0 %vm692_vm2, %v8284_v9  ;;  %v3659_v1 = vadd.f32 %v3641_v5, %v7572_v4  ;;  %v3645_v36 = vsel %vm1686_vm4, %v3642_v0, %v3644_v27  ;;  %v3763_v31 = vadd.f32 %v3756_v23, %v3745_v30  ;;  %v3681_v20 = vmul.f32 %v7558_v2, %v7618_v17 }
 0x635   : > { %v3699_v10 = vmul.f32 %v7564_v40, %v7651_v37  ;;  %v3793_v16 = vadd.f32 %v3775_v50, %v3712_v44  ;;  %v3661_v29 = vadd.f32 %v3645_v36, %v7572_v4  ;;  %v3777_v21 = vsel %vm535_vm0, %v3774_v39, %v3776_v6 }
 0x636   : > { %v3559_v33 = vmul.f32 %v8204_v53, %v3543_v54  ;;  %v3780_v15 = vrot.slane %v3763_v31, 7  ;;  %v3688_v3 = vadd.f32 %v3681_v20, %v3670_v58  ;;  %v3585_v0 = vmul.f32 %v8211_v41, %v7710_v26 }
 0x637   : > { %v3600_v17 = vmul.f32 %v7555_v8, %v7716_v60  ;;  %v3715_v51 = vadd.f32 %v3708_v46, %v3661_v29  ;;  %v3625_v6 = vmul.f32 %v7561_v34, %v7719_v48  ;;  %v3673_v26 = vmul.f32 %v7575_v63, %v7693_v55 }
 0x638   : > { %v3675_v37 = vmul.f32 %v7575_v63, %v3559_v33  ;;  %v3729_v11 = vmul.f32 %v7578_v49, %v3559_v33  ;;  %v3781_v52 = vsel %vm535_vm0, %v3778_v59, %v3780_v15  ;;  %v3706_v14 = vadd.f32 %v3699_v10, %v3688_v3 }
 0x639   : > { %v3616_v53 = vadd.f32 %v7690_v38, %v3600_v17  ;;  %v3626_v54 = vmul.f32 %v7561_v34, %v3585_v0  ;;  %v3796_v56 = vadd.f32 %v3781_v52, %v3715_v51  ;;  %v3631_v8 = vadd.f32 %v3625_v6, %v7729_v7 }
 0x63a   : > { %v3693_v41 = vadd.f32 %v7665_v22, %v3675_v37  ;;  %v3713_v62 = vadd.f32 %v3706_v14, %v3659_v1  ;;  %v3684_v42 = vmul.f32 %v7558_v2, %v7670_v45  ;;  %v3702_v59 = vmul.f32 %v7564_v40, %v7719_v48 }
 0x63b   : > { %v3632_v13 = vadd.f32 %v3626_v54, %v3616_v53  ;;  %v3646_v18 = vrot.slane %v3631_v8, 1  ;;  %v3728_v34 = vmul.f32 %v7578_v49, %v7716_v60  ;;  %v3757_v22 = vmul.f32 %v7567_v61, %v3585_v0 }
 0x63c   : > { %v3711_v38 = vadd.f32 %v7582_v47, %v3693_v41  ;;  %v3794_v7 = vadd.f32 %v3777_v21, %v3713_v62  ;;  %v3691_v23 = vadd.f32 %v3684_v42, %v3673_v26  ;;  %v3674_v55 = vmul.f32 %v7575_v63, %v7716_v60  ;;  %v4253_v41 = vld [vmem:[%s7882_s5 + $0x10] ss:$0 sm:$0xff] }
 0x63d   : > { %v3648_v57 = vrot.slane %v3632_v13, 1  ;;  %v3647_v25 = vsel %vm1686_vm4, %v3644_v27, %v3646_v18  ;;  %v3746_v2 = vadd.f32 %v7701_v32, %v3728_v34  ;;  %v3703_v48 = vmul.f32 %v7564_v40, %v3585_v0 }
 0x63e   : > { %v3747_v47 = vadd.f32 %v7668_v24, %v3729_v11  ;;  %v3662_v49 = vadd.f32 %v3647_v25, %v7572_v4  ;;  %v3709_v43 = vadd.f32 %v3702_v59, %v3691_v23  ;;  %v3692_v63 = vadd.f32 %v7697_v35, %v3674_v55 }
 0x63f   : > { %v3664_v45 = vadd.f32 %v3648_v57, %v7572_v4  ;;  %v3649_v61 = vsel %vm1686_vm4, %v3646_v18, %v3648_v57  ;;  %v3764_v39 = vadd.f32 %v3757_v22, %v3746_v2 }
 0x640   : > { %v3663_v28 = vadd.f32 %v3649_v61, %v7572_v4  ;;  %v3765_v60 = vadd.f32 %v7586_v12, %v3747_v47  ;;  %v3716_v32 = vadd.f32 %v3709_v43, %v3662_v49  ;;  %v3710_v40 = vadd.f32 %v3703_v48, %v3692_v63 }
 0x641   : > { %v3718_v9 = vadd.f32 %v3711_v38, %v3664_v45  ;;  %v3782_v27 = vrot.slane %v3764_v39, 7 }
 0x642   : > { %v3784_v30 = vrot.slane %v3765_v60, 7  ;;  %v3717_v5 = vadd.f32 %v3710_v40, %v3663_v28 }
 0x643   : > { %v3783_v24 = vsel %vm535_vm0, %v3780_v15, %v3782_v27 }
 0x644   : > { %v3785_v58 = vsel %vm535_vm0, %v3782_v27, %v3784_v30  ;;  %v3797_v44 = vadd.f32 %v3783_v24, %v3716_v32  ;;  %vm4051_vm0 = vcmask 261120  }
 0x645   : > { %v3792_v50 = vsel %vm1919_vm13, %v3785_v58, 0.0 }
 0x646   : > { %v3798_v46 = vadd.f32 %v3792_v50, %v3717_v5 }
 0x6fe   : > { %v4747_v1 = vpop.f32.mrb[48].mxu0 }
 0x6ff   : > { %v3932_v4 = vadd.f32 %v4747_v1, %v7783_v19  ;;  %v3923_v35 = vpop.f32.mrb[49].mxu0 }
 0x700   : > { %v3924_v36 = vadd.f32 %v3923_v35, %v3793_v16  ;;  %v4748_v12 = vpop.f32.mrb[50].mxu0 }
 0x701   : > { %v3935_v31 = vadd.f32 %v4748_v12, %v3796_v56  ;;  %v3926_v20 = vpop.f32.mrb[51].mxu0  ;;  %v3955_v29 = vmax.f32 %v3932_v4, 0.0 }
 0x702   : > { %v3927_v10 = vadd.f32 %v3926_v20, %v3794_v7  ;;  %v3953_v33 = vmax.f32 %v3924_v36, 0.0 }
 0x703   : > { %v3956_v21 = vmax.f32 %v3935_v31, 0.0 }
 0x704   : > { %v3954_v15 = vmax.f32 %v3927_v10, 0.0 }
 0x705   : > { %v3961_v3 = vpack.c.bf16 %v3956_v21, %v3955_v29 }
 0x706   : > { %v3960_v0 = vpack.c.bf16 %v3954_v15, %v3953_v33 }
 0x707   : > { %v4751_v17 = vpop.f32.mrb[52].mxu0 }
 0x708   : > { %v3948_v51 = vadd.f32 %v4751_v17, %v3718_v9  ;;  %v3939_v37 = vpop.f32.mrb[53].mxu0  ;;  %4755 = vmatprep.mubr.msk.bf16.mxu0 %vm2121_vm3, %v3960_v0 }
 0x709   : > { %v3940_v11 = vadd.f32 %v3939_v37, %v3797_v44  ;;  %v4752_v6 = vpop.f32.mrb[54].mxu0  ;;  %4756 = vmatmul.mubr.msk.bf16.vlgmr.msra.gmra.mrb[32].mxu0 %vm2121_vm3, %v3961_v3 }
 0x70a   : > { %v3942_v19 = vpop.f32.mrb[55].mxu0  ;;  %v3959_v52 = vmax.f32 %v3948_v51, 0.0 }
 0x70b   : > { %v3943_v16 = vadd.f32 %v3942_v19, %v3798_v46  ;;  %v3957_v14 = vmax.f32 %v3940_v11, 0.0 }
 0x70c   : > { %v3963_v56 = vpack.c.bf16 %v3959_v52, %v3959_v52 }
 0x70d   : > { %v3958_v53 = vmax.f32 %v3943_v16, 0.0 }
 0x70f   : > { %v3962_v54 = vpack.c.bf16 %v3958_v53, %v3957_v14 }
 0x711   : > { %4759 = vmatprep.mubr.msk.bf16.mxu0 %vm2121_vm3, %v3962_v54 }
 0x712   : > { %4760 = vmatmul.mubr.msk.bf16.gmra.mrb[36].mxu0 %vm2121_vm3, %v3963_v56 }
 0x7dc   : > { %v4757_v8 = vpop.f32.mrb[32].mxu0 }
 0x7dd   : > { %v4763_v26 = vadd.f32 %v4757_v8, %v4253_v41  ;;  %v4014_v62 = vpop.f32.mrb[33].mxu0 }
 0x7de   : > { %v4764_v13 = vadd.f32 %v4253_v41, %v4014_v62  ;;  %v4758_v42 = vpop.f32.mrb[34].mxu0 }
 0x7df   : > { %4054 = vst.msk [vmem:[%s292_s11 + $0x10] sm:$0xff] %vm4051_vm0, %v4763_v26  ;;  %v4765_v59 = vadd.f32 %v4758_v42, %v4253_v41  ;;  %v4017_v38 = vpop.f32.mrb[35].mxu0 }
 0x7e0   : > { %4052 = vst.msk [vmem:[%s292_s11] sm:$0xff] %vm4051_vm0, %v4764_v13  ;;  %v4766_v18 = vadd.f32 %v4253_v41, %v4017_v38 }
 0x7e1   : > { %4055 = vst.msk [vmem:[%s292_s11 + $0x18] sm:$0xff] %vm4051_vm0, %v4765_v59 }
 0x7e2   : > { %4053 = vst.msk [vmem:[%s292_s11 + $0x8] sm:$0xff] %vm4051_vm0, %v4766_v18 }
 0x7e5   : > { %v4761_v34 = vpop.f32.mrb[36].mxu0 }
 0x7e6   : > { %v4767_v22 = vadd.f32 %v4761_v34, %v4253_v41  ;;  %v4030_v7 = vpop.f32.mrb[37].mxu0 }
 0x7e7   : > { %v4768_v57 = vadd.f32 %v4253_v41, %v4030_v7  ;;  %v4762_v23 = vpop.f32.mrb[38].mxu0 }
 0x7e8   : > { %4059 = vst.msk [vmem:[%s292_s11 + $0x30] sm:$0x1] %vm4058_vm1, %v4767_v22  ;;  %v4033_v55 = vpop.f32.mrb[39].mxu0 }
 0x7e9   : > { %4056 = vst.msk [vmem:[%s292_s11 + $0x20] sm:$0xff] %vm4051_vm0, %v4768_v57  ;;  %v4769_v25 = vadd.f32 %v4253_v41, %v4033_v55 }
 0x7eb   : > { %4057 = vst.msk [vmem:[%s292_s11 + $0x28] sm:$0xff] %vm4051_vm0, %v4769_v25 }
 0x7ec PF: > { %s18_s24 = sadd.s32 1, %s5016_s24  }
 0x7ed   : > { %p15_p1 = scmp.ge.s32.totalorder %s18_s24, 4  }
 0x7ef   :  { %17 = sbr.rel (!%p15_p1) target bundleno = 1 (0x1), region = 101 }
 0x7f6   :  { %4081 = vsyncpa [#allocation4], 1 }
 0x7f7   :  { %4083 = vsyncpa [#allocation4 + $0x1], 1 }

</bundles_post_ra>
